<compile_context>
chip_gen: v7x
topology: tpu7x:2x2x1
jax: 0.10.0
libtpu: 0.0.40
codegen_flags: <defaults>
</compile_context>

<pallas_src>
import jax
import jax.numpy as jnp
from jax.experimental import pallas as pl
from jax.experimental.pallas import tpu as pltpu


# ---------------------------------------------------------------------------
# conv1: Conv3x3(pad=1)+bias+ReLU+MaxPool2 as pool-parity im2col GEMMs (bf16)
# ---------------------------------------------------------------------------
def _conv_gemm_relu_pool_kernel(p00_ref, p01_ref, p10_ref, p11_ref,
                                w_ref, b_ref, o_ref):
    """
    pXY_ref: (1, M, 9*Cin) bf16 im2col patches for pool-window position (X, Y)
    w_ref:   (9*Cin, Cout)  bf16 conv weight, rows in (kh, kw, cin) order
    b_ref:   (1, Cout)      f32
    o_ref:   (1, M, Cout)   f32 pooled output rows (pooled_row, pooled_col)
    """
    w = w_ref[...]

    def gemm(p_ref):
        # One dense bf16 MXU GEMM per pool parity, f32 accumulation.
        return jnp.dot(p_ref[0], w, preferred_element_type=jnp.float32)

    # 2x2 max-pool == element-wise max of the four parity GEMM outputs (VPU).
    y = jnp.maximum(jnp.maximum(gemm(p00_ref), gemm(p01_ref)),
                    jnp.maximum(gemm(p10_ref), gemm(p11_ref)))
    # Shared bias + ReLU commute with the max (monotone), apply once.
    y = jnp.maximum(y + b_ref[...], 0.0)
    o_ref[0] = y.astype(o_ref.dtype)


def _pool_parity_patches(x_nhwc):
    """bf16 3x3 SAME-conv patches grouped by 2x2 max-pool window position.

    Returns 4 arrays p[r*2+c] of shape (B, Hh*Wh, 9*C) with
      p[rc][b, i*Wh + j, (kh*3+kw)*C + ch] = xpad[b, 2i+r+kh, 2j+c+kw, ch]
    (boundary glue only: pad / strided slice / concat, no FLOPs).
    """
    B, H, W, C = x_nhwc.shape
    Hh, Wh = H // 2, W // 2
    xp = jnp.pad(x_nhwc, ((0, 0), (1, 1), (1, 1), (0, 0))).astype(jnp.bfloat16)
    outs = []
    for r in range(2):
        for c in range(2):
            taps = [xp[:, r + kh: r + kh + H - 1: 2,
                        c + kw: c + kw + W - 1: 2, :]
                    for kh in range(3) for kw in range(3)]
            outs.append(jnp.concatenate(taps, axis=-1).reshape(B, Hh * Wh, 9 * C))
    return outs


def _pick_pool_row_tile(Hh, Wh, KC, Cout, budget_bytes=12 << 20):
    """Largest pooled-row tile tph dividing Hh such that the double-buffered
    four bf16 parity blocks plus the f32 output block fit the VMEM budget and
    the block second-to-last dim (tph*Wh) keeps (8,128) tiling (or is the full
    extent).  Prefer >1 grid step when it is free."""
    cands = [d for d in range(1, Hh + 1)
             if Hh % d == 0 and ((d * Wh) % 8 == 0 or d == Hh)]

    def bytes_needed(d):
        m = d * Wh
        return 2 * (4 * m * KC * 2 + m * Cout * 4)   # x2 double-buffering

    fits = [d for d in cands if bytes_needed(d) <= budget_bytes]
    strict = [d for d in fits if d < Hh]
    if strict:
        return max(strict)
    if fits:
        return max(fits)
    return min(cands)


def conv3x3_relu_maxpool2_im2col(x_nhwc, w_hwio, b):
    """Conv3x3(SAME) + bias + ReLU + MaxPool2x2, NHWC in / NHWC out (f32)."""
    B, H, W, Cin = x_nhwc.shape
    assert H % 2 == 0 and W % 2 == 0, "even spatial dims required (MaxPool2)"
    Cout = w_hwio.shape[-1]
    KC = 9 * Cin
    Hh, Wh = H // 2, W // 2

    p00, p01, p10, p11 = _pool_parity_patches(x_nhwc)
    w2d = w_hwio.reshape(KC, Cout).astype(jnp.bfloat16)

    tph = _pick_pool_row_tile(Hh, Wh, KC, Cout)
    m = tph * Wh                                   # GEMM rows per grid step
    grid = (B, Hh // tph)
    pspec = pl.BlockSpec((1, m, KC), lambda b_, r: (b_, r, 0))

    out = pl.pallas_call(
        _conv_gemm_relu_pool_kernel,
        out_shape=jax.ShapeDtypeStruct((B, Hh * Wh, Cout), jnp.float32),
        grid=grid,
        in_specs=[pspec, pspec, pspec, pspec,
                  pl.BlockSpec((KC, Cout), lambda b_, r: (0, 0)),
                  pl.BlockSpec((1, Cout), lambda b_, r: (0, 0))],
        # Cout=64 (<128 lanes) keeps masked stores; only revisit if a bundle
        # profile shows the vector-store slot binding (review item 7).
        out_specs=pl.BlockSpec((1, m, Cout), lambda b_, r: (b_, r, 0)),
        compiler_params=pltpu.CompilerParams(
            dimension_semantics=("parallel", "parallel"),
            vmem_limit_bytes=48 * 1024 * 1024),
    )(p00, p01, p10, p11, w2d, b)
    return out.reshape(B, Hh, Wh, Cout)


# ---------------------------------------------------------------------------
# conv2: fused Conv3x3+bias+ReLU+MaxPool2 from phase slabs (no im2col blowup)
# ---------------------------------------------------------------------------
def _conv2_phase_kernel(t0_ref, t1_ref, w4_ref, b_ref, o_ref):
    """
    t{pr}_ref: (1, (Hh+1)*Wh, 4*C) bf16 phase slab pr, where
               t[pr][i*Wh + j, g*C + ch] = xpad[2i+pr, 2j+g, ch],  g in 0..3
    w4_ref:    (2, 3, 4*C, Cout) bf16, w4[c,kh, g*C+ch, co] = W[kh, g-c, ch, co]
               (zero where g-c is outside 0..2)
    b_ref:     (1, Cout) f32
    o_ref:     (1, Hh*Wh, Cout) f32, rows ordered (pooled_row, pooled_col)
    """
    M = o_ref.shape[1]               # Hh*Wh
    Cout = o_ref.shape[2]
    Wh = t0_ref.shape[1] - M         # (Hh+1)*Wh - Hh*Wh
    t_refs = (t0_ref, t1_ref)

    y = None
    for r in range(2):               # pool-window row parity
        for c in range(2):           # pool-window col parity
            acc = jnp.zeros((M, Cout), jnp.float32)
            for kh in range(3):      # conv kernel row tap
                pr, dr = (r + kh) % 2, (r + kh) // 2
                # Static, contiguous row slice of the slab: rows dr*Wh .. +M.
                lhs = t_refs[pr][0, dr * Wh: dr * Wh + M, :]
                acc = acc + jnp.dot(lhs, w4_ref[c, kh],
                                    preferred_element_type=jnp.float32)
            y = acc if y is None else jnp.maximum(y, acc)
    o_ref[0] = jnp.maximum(y + b_ref[...], 0.0).astype(o_ref.dtype)


def conv3x3_relu_maxpool2_phase(x_nhwc, w_hwio, b):
    """Conv3x3(SAME)+bias+ReLU+MaxPool2 with in-kernel tap construction.

    The wrapper de-interleaves the padded activation into two bf16 phase slabs
    (total bytes ~= activation bytes, not 9x) and zero-pads the weight so every
    MXU GEMM is lane-dense with K = 4*Cin."""
    B, H, W, C = x_nhwc.shape
    assert H % 2 == 0 and W % 2 == 0, "even spatial dims required (MaxPool2)"
    Cout = w_hwio.shape[-1]
    Hh, Wh = H // 2, W // 2
    M = Hh * Wh
    Mt = (Hh + 1) * Wh

    xp = jnp.pad(x_nhwc, ((0, 0), (1, 1), (1, 1), (0, 0))).astype(jnp.bfloat16)
    slabs = []
    for pr in range(2):
        # piece g: xpad rows pr::2, cols g, g+2, ..., g+2*(Wh-1)  (all static)
        pieces = [xp[:, pr: H + 2: 2, g: g + 2 * Wh: 2, :] for g in range(4)]
        slabs.append(jnp.concatenate(pieces, axis=-1).reshape(B, Mt, 4 * C))
    t0, t1 = slabs

    z = jnp.zeros((C, Cout), w_hwio.dtype)
    w4 = jnp.stack([
        jnp.stack([jnp.concatenate(
            [w_hwio[kh, 0], w_hwio[kh, 1], w_hwio[kh, 2], z], axis=0)
            for kh in range(3)]),
        jnp.stack([jnp.concatenate(
            [z, w_hwio[kh, 0], w_hwio[kh, 1], w_hwio[kh, 2]], axis=0)
            for kh in range(3)]),
    ]).astype(jnp.bfloat16)                       # (2, 3, 4*C, Cout)

    out = pl.pallas_call(
        _conv2_phase_kernel,
        out_shape=jax.ShapeDtypeStruct((B, M, Cout), jnp.float32),
        grid=(B,),
        in_specs=[pl.BlockSpec((1, Mt, 4 * C), lambda b_: (b_, 0, 0)),
                  pl.BlockSpec((1, Mt, 4 * C), lambda b_: (b_, 0, 0)),
                  pl.BlockSpec((2, 3, 4 * C, Cout), lambda b_: (0, 0, 0, 0)),
                  pl.BlockSpec((1, Cout), lambda b_: (0, 0))],
        out_specs=pl.BlockSpec((1, M, Cout), lambda b_: (b_, 0, 0)),
        compiler_params=pltpu.CompilerParams(
            dimension_semantics=("parallel",),
            vmem_limit_bytes=48 * 1024 * 1024),
    )(t0, t1, w4, b)
    return out.reshape(B, Hh, Wh, Cout)


# ---------------------------------------------------------------------------
# Classifier head: K-tiled Linear(F,512) + ReLU -> Linear(512,4)
# ---------------------------------------------------------------------------
def _mlp_kernel(x_ref, w1_ref, b1_ref, w2_ref, o_ref, acc_ref):
    k = pl.program_id(1)

    @pl.when(k == 0)
    def _init():
        acc_ref[...] = jnp.zeros_like(acc_ref)

    # bf16 activations x bf16 streamed weight tile on the native MXU path;
    # f32 accumulation in the VMEM scratch.
    acc_ref[...] += jnp.dot(x_ref[...].astype(jnp.bfloat16), w1_ref[...],
                            preferred_element_type=jnp.float32)

    @pl.when(k == pl.num_programs(1) - 1)
    def _finalize():
        h = jnp.maximum(acc_ref[...] + b1_ref[...], 0.0)
        o_ref[0] = jnp.dot(h, w2_ref[...], preferred_element_type=jnp.float32)


def _pick_k_tile(F, cap=8192):
    tk = None
    for cand in range(128, min(F, cap) + 1, 128):
        if F % cand == 0:
            tk = cand
    return tk if tk is not None else F


def mlp_head(x, w1, b1, w2, b2):
    B, F = x.shape
    Hd = w1.shape[1]
    O = w2.shape[1]
    NH = 2 if Hd % 256 == 0 else 1      # v7x: leading "parallel" axis (2x256)
    Hdh = Hd // NH
    tk = _pick_k_tile(F)
    partial = pl.pallas_call(
        _mlp_kernel,
        out_shape=jax.ShapeDtypeStruct((NH, B, O), jnp.float32),
        grid=(NH, F // tk),
        in_specs=[
            pl.BlockSpec((B, tk), lambda h, k: (0, k)),
            pl.BlockSpec((tk, Hdh), lambda h, k: (k, h)),   # streamed bf16 w1
            pl.BlockSpec((1, Hdh), lambda h, k: (0, h)),
            pl.BlockSpec((Hdh, O), lambda h, k: (h, 0)),
        ],
        out_specs=pl.BlockSpec((1, B, O), lambda h, k: (h, 0, 0)),
        scratch_shapes=[pltpu.VMEM((B, Hdh), jnp.float32)],
        compiler_params=pltpu.CompilerParams(
            dimension_semantics=("parallel", "arbitrary"),
            vmem_limit_bytes=48 * 1024 * 1024),
    )(x, w1, b1, w2)
    # Sum the per-hidden-half partial logits and add the fc2 bias (tiny XLA op).
    return partial.sum(axis=0) + b2


# ---------------------------------------------------------------------------
# Parameters + full forward
# ---------------------------------------------------------------------------
def init_params(key, H, W):
    ks = jax.random.split(key, 8)
    c1_w = jax.random.normal(ks[0], (3, 3, 3, 64), jnp.float32) * 0.10    # HWIO
    c1_b = jax.random.normal(ks[1], (1, 64), jnp.float32) * 0.10
    c2_w = jax.random.normal(ks[2], (3, 3, 64, 128), jnp.float32) * 0.05  # HWIO
    c2_b = jax.random.normal(ks[3], (1, 128), jnp.float32) * 0.10

    Hq, Wq = H // 4, W // 4
    feat = 128 * Hq * Wq
    # nn.Linear(128*Hq*Wq, 512): rows ordered per PyTorch's NCHW flatten (c,h,w).
    fc1_w_pt = jax.random.normal(ks[4], (feat, 512), jnp.float32) * 0.02
    # Pre-permute rows to NHWC-flatten order (one-time weight shuffle) so the
    # runtime transpose of the (B,Hq,Wq,128) feature map disappears; store bf16
    # so the dominant HBM weight stream is halved at full size.
    fc1_w = (fc1_w_pt.reshape(128, Hq, Wq, 512)
             .transpose(1, 2, 0, 3).reshape(feat, 512)).astype(jnp.bfloat16)
    fc1_b = jax.random.normal(ks[5], (1, 512), jnp.float32) * 0.02
    fc2_w = jax.random.normal(ks[6], (512, 4), jnp.float32) * 0.05
    fc2_b = jax.random.normal(ks[7], (1, 4), jnp.float32) * 0.05
    return dict(c1_w=c1_w, c1_b=c1_b, c2_w=c2_w, c2_b=c2_b,
                fc1_w=fc1_w, fc1_b=fc1_b, fc2_w=fc2_w, fc2_b=fc2_b)


def obstacle_detector_forward(params, x_nchw):
    x = jnp.transpose(x_nchw, (0, 2, 3, 1)).astype(jnp.float32)        # -> NHWC
    B = x.shape[0]
    f1 = conv3x3_relu_maxpool2_im2col(x, params["c1_w"], params["c1_b"])  # (B,H/2,W/2,64)
    f2 = conv3x3_relu_maxpool2_phase(f1, params["c2_w"], params["c2_b"])  # (B,H/4,W/4,128)
    feat = f2.reshape(B, -1)   # NHWC flatten; fc1_w rows were pre-permuted to match
    return mlp_head(feat, params["fc1_w"], params["fc1_b"],
                    params["fc2_w"], params["fc2_b"])


# ---------------------------------------------------------------------------
# Pure-JAX reference (PyTorch semantics: NCHW flatten + original weight order)
# ---------------------------------------------------------------------------
def _reference_forward(params, x_nchw):
    x = jnp.transpose(x_nchw, (0, 2, 3, 1)).astype(jnp.float32)

    def conv_relu_pool_ref(x, w_hwio, b):
        y = jax.lax.conv_general_dilated(
            x, w_hwio, window_strides=(1, 1), padding="SAME",
            dimension_numbers=("NHWC", "HWIO", "NHWC"),
            precision=jax.lax.Precision.HIGHEST)
        y = jnp.maximum(y + b.reshape(1, 1, 1, -1), 0.0)
        B, H, W, C = y.shape
        return y.reshape(B, H // 2, 2, W // 2, 2, C).max(axis=(2, 4))

    f1 = conv_relu_pool_ref(x, params["c1_w"], params["c1_b"])
    f2 = conv_relu_pool_ref(f1, params["c2_w"], params["c2_b"])
    B, Hq, Wq, C = f2.shape
    Hd = params["fc1_b"].shape[1]
    # Undo the init-time NHWC row permutation to recover the PyTorch-ordered
    # fc1 weight, and flatten NCHW exactly as the module does.
    w1_pt = (params["fc1_w"].astype(jnp.float32)
             .reshape(Hq, Wq, C, Hd).transpose(2, 0, 1, 3).reshape(-1, Hd))
    feat = jnp.transpose(f2, (0, 3, 1, 2)).reshape(B, -1)
    h = jnp.maximum(jnp.dot(feat, w1_pt, precision=jax.lax.Precision.HIGHEST)
                    + params["fc1_b"], 0.0)
    return (jnp.dot(h, params["fc2_w"], precision=jax.lax.Precision.HIGHEST)
            + params["fc2_b"])


if __name__ == "__main__":
    key = jax.random.PRNGKey(0)
    kx, kp = jax.random.split(key)
    B, C, H, W = 2, 3, 16, 16
    x = jax.random.normal(kx, (B, C, H, W), jnp.float32)
    params = init_params(kp, H, W)

    fwd = jax.jit(obstacle_detector_forward)
    out = jax.block_until_ready(fwd(params, x))

    ref = _reference_forward(params, x)
    assert out.shape == (B, 4), out.shape
    # bf16 GEMM operands (f32 accumulation) vs. the f32 HIGHEST-precision ref.
    assert jnp.allclose(out, ref, rtol=2e-2, atol=2e-2), (out, ref)
    print("KERNEL_OK")
</pallas_src>

<mosaic_0001>
module attributes {stable_mosaic.version = 11 : i64} {
  func.func @_conv_gemm_relu_pool_kernel(%arg0: i32, %arg1: i32, %arg2: memref<1x32x27xbf16, #tpu.memory_space<vmem>>, %arg3: memref<1x32x27xbf16, #tpu.memory_space<vmem>>, %arg4: memref<1x32x27xbf16, #tpu.memory_space<vmem>>, %arg5: memref<1x32x27xbf16, #tpu.memory_space<vmem>>, %arg6: memref<27x64xbf16, #tpu.memory_space<vmem>>, %arg7: memref<1x64xf32, #tpu.memory_space<vmem>>, %arg8: memref<1x32x64xf32, #tpu.memory_space<vmem>>) attributes {dimension_semantics = [#tpu.dimension_semantics<parallel>, #tpu.dimension_semantics<parallel>], iteration_bounds = array<i64: 2, 2>, scalar_prefetch = 0 : i64, scratch_operands = 0 : i64, tpu.core_type = #tpu.core_type<tc>, window_params = [{transform_indices = @transform_0, window_bounds = array<i64: 1, 32, 27>}, {transform_indices = @transform_1, window_bounds = array<i64: 1, 32, 27>}, {transform_indices = @transform_2, window_bounds = array<i64: 1, 32, 27>}, {transform_indices = @transform_3, window_bounds = array<i64: 1, 32, 27>}, {pipeline_mode = #tpu.pipeline_mode<synchronous>, transform_indices = @transform_4, window_bounds = array<i64: 27, 64>}, {pipeline_mode = #tpu.pipeline_mode<synchronous>, transform_indices = @transform_5, window_bounds = array<i64: 1, 64>}, {transform_indices = @transform_6, window_bounds = array<i64: 1, 32, 64>}]} {
    %c0 = arith.constant 0 : index
    %c0_0 = arith.constant 0 : index
    %0 = vector.load %arg6[%c0, %c0_0] : memref<27x64xbf16, #tpu.memory_space<vmem>>, vector<27x64xbf16>
    %c0_1 = arith.constant 0 : index
    %c0_2 = arith.constant 0 : index
    %c0_3 = arith.constant 0 : index
    %1 = vector.load %arg2[%c0_1, %c0_2, %c0_3] : memref<1x32x27xbf16, #tpu.memory_space<vmem>>, vector<1x32x27xbf16>
    %2 = vector.shape_cast %1 : vector<1x32x27xbf16> to vector<32x27xbf16>
    %cst = arith.constant dense<0.000000e+00> : vector<32x64xf32>
    %3 = tpu.matmul %2, %0, %cst {dimension_numbers = #tpu.dot_dimension_numbers<[1], [0], [0], [1], [0, 0, 1, 1], [], []>} : vector<32x27xbf16>, vector<27x64xbf16>, vector<32x64xf32> -> vector<32x64xf32>
    %c0_4 = arith.constant 0 : index
    %c0_5 = arith.constant 0 : index
    %c0_6 = arith.constant 0 : index
    %4 = vector.load %arg3[%c0_4, %c0_5, %c0_6] : memref<1x32x27xbf16, #tpu.memory_space<vmem>>, vector<1x32x27xbf16>
    %5 = vector.shape_cast %4 : vector<1x32x27xbf16> to vector<32x27xbf16>
    %cst_7 = arith.constant dense<0.000000e+00> : vector<32x64xf32>
    %6 = tpu.matmul %5, %0, %cst_7 {dimension_numbers = #tpu.dot_dimension_numbers<[1], [0], [0], [1], [0, 0, 1, 1], [], []>} : vector<32x27xbf16>, vector<27x64xbf16>, vector<32x64xf32> -> vector<32x64xf32>
    %7 = arith.maximumf %3, %6 : vector<32x64xf32>
    %c0_8 = arith.constant 0 : index
    %c0_9 = arith.constant 0 : index
    %c0_10 = arith.constant 0 : index
    %8 = vector.load %arg4[%c0_8, %c0_9, %c0_10] : memref<1x32x27xbf16, #tpu.memory_space<vmem>>, vector<1x32x27xbf16>
    %9 = vector.shape_cast %8 : vector<1x32x27xbf16> to vector<32x27xbf16>
    %cst_11 = arith.constant dense<0.000000e+00> : vector<32x64xf32>
    %10 = tpu.matmul %9, %0, %cst_11 {dimension_numbers = #tpu.dot_dimension_numbers<[1], [0], [0], [1], [0, 0, 1, 1], [], []>} : vector<32x27xbf16>, vector<27x64xbf16>, vector<32x64xf32> -> vector<32x64xf32>
    %c0_12 = arith.constant 0 : index
    %c0_13 = arith.constant 0 : index
    %c0_14 = arith.constant 0 : index
    %11 = vector.load %arg5[%c0_12, %c0_13, %c0_14] : memref<1x32x27xbf16, #tpu.memory_space<vmem>>, vector<1x32x27xbf16>
    %12 = vector.shape_cast %11 : vector<1x32x27xbf16> to vector<32x27xbf16>
    %cst_15 = arith.constant dense<0.000000e+00> : vector<32x64xf32>
    %13 = tpu.matmul %12, %0, %cst_15 {dimension_numbers = #tpu.dot_dimension_numbers<[1], [0], [0], [1], [0, 0, 1, 1], [], []>} : vector<32x27xbf16>, vector<27x64xbf16>, vector<32x64xf32> -> vector<32x64xf32>
    %14 = arith.maximumf %10, %13 : vector<32x64xf32>
    %15 = arith.maximumf %7, %14 : vector<32x64xf32>
    %c0_16 = arith.constant 0 : index
    %c0_17 = arith.constant 0 : index
    %16 = vector.load %arg7[%c0_16, %c0_17] : memref<1x64xf32, #tpu.memory_space<vmem>>, vector<1x64xf32>
    %17 = vector.broadcast %16 : vector<1x64xf32> to vector<32x64xf32>
    %18 = arith.addf %15, %17 : vector<32x64xf32>
    %cst_18 = arith.constant 0.000000e+00 : f32
    %19 = vector.broadcast %cst_18 : f32 to vector<32x64xf32>
    %20 = arith.maximumf %18, %19 : vector<32x64xf32>
    %c0_19 = arith.constant 0 : index
    %c0_20 = arith.constant 0 : index
    %c0_21 = arith.constant 0 : index
    %21 = vector.load %arg8[%c0_19, %c0_20, %c0_21] : memref<1x32x64xf32, #tpu.memory_space<vmem>>, vector<1x32x64xf32>
    %22 = vector.shape_cast %21 : vector<1x32x64xf32> to vector<32x64xf32>
    %23 = vector.shape_cast %20 : vector<32x64xf32> to vector<1x32x64xf32>
    tpu.vector_store %arg8[%c0_19, %c0_20, %c0_21], %23 {strides = array<i32>} : memref<1x32x64xf32, #tpu.memory_space<vmem>>, vector<1x32x64xf32>,
    return
  }
  func.func @transform_0(%arg0: i32, %arg1: i32) -> (i32, i32, i32) {
    %c0_i32 = arith.constant 0 : i32
    %c0_i32_0 = arith.constant 0 : i32
    return %arg0, %arg1, %c0_i32 : i32, i32, i32
  }
  func.func @transform_1(%arg0: i32, %arg1: i32) -> (i32, i32, i32) {
    %c0_i32 = arith.constant 0 : i32
    %c0_i32_0 = arith.constant 0 : i32
    return %arg0, %arg1, %c0_i32 : i32, i32, i32
  }
  func.func @transform_2(%arg0: i32, %arg1: i32) -> (i32, i32, i32) {
    %c0_i32 = arith.constant 0 : i32
    %c0_i32_0 = arith.constant 0 : i32
    return %arg0, %arg1, %c0_i32 : i32, i32, i32
  }
  func.func @transform_3(%arg0: i32, %arg1: i32) -> (i32, i32, i32) {
    %c0_i32 = arith.constant 0 : i32
    %c0_i32_0 = arith.constant 0 : i32
    return %arg0, %arg1, %c0_i32 : i32, i32, i32
  }
  func.func @transform_4(%arg0: i32, %arg1: i32) -> (i32, i32) {
    %c0_i32 = arith.constant 0 : i32
    %c0_i32_0 = arith.constant 0 : i32
    %c0_i32_1 = arith.constant 0 : i32
    return %c0_i32, %c0_i32_0 : i32, i32
  }
  func.func @transform_5(%arg0: i32, %arg1: i32) -> (i32, i32) {
    %c0_i32 = arith.constant 0 : i32
    %c0_i32_0 = arith.constant 0 : i32
    %c0_i32_1 = arith.constant 0 : i32
    return %c0_i32, %c0_i32_0 : i32, i32
  }
  func.func @transform_6(%arg0: i32, %arg1: i32) -> (i32, i32, i32) {
    %c0_i32 = arith.constant 0 : i32
    %c0_i32_0 = arith.constant 0 : i32
    return %arg0, %arg1, %c0_i32 : i32, i32, i32
  }
}

module attributes {stable_mosaic.version = 11 : i64} {
  func.func @_conv2_phase_kernel(%arg0: i32, %arg1: memref<1x20x256xbf16, #tpu.memory_space<vmem>>, %arg2: memref<1x20x256xbf16, #tpu.memory_space<vmem>>, %arg3: memref<2x3x256x128xbf16, #tpu.memory_space<vmem>>, %arg4: memref<1x128xf32, #tpu.memory_space<vmem>>, %arg5: memref<1x16x128xf32, #tpu.memory_space<vmem>>) attributes {dimension_semantics = [#tpu.dimension_semantics<parallel>], iteration_bounds = array<i64: 2>, scalar_prefetch = 0 : i64, scratch_operands = 0 : i64, tpu.core_type = #tpu.core_type<tc>, window_params = [{transform_indices = @transform_0, window_bounds = array<i64: 1, 20, 256>}, {transform_indices = @transform_1, window_bounds = array<i64: 1, 20, 256>}, {pipeline_mode = #tpu.pipeline_mode<synchronous>, transform_indices = @transform_2, window_bounds = array<i64: 2, 3, 256, 128>}, {pipeline_mode = #tpu.pipeline_mode<synchronous>, transform_indices = @transform_3, window_bounds = array<i64: 1, 128>}, {transform_indices = @transform_4, window_bounds = array<i64: 1, 16, 128>}]} {
    %cst = arith.constant 0.000000e+00 : f32
    %0 = vector.broadcast %cst : f32 to vector<16x128xf32>
    %c0 = arith.constant 0 : index
    %c0_0 = arith.constant 0 : index
    %c0_1 = arith.constant 0 : index
    %1 = vector.load %arg1[%c0, %c0_0, %c0_1] : memref<1x20x256xbf16, #tpu.memory_space<vmem>>, vector<1x16x256xbf16>
    %2 = vector.shape_cast %1 : vector<1x16x256xbf16> to vector<16x256xbf16>
    %c0_2 = arith.constant 0 : index
    %c0_3 = arith.constant 0 : index
    %c0_4 = arith.constant 0 : index
    %c0_5 = arith.constant 0 : index
    %3 = vector.load %arg3[%c0_2, %c0_3, %c0_4, %c0_5] : memref<2x3x256x128xbf16, #tpu.memory_space<vmem>>, vector<1x1x256x128xbf16>
    %4 = vector.shape_cast %3 : vector<1x1x256x128xbf16> to vector<256x128xbf16>
    %cst_6 = arith.constant dense<0.000000e+00> : vector<16x128xf32>
    %5 = tpu.matmul %2, %4, %cst_6 {dimension_numbers = #tpu.dot_dimension_numbers<[1], [0], [0], [1], [0, 0, 1, 1], [], []>} : vector<16x256xbf16>, vector<256x128xbf16>, vector<16x128xf32> -> vector<16x128xf32>
    %6 = arith.addf %0, %5 : vector<16x128xf32>
    %c0_7 = arith.constant 0 : index
    %c0_8 = arith.constant 0 : index
    %c0_9 = arith.constant 0 : index
    %7 = vector.load %arg2[%c0_7, %c0_8, %c0_9] : memref<1x20x256xbf16, #tpu.memory_space<vmem>>, vector<1x16x256xbf16>
    %8 = vector.shape_cast %7 : vector<1x16x256xbf16> to vector<16x256xbf16>
    %c0_10 = arith.constant 0 : index
    %c1 = arith.constant 1 : index
    %c0_11 = arith.constant 0 : index
    %c0_12 = arith.constant 0 : index
    %9 = vector.load %arg3[%c0_10, %c1, %c0_11, %c0_12] : memref<2x3x256x128xbf16, #tpu.memory_space<vmem>>, vector<1x1x256x128xbf16>
    %10 = vector.shape_cast %9 : vector<1x1x256x128xbf16> to vector<256x128xbf16>
    %cst_13 = arith.constant dense<0.000000e+00> : vector<16x128xf32>
    %11 = tpu.matmul %8, %10, %cst_13 {dimension_numbers = #tpu.dot_dimension_numbers<[1], [0], [0], [1], [0, 0, 1, 1], [], []>} : vector<16x256xbf16>, vector<256x128xbf16>, vector<16x128xf32> -> vector<16x128xf32>
    %12 = arith.addf %6, %11 : vector<16x128xf32>
    %c0_14 = arith.constant 0 : index
    %c4 = arith.constant 4 : index
    %c0_15 = arith.constant 0 : index
    %13 = vector.load %arg1[%c0_14, %c4, %c0_15] : memref<1x20x256xbf16, #tpu.memory_space<vmem>>, vector<1x16x256xbf16>
    %14 = vector.shape_cast %13 : vector<1x16x256xbf16> to vector<16x256xbf16>
    %c0_16 = arith.constant 0 : index
    %c2 = arith.constant 2 : index
    %c0_17 = arith.constant 0 : index
    %c0_18 = arith.constant 0 : index
    %15 = vector.load %arg3[%c0_16, %c2, %c0_17, %c0_18] : memref<2x3x256x128xbf16, #tpu.memory_space<vmem>>, vector<1x1x256x128xbf16>
    %16 = vector.shape_cast %15 : vector<1x1x256x128xbf16> to vector<256x128xbf16>
    %cst_19 = arith.constant dense<0.000000e+00> : vector<16x128xf32>
    %17 = tpu.matmul %14, %16, %cst_19 {dimension_numbers = #tpu.dot_dimension_numbers<[1], [0], [0], [1], [0, 0, 1, 1], [], []>} : vector<16x256xbf16>, vector<256x128xbf16>, vector<16x128xf32> -> vector<16x128xf32>
    %18 = arith.addf %12, %17 : vector<16x128xf32>
    %cst_20 = arith.constant 0.000000e+00 : f32
    %19 = vector.broadcast %cst_20 : f32 to vector<16x128xf32>
    %c0_21 = arith.constant 0 : index
    %c0_22 = arith.constant 0 : index
    %c0_23 = arith.constant 0 : index
    %20 = vector.load %arg1[%c0_21, %c0_22, %c0_23] : memref<1x20x256xbf16, #tpu.memory_space<vmem>>, vector<1x16x256xbf16>
    %21 = vector.shape_cast %20 : vector<1x16x256xbf16> to vector<16x256xbf16>
    %c1_24 = arith.constant 1 : index
    %c0_25 = arith.constant 0 : index
    %c0_26 = arith.constant 0 : index
    %c0_27 = arith.constant 0 : index
    %22 = vector.load %arg3[%c1_24, %c0_25, %c0_26, %c0_27] : memref<2x3x256x128xbf16, #tpu.memory_space<vmem>>, vector<1x1x256x128xbf16>
    %23 = vector.shape_cast %22 : vector<1x1x256x128xbf16> to vector<256x128xbf16>
    %cst_28 = arith.constant dense<0.000000e+00> : vector<16x128xf32>
    %24 = tpu.matmul %21, %23, %cst_28 {dimension_numbers = #tpu.dot_dimension_numbers<[1], [0], [0], [1], [0, 0, 1, 1], [], []>} : vector<16x256xbf16>, vector<256x128xbf16>, vector<16x128xf32> -> vector<16x128xf32>
    %25 = arith.addf %19, %24 : vector<16x128xf32>
    %c0_29 = arith.constant 0 : index
    %c0_30 = arith.constant 0 : index
    %c0_31 = arith.constant 0 : index
    %26 = vector.load %arg2[%c0_29, %c0_30, %c0_31] : memref<1x20x256xbf16, #tpu.memory_space<vmem>>, vector<1x16x256xbf16>
    %27 = vector.shape_cast %26 : vector<1x16x256xbf16> to vector<16x256xbf16>
    %c1_32 = arith.constant 1 : index
    %c1_33 = arith.constant 1 : index
    %c0_34 = arith.constant 0 : index
    %c0_35 = arith.constant 0 : index
    %28 = vector.load %arg3[%c1_32, %c1_33, %c0_34, %c0_35] : memref<2x3x256x128xbf16, #tpu.memory_space<vmem>>, vector<1x1x256x128xbf16>
    %29 = vector.shape_cast %28 : vector<1x1x256x128xbf16> to vector<256x128xbf16>
    %cst_36 = arith.constant dense<0.000000e+00> : vector<16x128xf32>
    %30 = tpu.matmul %27, %29, %cst_36 {dimension_numbers = #tpu.dot_dimension_numbers<[1], [0], [0], [1], [0, 0, 1, 1], [], []>} : vector<16x256xbf16>, vector<256x128xbf16>, vector<16x128xf32> -> vector<16x128xf32>
    %31 = arith.addf %25, %30 : vector<16x128xf32>
    %c0_37 = arith.constant 0 : index
    %c4_38 = arith.constant 4 : index
    %c0_39 = arith.constant 0 : index
    %32 = vector.load %arg1[%c0_37, %c4_38, %c0_39] : memref<1x20x256xbf16, #tpu.memory_space<vmem>>, vector<1x16x256xbf16>
    %33 = vector.shape_cast %32 : vector<1x16x256xbf16> to vector<16x256xbf16>
    %c1_40 = arith.constant 1 : index
    %c2_41 = arith.constant 2 : index
    %c0_42 = arith.constant 0 : index
    %c0_43 = arith.constant 0 : index
    %34 = vector.load %arg3[%c1_40, %c2_41, %c0_42, %c0_43] : memref<2x3x256x128xbf16, #tpu.memory_space<vmem>>, vector<1x1x256x128xbf16>
    %35 = vector.shape_cast %34 : vector<1x1x256x128xbf16> to vector<256x128xbf16>
    %cst_44 = arith.constant dense<0.000000e+00> : vector<16x128xf32>
    %36 = tpu.matmul %33, %35, %cst_44 {dimension_numbers = #tpu.dot_dimension_numbers<[1], [0], [0], [1], [0, 0, 1, 1], [], []>} : vector<16x256xbf16>, vector<256x128xbf16>, vector<16x128xf32> -> vector<16x128xf32>
    %37 = arith.addf %31, %36 : vector<16x128xf32>
    %38 = arith.maximumf %18, %37 : vector<16x128xf32>
    %cst_45 = arith.constant 0.000000e+00 : f32
    %39 = vector.broadcast %cst_45 : f32 to vector<16x128xf32>
    %c0_46 = arith.constant 0 : index
    %c0_47 = arith.constant 0 : index
    %c0_48 = arith.constant 0 : index
    %40 = vector.load %arg2[%c0_46, %c0_47, %c0_48] : memref<1x20x256xbf16, #tpu.memory_space<vmem>>, vector<1x16x256xbf16>
    %41 = vector.shape_cast %40 : vector<1x16x256xbf16> to vector<16x256xbf16>
    %c0_49 = arith.constant 0 : index
    %c0_50 = arith.constant 0 : index
    %c0_51 = arith.constant 0 : index
    %c0_52 = arith.constant 0 : index
    %42 = vector.load %arg3[%c0_49, %c0_50, %c0_51, %c0_52] : memref<2x3x256x128xbf16, #tpu.memory_space<vmem>>, vector<1x1x256x128xbf16>
    %43 = vector.shape_cast %42 : vector<1x1x256x128xbf16> to vector<256x128xbf16>
    %cst_53 = arith.constant dense<0.000000e+00> : vector<16x128xf32>
    %44 = tpu.matmul %41, %43, %cst_53 {dimension_numbers = #tpu.dot_dimension_numbers<[1], [0], [0], [1], [0, 0, 1, 1], [], []>} : vector<16x256xbf16>, vector<256x128xbf16>, vector<16x128xf32> -> vector<16x128xf32>
    %45 = arith.addf %39, %44 : vector<16x128xf32>
    %c0_54 = arith.constant 0 : index
    %c4_55 = arith.constant 4 : index
    %c0_56 = arith.constant 0 : index
    %46 = vector.load %arg1[%c0_54, %c4_55, %c0_56] : memref<1x20x256xbf16, #tpu.memory_space<vmem>>, vector<1x16x256xbf16>
    %47 = vector.shape_cast %46 : vector<1x16x256xbf16> to vector<16x256xbf16>
    %c0_57 = arith.constant 0 : index
    %c1_58 = arith.constant 1 : index
    %c0_59 = arith.constant 0 : index
    %c0_60 = arith.constant 0 : index
    %48 = vector.load %arg3[%c0_57, %c1_58, %c0_59, %c0_60] : memref<2x3x256x128xbf16, #tpu.memory_space<vmem>>, vector<1x1x256x128xbf16>
    %49 = vector.shape_cast %48 : vector<1x1x256x128xbf16> to vector<256x128xbf16>
    %cst_61 = arith.constant dense<0.000000e+00> : vector<16x128xf32>
    %50 = tpu.matmul %47, %49, %cst_61 {dimension_numbers = #tpu.dot_dimension_numbers<[1], [0], [0], [1], [0, 0, 1, 1], [], []>} : vector<16x256xbf16>, vector<256x128xbf16>, vector<16x128xf32> -> vector<16x128xf32>
    %51 = arith.addf %45, %50 : vector<16x128xf32>
    %c0_62 = arith.constant 0 : index
    %c4_63 = arith.constant 4 : index
    %c0_64 = arith.constant 0 : index
    %52 = vector.load %arg2[%c0_62, %c4_63, %c0_64] : memref<1x20x256xbf16, #tpu.memory_space<vmem>>, vector<1x16x256xbf16>
    %53 = vector.shape_cast %52 : vector<1x16x256xbf16> to vector<16x256xbf16>
    %c0_65 = arith.constant 0 : index
    %c2_66 = arith.constant 2 : index
    %c0_67 = arith.constant 0 : index
    %c0_68 = arith.constant 0 : index
    %54 = vector.load %arg3[%c0_65, %c2_66, %c0_67, %c0_68] : memref<2x3x256x128xbf16, #tpu.memory_space<vmem>>, vector<1x1x256x128xbf16>
    %55 = vector.shape_cast %54 : vector<1x1x256x128xbf16> to vector<256x128xbf16>
    %cst_69 = arith.constant dense<0.000000e+00> : vector<16x128xf32>
    %56 = tpu.matmul %53, %55, %cst_69 {dimension_numbers = #tpu.dot_dimension_numbers<[1], [0], [0], [1], [0, 0, 1, 1], [], []>} : vector<16x256xbf16>, vector<256x128xbf16>, vector<16x128xf32> -> vector<16x128xf32>
    %57 = arith.addf %51, %56 : vector<16x128xf32>
    %58 = arith.maximumf %38, %57 : vector<16x128xf32>
    %cst_70 = arith.constant 0.000000e+00 : f32
    %59 = vector.broadcast %cst_70 : f32 to vector<16x128xf32>
    %c0_71 = arith.constant 0 : index
    %c0_72 = arith.constant 0 : index
    %c0_73 = arith.constant 0 : index
    %60 = vector.load %arg2[%c0_71, %c0_72, %c0_73] : memref<1x20x256xbf16, #tpu.memory_space<vmem>>, vector<1x16x256xbf16>
    %61 = vector.shape_cast %60 : vector<1x16x256xbf16> to vector<16x256xbf16>
    %c1_74 = arith.constant 1 : index
    %c0_75 = arith.constant 0 : index
    %c0_76 = arith.constant 0 : index
    %c0_77 = arith.constant 0 : index
    %62 = vector.load %arg3[%c1_74, %c0_75, %c0_76, %c0_77] : memref<2x3x256x128xbf16, #tpu.memory_space<vmem>>, vector<1x1x256x128xbf16>
    %63 = vector.shape_cast %62 : vector<1x1x256x128xbf16> to vector<256x128xbf16>
    %cst_78 = arith.constant dense<0.000000e+00> : vector<16x128xf32>
    %64 = tpu.matmul %61, %63, %cst_78 {dimension_numbers = #tpu.dot_dimension_numbers<[1], [0], [0], [1], [0, 0, 1, 1], [], []>} : vector<16x256xbf16>, vector<256x128xbf16>, vector<16x128xf32> -> vector<16x128xf32>
    %65 = arith.addf %59, %64 : vector<16x128xf32>
    %c0_79 = arith.constant 0 : index
    %c4_80 = arith.constant 4 : index
    %c0_81 = arith.constant 0 : index
    %66 = vector.load %arg1[%c0_79, %c4_80, %c0_81] : memref<1x20x256xbf16, #tpu.memory_space<vmem>>, vector<1x16x256xbf16>
    %67 = vector.shape_cast %66 : vector<1x16x256xbf16> to vector<16x256xbf16>
    %c1_82 = arith.constant 1 : index
    %c1_83 = arith.constant 1 : index
    %c0_84 = arith.constant 0 : index
    %c0_85 = arith.constant 0 : index
    %68 = vector.load %arg3[%c1_82, %c1_83, %c0_84, %c0_85] : memref<2x3x256x128xbf16, #tpu.memory_space<vmem>>, vector<1x1x256x128xbf16>
    %69 = vector.shape_cast %68 : vector<1x1x256x128xbf16> to vector<256x128xbf16>
    %cst_86 = arith.constant dense<0.000000e+00> : vector<16x128xf32>
    %70 = tpu.matmul %67, %69, %cst_86 {dimension_numbers = #tpu.dot_dimension_numbers<[1], [0], [0], [1], [0, 0, 1, 1], [], []>} : vector<16x256xbf16>, vector<256x128xbf16>, vector<16x128xf32> -> vector<16x128xf32>
    %71 = arith.addf %65, %70 : vector<16x128xf32>
    %c0_87 = arith.constant 0 : index
    %c4_88 = arith.constant 4 : index
    %c0_89 = arith.constant 0 : index
    %72 = vector.load %arg2[%c0_87, %c4_88, %c0_89] : memref<1x20x256xbf16, #tpu.memory_space<vmem>>, vector<1x16x256xbf16>
    %73 = vector.shape_cast %72 : vector<1x16x256xbf16> to vector<16x256xbf16>
    %c1_90 = arith.constant 1 : index
    %c2_91 = arith.constant 2 : index
    %c0_92 = arith.constant 0 : index
    %c0_93 = arith.constant 0 : index
    %74 = vector.load %arg3[%c1_90, %c2_91, %c0_92, %c0_93] : memref<2x3x256x128xbf16, #tpu.memory_space<vmem>>, vector<1x1x256x128xbf16>
    %75 = vector.shape_cast %74 : vector<1x1x256x128xbf16> to vector<256x128xbf16>
    %cst_94 = arith.constant dense<0.000000e+00> : vector<16x128xf32>
    %76 = tpu.matmul %73, %75, %cst_94 {dimension_numbers = #tpu.dot_dimension_numbers<[1], [0], [0], [1], [0, 0, 1, 1], [], []>} : vector<16x256xbf16>, vector<256x128xbf16>, vector<16x128xf32> -> vector<16x128xf32>
    %77 = arith.addf %71, %76 : vector<16x128xf32>
    %78 = arith.maximumf %58, %77 : vector<16x128xf32>
    %c0_95 = arith.constant 0 : index
    %c0_96 = arith.constant 0 : index
    %79 = vector.load %arg4[%c0_95, %c0_96] : memref<1x128xf32, #tpu.memory_space<vmem>>, vector<1x128xf32>
    %80 = vector.broadcast %79 : vector<1x128xf32> to vector<16x128xf32>
    %81 = arith.addf %78, %80 : vector<16x128xf32>
    %cst_97 = arith.constant 0.000000e+00 : f32
    %82 = vector.broadcast %cst_97 : f32 to vector<16x128xf32>
    %83 = arith.maximumf %81, %82 : vector<16x128xf32>
    %c0_98 = arith.constant 0 : index
    %c0_99 = arith.constant 0 : index
    %c0_100 = arith.constant 0 : index
    %84 = vector.load %arg5[%c0_98, %c0_99, %c0_100] : memref<1x16x128xf32, #tpu.memory_space<vmem>>, vector<1x16x128xf32>
    %85 = vector.shape_cast %84 : vector<1x16x128xf32> to vector<16x128xf32>
    %86 = vector.shape_cast %83 : vector<16x128xf32> to vector<1x16x128xf32>
    tpu.vector_store %arg5[%c0_98, %c0_99, %c0_100], %86 {strides = array<i32>} : memref<1x16x128xf32, #tpu.memory_space<vmem>>, vector<1x16x128xf32>,
    return
  }
  func.func @transform_0(%arg0: i32) -> (i32, i32, i32) {
    %c0_i32 = arith.constant 0 : i32
    %c0_i32_0 = arith.constant 0 : i32
    %c0_i32_1 = arith.constant 0 : i32
    return %arg0, %c0_i32, %c0_i32_0 : i32, i32, i32
  }
  func.func @transform_1(%arg0: i32) -> (i32, i32, i32) {
    %c0_i32 = arith.constant 0 : i32
    %c0_i32_0 = arith.constant 0 : i32
    %c0_i32_1 = arith.constant 0 : i32
    return %arg0, %c0_i32, %c0_i32_0 : i32, i32, i32
  }
  func.func @transform_2(%arg0: i32) -> (i32, i32, i32, i32) {
    %c0_i32 = arith.constant 0 : i32
    %c0_i32_0 = arith.constant 0 : i32
    %c0_i32_1 = arith.constant 0 : i32
    %c0_i32_2 = arith.constant 0 : i32
    %c0_i32_3 = arith.constant 0 : i32
    return %c0_i32, %c0_i32_0, %c0_i32_1, %c0_i32_2 : i32, i32, i32, i32
  }
  func.func @transform_3(%arg0: i32) -> (i32, i32) {
    %c0_i32 = arith.constant 0 : i32
    %c0_i32_0 = arith.constant 0 : i32
    %c0_i32_1 = arith.constant 0 : i32
    return %c0_i32, %c0_i32_0 : i32, i32
  }
  func.func @transform_4(%arg0: i32) -> (i32, i32, i32) {
    %c0_i32 = arith.constant 0 : i32
    %c0_i32_0 = arith.constant 0 : i32
    %c0_i32_1 = arith.constant 0 : i32
    return %arg0, %c0_i32, %c0_i32_0 : i32, i32, i32
  }
}

module attributes {stable_mosaic.version = 11 : i64} {
  func.func @_mlp_kernel(%arg0: i32, %arg1: i32, %arg2: memref<2x2048xf32, #tpu.memory_space<vmem>>, %arg3: memref<2048x256xbf16, #tpu.memory_space<vmem>>, %arg4: memref<1x256xf32, #tpu.memory_space<vmem>>, %arg5: memref<256x4xf32, #tpu.memory_space<vmem>>, %arg6: memref<1x2x4xf32, #tpu.memory_space<vmem>>, %arg7: memref<2x256xf32, #tpu.memory_space<vmem>>) attributes {dimension_semantics = [#tpu.dimension_semantics<parallel>, #tpu.dimension_semantics<arbitrary>], iteration_bounds = array<i64: 2, 1>, scalar_prefetch = 0 : i64, scratch_operands = 1 : i64, tpu.core_type = #tpu.core_type<tc>, window_params = [{transform_indices = @transform_0, window_bounds = array<i64: 2, 2048>}, {transform_indices = @transform_1, window_bounds = array<i64: 2048, 256>}, {transform_indices = @transform_2, window_bounds = array<i64: 1, 256>}, {transform_indices = @transform_3, window_bounds = array<i64: 256, 4>}, {transform_indices = @transform_4, window_bounds = array<i64: 1, 2, 4>}]} {
    %c0_i32 = arith.constant 0 : i32
    %0 = arith.cmpi eq, %arg1, %c0_i32 : i32
    %1 = arith.extui %0 : i1 to i32
    %c0_i32_0 = arith.constant 0 : i32
    %2 = arith.cmpi ne, %1, %c0_i32_0 : i32
    scf.if %2 {
      %cst_10 = arith.constant 0.000000e+00 : f32
      %13 = vector.broadcast %cst_10 : f32 to vector<2x256xf32>
      %c0_11 = arith.constant 0 : index
      %c0_12 = arith.constant 0 : index
      %14 = vector.load %arg7[%c0_11, %c0_12] : memref<2x256xf32, #tpu.memory_space<vmem>>, vector<2x256xf32>
      tpu.vector_store %arg7[%c0_11, %c0_12], %13 {strides = array<i32>} : memref<2x256xf32, #tpu.memory_space<vmem>>, vector<2x256xf32>,
    } else {
    }
    %c0 = arith.constant 0 : index
    %c0_1 = arith.constant 0 : index
    %3 = vector.load %arg7[%c0, %c0_1] : memref<2x256xf32, #tpu.memory_space<vmem>>, vector<2x256xf32>
    %c0_2 = arith.constant 0 : index
    %c0_3 = arith.constant 0 : index
    %4 = vector.load %arg2[%c0_2, %c0_3] : memref<2x2048xf32, #tpu.memory_space<vmem>>, vector<2x2048xf32>
    %5 = arith.truncf %4 : vector<2x2048xf32> to vector<2x2048xbf16>
    %c0_4 = arith.constant 0 : index
    %c0_5 = arith.constant 0 : index
    %6 = vector.load %arg3[%c0_4, %c0_5] : memref<2048x256xbf16, #tpu.memory_space<vmem>>, vector<2048x256xbf16>
    %cst = arith.constant dense<0.000000e+00> : vector<2x256xf32>
    %7 = tpu.matmul %5, %6, %cst {dimension_numbers = #tpu.dot_dimension_numbers<[1], [0], [0], [1], [0, 0, 1, 1], [], []>} : vector<2x2048xbf16>, vector<2048x256xbf16>, vector<2x256xf32> -> vector<2x256xf32>
    %8 = arith.addf %3, %7 : vector<2x256xf32>
    %c0_6 = arith.constant 0 : index
    %c0_7 = arith.constant 0 : index
    %9 = vector.load %arg7[%c0_6, %c0_7] : memref<2x256xf32, #tpu.memory_space<vmem>>, vector<2x256xf32>
    tpu.vector_store %arg7[%c0_6, %c0_7], %8 {strides = array<i32>} : memref<2x256xf32, #tpu.memory_space<vmem>>, vector<2x256xf32>,
    %c0_i32_8 = arith.constant 0 : i32
    %10 = arith.cmpi eq, %arg1, %c0_i32_8 : i32
    %11 = arith.extui %10 : i1 to i32
    %c0_i32_9 = arith.constant 0 : i32
    %12 = arith.cmpi ne, %11, %c0_i32_9 : i32
    scf.if %12 {
      %c0_10 = arith.constant 0 : index
      %c0_11 = arith.constant 0 : index
      %13 = vector.load %arg7[%c0_10, %c0_11] : memref<2x256xf32, #tpu.memory_space<vmem>>, vector<2x256xf32>
      %c0_12 = arith.constant 0 : index
      %c0_13 = arith.constant 0 : index
      %14 = vector.load %arg4[%c0_12, %c0_13] : memref<1x256xf32, #tpu.memory_space<vmem>>, vector<1x256xf32>
      %15 = vector.broadcast %14 : vector<1x256xf32> to vector<2x256xf32>
      %16 = arith.addf %13, %15 : vector<2x256xf32>
      %cst_14 = arith.constant 0.000000e+00 : f32
      %17 = vector.broadcast %cst_14 : f32 to vector<2x256xf32>
      %18 = arith.maximumf %16, %17 : vector<2x256xf32>
      %c0_15 = arith.constant 0 : index
      %c0_16 = arith.constant 0 : index
      %19 = vector.load %arg5[%c0_15, %c0_16] : memref<256x4xf32, #tpu.memory_space<vmem>>, vector<256x4xf32>
      %cst_17 = arith.constant dense<0.000000e+00> : vector<2x4xf32>
      %20 = tpu.matmul %18, %19, %cst_17 {dimension_numbers = #tpu.dot_dimension_numbers<[1], [0], [0], [1], [0, 0, 1, 1], [], []>} : vector<2x256xf32>, vector<256x4xf32>, vector<2x4xf32> -> vector<2x4xf32>
      %c0_18 = arith.constant 0 : index
      %c0_19 = arith.constant 0 : index
      %c0_20 = arith.constant 0 : index
      %21 = vector.load %arg6[%c0_18, %c0_19, %c0_20] : memref<1x2x4xf32, #tpu.memory_space<vmem>>, vector<1x2x4xf32>
      %22 = vector.shape_cast %21 : vector<1x2x4xf32> to vector<2x4xf32>
      %23 = vector.shape_cast %20 : vector<2x4xf32> to vector<1x2x4xf32>
      tpu.vector_store %arg6[%c0_18, %c0_19, %c0_20], %23 {strides = array<i32>} : memref<1x2x4xf32, #tpu.memory_space<vmem>>, vector<1x2x4xf32>,
    } else {
    }
    return
  }
  func.func @transform_0(%arg0: i32, %arg1: i32) -> (i32, i32) {
    %c0_i32 = arith.constant 0 : i32
    %c0_i32_0 = arith.constant 0 : i32
    return %c0_i32, %arg1 : i32, i32
  }
  func.func @transform_1(%arg0: i32, %arg1: i32) -> (i32, i32) {
    %c0_i32 = arith.constant 0 : i32
    return %arg1, %arg0 : i32, i32
  }
  func.func @transform_2(%arg0: i32, %arg1: i32) -> (i32, i32) {
    %c0_i32 = arith.constant 0 : i32
    %c0_i32_0 = arith.constant 0 : i32
    return %c0_i32, %arg0 : i32, i32
  }
  func.func @transform_3(%arg0: i32, %arg1: i32) -> (i32, i32) {
    %c0_i32 = arith.constant 0 : i32
    %c0_i32_0 = arith.constant 0 : i32
    return %arg0, %c0_i32 : i32, i32
  }
  func.func @transform_4(%arg0: i32, %arg1: i32) -> (i32, i32, i32) {
    %c0_i32 = arith.constant 0 : i32
    %c0_i32_0 = arith.constant 0 : i32
    %c0_i32_1 = arith.constant 0 : i32
    return %arg0, %c0_i32, %c0_i32_0 : i32, i32, i32
  }
}

</mosaic_0001>

<bundles_post_ra>
// kernel: obstacle_detector_forward.3
= control target key start
LH: loop header
LB: loop body
LE: loop exit
PB: predicated region body
PF: predicated region fallthrough
CT: control target
= control target key end

     0   :  { %s1091_s21 = smov 0   ;;  %s1093_s22 = smov 0   ;;  %s1175_s0 = inlined_call_operand.vmem [shape: bf16[2,64,27], index: 0, kind: input, shape index: {}]   ;;  %s1176_s1 = inlined_call_operand.vmem [shape: bf16[2,64,27], index: 1, kind: input, shape index: {}]   ;;  %s1177_s2 = inlined_call_operand.vmem [shape: bf16[2,64,27], index: 2, kind: input, shape index: {}]   ;;  %s1178_s3 = inlined_call_operand.vmem [shape: bf16[2,64,27], index: 3, kind: input, shape index: {}]   ;;  %s1179_s4 = inlined_call_operand.vmem [shape: bf16[27,64], index: 4, kind: input, shape index: {}]   ;;  %s1180_s5 = inlined_call_operand.vmem [shape: f32[1,64], index: 5, kind: input, shape index: {}]   ;;  %s1181_s6 = inlined_call_operand.vmem [shape: f32[2,64,64], index: 6, kind: output, shape index: {}]  }
   0x1   :  { %s1095_s23 = smov 0   ;;  %s1097_s24 = smov 0  }
   0x2   :  { %s1099_s25 = smov 0  }
   0x3 LB: > { %s25_s26 = sadd.s32 1, %s1045_s23  ;;  %s28_s27 = sadd.s32 1, %s1049_s24  ;;  %s1053_s25 = sphi %s1099_s25, %s16_s25   ;;  %s1049_s24 = sphi %s1097_s24, %s1185_s24   ;;  %s1045_s23 = sphi %s1095_s23, %s1184_s23   ;;  %s1041_s22 = sphi %s1093_s22, %s1183_s22   ;;  %s1037_s21 = sphi %s1091_s21, %s1182_s21  }
   0x4   : > { %p26_p0 = scmp.ge.s32.totalorder %s25_s26, 2  ;;  %p879_p1 = scmp.ge.s32.totalorder %s1053_s25, 1 }
   0x5   : > { %p284_p2 = scmp.lt.s32.totalorder %s1053_s25, 5 }
   0x6   : > { %s1187_s26 = smov (%p26_p0, %s25_s26), 0  ;;  %s1189_s27 = smov (!%p26_p0, %s28_s27), %s1049_s24 }
   0x7   : > { %p285_p3 = pnand %p879_p1, %p284_p2  ;;  %p30_p4 = scmp.ge.s32.totalorder %s1189_s27, 2 }
   0x8   : > { %v1005_v0 = vld [vmem:[%s1179_s4] sm:$0xff] (!%p285_p3)   ;;  %vm436_vm0 = vcmask (!%p285_p3), 1044480   ;;  %v1006_v1 = vld [vmem:[%s1179_s4 + $0x8] sm:$0x3f] (!%p285_p3)   ;;  %vm437_vm1 = vcmask (!%p285_p3), 1045504   ;;  %s880_s8 = sshll.u32 (!%p285_p3), %s1037_s21, 2 }
   0x9   : > { %s1191_s27 = smov (%p30_p4, %s1189_s27), 0  ;;  %288 = sbr.rel (%p285_p3) target bundleno = 256 (0x100), region = 44 }
   0xa   : > { %932 = vmatprep.subr.bf16.mxu0 (!%p285_p3), %v1005_v0  ;;  %940 = vmatprep.subr.bf16.mxu1 (!%p285_p3), %v1005_v0  ;;  %p350_p5 = scmp.lt.s32.totalorder (!%p285_p3), %s1041_s22, 1  ;;  %v1055_v2 = vmov (!%p285_p3), 65535   ;;  %p352_p6 = scmp.lt.s32.totalorder (!%p285_p3), %s880_s8, 7  ;;  %vm429_vm2 = vcmask (!%p285_p3), 220160   ;;  %v913_v32 = vld [vmem:[%s1180_s5] ss:$0 sm:$0xff] (!%p285_p3) }
   0xb   : > { %933 = vmatpush3.bf16.msra.mxu0 (!%p285_p3), %v1005_v0  ;;  %941 = vmatpush3.bf16.msra.mxu1 (!%p285_p3), %v1005_v0  ;;  %v438_v3 = vsel (!%p285_p3), %vm436_vm0, 4294967295, %v1055_v2  ;;  %vm726_vm3 = vcmask (!%p285_p3), 523264  }
   0xc   : > { %v439_v4 = vsel (!%p285_p3), %vm437_vm1, %v438_v3, 0 }
   0xd   : > { %v441_v5 = vand.u32 (!%p285_p3), %v1006_v1, %v439_v4 }
   0xf   : > { %934 = vmatprep.subr.bf16.mxu0 (!%p285_p3), %v441_v5  ;;  %942 = vmatprep.subr.bf16.mxu1 (!%p285_p3), %v441_v5 }
  0x10   : > { %s1193_s22 = smov (!%p350_p5, %s1041_s22), 1  ;;  %s1195_s8 = smov (!%p352_p6, %s880_s8), 7  ;;  %935 = vmatpush3.bf16.msra.mxu0 %v441_v5  ;;  %943 = vmatpush3.bf16.msra.mxu1 %v441_v5 }
  0x11   : > { %s881_s9 = sshll.u32 %s1193_s22, 3  ;;  %948 = vmatprep.subr.bf16.mxu0 %v1005_v0  ;;  %956 = vmatprep.subr.bf16.mxu1 %v1005_v0 }
  0x12   : > { %s1130_s10 = sadd.s32 %s881_s9, %s1195_s8 }
  0x13   : > { %s882_s11 = sshll.u32 %s1130_s10, 2  ;;  %s894_s7 = sshll.u32 %s1130_s10, 3 }
  0x14   : > { %s357_s14 = scalar_lea.vmem %s1175_s0, %s882_s11  ;;  %s367_s17 = scalar_lea.vmem %s1176_s1, %s882_s11 }
  0x15   : > { %v1007_v6 = vld [vmem:[%s357_s14] sm:$0xff]   ;;  %s377_s20 = scalar_lea.vmem %s1177_s2, %s882_s11  ;;  %v1009_v8 = vld [vmem:[%s357_s14 + $0x8] sm:$0xff]   ;;  %s387_s28 = scalar_lea.vmem %s1178_s3, %s882_s11 }
  0x16   : > { %v1008_v7 = vld [vmem:[%s367_s17] sm:$0xff]   ;;  %936 = vmatprep.mubr.msk.bf16.mxu0 %vm429_vm2, %v1007_v6  ;;  %v1010_v9 = vld [vmem:[%s367_s17 + $0x8] sm:$0xff]   ;;  %s397_s11 = scalar_lea.vmem %s1181_s6, %s894_s7 }
  0x17   : > { %944 = vmatprep.mubr.msk.bf16.mxu1 %vm429_vm2, %v1008_v7  ;;  %937 = vmatmul.mubr.msk.bf16.vlgmr.msra.gmra.mrb[0].mxu0 %vm429_vm2, %v1009_v8  ;;  %v1011_v10 = vld [vmem:[%s377_s20] sm:$0xff]   ;;  %v1013_v12 = vld [vmem:[%s377_s20 + $0x8] sm:$0xff]  }
  0x18   : > { %945 = vmatmul.mubr.msk.bf16.vlgmr.msra.gmra.mrb[0].mxu1 %vm429_vm2, %v1010_v9  ;;  %949 = vmatpush3.bf16.msra.mxu0 %v1005_v0  ;;  %v1012_v11 = vld [vmem:[%s387_s28] sm:$0xff]   ;;  %v1014_v13 = vld [vmem:[%s387_s28 + $0x8] sm:$0xff]  }
  0x19   : > { %957 = vmatpush3.bf16.msra.mxu1 %v1005_v0  ;;  %950 = vmatprep.subr.bf16.mxu0 %v441_v5 }
  0x1a   : > { %958 = vmatprep.subr.bf16.mxu1 %v441_v5  ;;  %952 = vmatprep.mubr.msk.bf16.mxu0 %vm429_vm2, %v1011_v10 }
  0x1b   : > { %960 = vmatprep.mubr.msk.bf16.mxu1 %vm429_vm2, %v1012_v11 }
  0x1c   : > { %951 = vmatpush3.bf16.msra.mxu0 %v441_v5 }
  0x1d   : > { %959 = vmatpush3.bf16.msra.mxu1 %v441_v5 }
  0x1f   : > { %953 = vmatmul.mubr.msk.bf16.vlgmr.msra.gmra.mrb[4].mxu0 %vm429_vm2, %v1013_v12 }
  0x20   : > { %961 = vmatmul.mubr.msk.bf16.vlgmr.msra.gmra.mrb[4].mxu1 %vm429_vm2, %v1014_v13 }
  0xea   : > { %v938_v14 = vpop.f32.mrb[0].mxu0 }
  0xeb   : > { %v946_v15 = vpop.f32.mrb[0].mxu1  ;;  %v477_v16 = vpop.f32.mrb[1].mxu0 }
  0xec   : > { %v563_v17 = vmax.f32 %v938_v14, %v946_v15  ;;  %v546_v18 = vpop.f32.mrb[1].mxu1  ;;  %v939_v19 = vpop.f32.mrb[2].mxu0 }
  0xed   : > { %v561_v20 = vmax.f32 %v477_v16, %v546_v18  ;;  %v947_v21 = vpop.f32.mrb[2].mxu1  ;;  %v480_v22 = vpop.f32.mrb[3].mxu0 }
  0xee   : > { %v564_v23 = vmax.f32 %v939_v19, %v947_v21  ;;  %v549_v24 = vpop.f32.mrb[3].mxu1 }
  0xef   : > { %v562_v25 = vmax.f32 %v480_v22, %v549_v24 }
  0xf2   : > { %v954_v26 = vpop.f32.mrb[4].mxu0 }
  0xf3   : > { %v962_v27 = vpop.f32.mrb[4].mxu1  ;;  %v619_v28 = vpop.f32.mrb[5].mxu0 }
  0xf4   : > { %v705_v29 = vmax.f32 %v954_v26, %v962_v27  ;;  %v688_v30 = vpop.f32.mrb[5].mxu1  ;;  %v955_v31 = vpop.f32.mrb[6].mxu0 }
  0xf5   : > { %v703_v33 = vmax.f32 %v619_v28, %v688_v30  ;;  %v963_v34 = vpop.f32.mrb[6].mxu1  ;;  %v622_v35 = vpop.f32.mrb[7].mxu0 }
  0xf6   : > { %v709_v36 = vmax.f32 %v563_v17, %v705_v29  ;;  %v706_v37 = vmax.f32 %v955_v31, %v963_v34  ;;  %v691_v38 = vpop.f32.mrb[7].mxu1 }
  0xf7   : > { %v707_v39 = vmax.f32 %v561_v20, %v703_v33  ;;  %v704_v40 = vmax.f32 %v622_v35, %v691_v38 }
  0xf8   : > { %v720_v41 = vadd.f32 %v913_v32, %v709_v36  ;;  %v710_v42 = vmax.f32 %v564_v23, %v706_v37 }
  0xf9   : > { %v718_v43 = vadd.f32 %v913_v32, %v707_v39  ;;  %v708_v44 = vmax.f32 %v562_v25, %v704_v40 }
  0xfa   : > { %v724_v45 = vmax.f32 %v720_v41, 0.0  ;;  %v721_v46 = vadd.f32 %v913_v32, %v710_v42 }
  0xfb   : > { %v722_v47 = vmax.f32 %v718_v43, 0.0  ;;  %v719_v48 = vadd.f32 %v913_v32, %v708_v44 }
  0xfc   : > { %729 = vst.msk [vmem:[%s397_s11 + $0x10] sm:$0xff] %vm726_vm3, %v724_v45  ;;  %v725_v49 = vmax.f32 %v721_v46, 0.0 }
  0xfd   : > { %727 = vst.msk [vmem:[%s397_s11] sm:$0xff] %vm726_vm3, %v722_v47  ;;  %v723_v50 = vmax.f32 %v719_v48, 0.0 }
  0xfe   : > { %730 = vst.msk [vmem:[%s397_s11 + $0x18] sm:$0xff] %vm726_vm3, %v725_v49 }
  0xff   : > { %728 = vst.msk [vmem:[%s397_s11 + $0x8] sm:$0xff] %vm726_vm3, %v723_v50 }
 0x100 PF: > { %s16_s25 = sadd.s32 1, %s1053_s25   ;;  %s1182_s21 = smov %s1045_s23 }
 0x101   : > { %p13_p7 = scmp.ge.s32.totalorder %s16_s25, 6   ;;  %s1183_s22 = smov %s1049_s24 }
 0x102   : > { %s1184_s23 = smov %s1187_s26  ;;  %s1185_s24 = smov %s1191_s27 }
 0x103   :  { %15 = sbr.rel (!%p13_p7) target bundleno = 3 (0x3), region = 83 }

// kernel: obstacle_detector_forward.4
= control target key start
LH: loop header
LB: loop body
LE: loop exit
PB: predicated region body
PF: predicated region fallthrough
CT: control target
= control target key end

     0   :  { %s2346_s15 = smov 0   ;;  %s3109_s0 = inlined_call_operand.vmem [shape: bf16[2,20,256], index: 0, kind: input, shape index: {}]   ;;  %s3110_s1 = inlined_call_operand.vmem [shape: bf16[2,20,256], index: 1, kind: input, shape index: {}]   ;;  %s3111_s2 = inlined_call_operand.vmem [shape: bf16[2,3,256,128], index: 2, kind: input, shape index: {}]   ;;  %s3112_s3 = inlined_call_operand.vmem [shape: f32[1,128], index: 3, kind: input, shape index: {}]   ;;  %s3113_s4 = inlined_call_operand.vmem [shape: f32[2,16,128], index: 4, kind: output, shape index: {}]  }
   0x1 LB: > { %s1651_s16 = sadd.s32 4294967295, %s2319_s15   ;;  %p1655_p0 = scmp.ge.s32.totalorder %s2319_s15, 1  ;;  %s2319_s15 = sphi %s2346_s15, %s14_s15  }
   0x2   : > { %p172_p1 = scmp.lt.s32.totalorder %s2319_s15, 3 }
   0x4   : > { %p173_p2 = pnand %p1655_p0, %p172_p1 }
   0x6   : > { %176 = sbr.rel (%p173_p2) target bundleno = 437 (0x1b5), region = 36 }
   0xd   : > { %v2357_v0 = vld [vmem:[%s3111_s2 + $0xc0] sm:$0xff]   ;;  %v2380_v4 = vld [vmem:[%s3111_s2 + $0xc8] sm:$0xff]   ;;  %v2404_v8 = vld [vmem:[%s3111_s2 + $0xd0] sm:$0xff]   ;;  %p203_p3 = scmp.lt.s32.totalorder %s1651_s16, 1  ;;  %vm631_vm0 = vcmask 1045504  }
   0xe   : > { %v2362_v1 = vld [vmem:[%s3111_s2 + $0x40] sm:$0xff]   ;;  %1932 = vmatprep.subr.bf16.mxu0 %v2357_v0  ;;  %v2386_v5 = vld [vmem:[%s3111_s2 + $0x48] sm:$0xff]   ;;  %v2410_v9 = vld [vmem:[%s3111_s2 + $0x50] sm:$0xff]  }
   0xf   : > { %v2368_v2 = vld [vmem:[%s3111_s2 + $0x80] sm:$0xff]   ;;  %1954 = vmatprep.subr.bf16.mxu1 %v2362_v1  ;;  %v2392_v6 = vld [vmem:[%s3111_s2 + $0x88] sm:$0xff]   ;;  %v2416_v10 = vld [vmem:[%s3111_s2 + $0x90] sm:$0xff]   ;;  %s3229_s16 = smov (!%p203_p3, %s1651_s16), 1 }
  0x10   : > { %v2374_v3 = vld [vmem:[%s3111_s2] sm:$0xff]   ;;  %1933 = vmatpush3.bf16.msra.mxu0 %v2368_v2  ;;  %v2398_v7 = vld [vmem:[%s3111_s2 + $0x8] sm:$0xff]   ;;  %v2422_v11 = vld [vmem:[%s3111_s2 + $0x10] sm:$0xff]   ;;  %s2196_s21 = smul.u32 24, %s3229_s16  ;;  %s1931_s7 = sshll.u32 %s3229_s16, 4 }
  0x11   : > { %1955 = vmatpush3.bf16.msra.mxu1 %v2374_v3  ;;  %1934 = vmatprep.subr.bf16.mxu0 %v2380_v4  ;;  %v2428_v12 = vld [vmem:[%s3111_s2 + $0xd8] sm:$0xff]   ;;  %v2452_v16 = vld [vmem:[%s3111_s2 + $0xe0] sm:$0xff]   ;;  %v2478_v20 = vld [vmem:[%s3111_s2 + $0xe8] sm:$0xff]   ;;  %s217_s11 = scalar_lea.vmem %s3113_s4, %s1931_s7 }
  0x12   : > { %1956 = vmatprep.subr.bf16.mxu1 %v2386_v5  ;;  %v2434_v13 = vld [vmem:[%s3111_s2 + $0x58] sm:$0xff]   ;;  %v2458_v17 = vld [vmem:[%s3111_s2 + $0x60] sm:$0xff]   ;;  %v2484_v21 = vld [vmem:[%s3111_s2 + $0x68] sm:$0xff]   ;;  %s2542_s6 = scalar_lea.vmem %s3110_s1, %s2196_s21  ;;  %s2547_s9 = scalar_lea.vmem %s3109_s0, %s2196_s21 }
  0x13   : > { %v2440_v14 = vld [vmem:[%s3111_s2 + $0x98] sm:$0xff]   ;;  %v2466_v18 = vld [vmem:[%s3111_s2 + $0xa0] sm:$0xff]   ;;  %v2494_v22 = vld [vmem:[%s3111_s2 + $0xa8] sm:$0xff]  }
  0x14   : > { %1935 = vmatpush3.bf16.msra.mxu0 %v2392_v6  ;;  %v2446_v15 = vld [vmem:[%s3111_s2 + $0x18] sm:$0xff]   ;;  %v2472_v19 = vld [vmem:[%s3111_s2 + $0x20] sm:$0xff]   ;;  %v2500_v23 = vld [vmem:[%s3111_s2 + $0x28] sm:$0xff]  }
  0x15   : > { %1957 = vmatpush3.bf16.msra.mxu1 %v2398_v7  ;;  %1936 = vmatprep.subr.bf16.mxu0 %v2404_v8  ;;  %v2506_v24 = vld [vmem:[%s3111_s2 + $0xf0] sm:$0xff]   ;;  %v2531_v28 = vld [vmem:[%s3111_s2 + $0xf8] sm:$0xff]   ;;  %v253_v32 = vld [vmem:[%s2542_s6] sm:$0xff] }
  0x16   : > { %1958 = vmatprep.subr.bf16.mxu1 %v2410_v9  ;;  %v2512_v25 = vld [vmem:[%s3111_s2 + $0x70] sm:$0xff]   ;;  %v2537_v29 = vld [vmem:[%s3111_s2 + $0x78] sm:$0xff]   ;;  %v2564_v33 = vld [vmem:[%s2542_s6 + $0x8] sm:$0xff] }
  0x17   : > { %v2519_v26 = vld [vmem:[%s3111_s2 + $0xb0] sm:$0xff]   ;;  %v2553_v30 = vld [vmem:[%s3111_s2 + $0xb8] sm:$0xff]   ;;  %v219_v34 = vld [vmem:[%s2547_s9] sm:$0xff]  ;;  %v2569_v35 = vcombine.high %v253_v32, %v2564_v33  ;;  %v2575_v37 = vcombine.low %v253_v32, %v2564_v33 }
  0x18   : > { %1937 = vmatpush3.bf16.msra.mxu0 %v2416_v10  ;;  %v2525_v27 = vld [vmem:[%s3111_s2 + $0x30] sm:$0xff]   ;;  %v2559_v31 = vld [vmem:[%s3111_s2 + $0x38] sm:$0xff]   ;;  %v2572_v36 = vld [vmem:[%s2547_s9 + $0x8] sm:$0xff] }
  0x19   : > { %1959 = vmatpush3.bf16.msra.mxu1 %v2422_v11  ;;  %1938 = vmatprep.subr.bf16.mxu0 %v2428_v12  ;;  %v2578_v38 = vcombine.low %v219_v34, %v2572_v36  ;;  %v2581_v39 = vcombine.high %v219_v34, %v2572_v36  ;;  %v2586_v40 = vld [vmem:[%s3111_s2 + $0x140] sm:$0xff]   ;;  %v2613_v44 = vld [vmem:[%s3111_s2 + $0x148] sm:$0xff]   ;;  %v2638_v48 = vld [vmem:[%s3111_s2 + $0x150] sm:$0xff]  }
  0x1a   : > { %1960 = vmatprep.subr.bf16.mxu1 %v2434_v13  ;;  %426 = vmatprep.mubr.bf16.mxu0 %v2569_v35  ;;  %v2592_v41 = vld [vmem:[%s3111_s2 + $0x240] sm:$0xff]   ;;  %v2619_v45 = vld [vmem:[%s3111_s2 + $0x248] sm:$0xff]   ;;  %v2644_v49 = vld [vmem:[%s3111_s2 + $0x250] sm:$0xff]  }
  0x1b   : > { %573 = vmatprep.mubr.bf16.mxu1 %v2581_v39  ;;  %v2599_v42 = vld [vmem:[%s3111_s2 + $0x100] sm:$0xff]   ;;  %v2626_v46 = vld [vmem:[%s3111_s2 + $0x108] sm:$0xff]   ;;  %v2650_v50 = vld [vmem:[%s3111_s2 + $0x110] sm:$0xff]  }
  0x1c   : > { %1939 = vmatpush3.bf16.msra.mxu0 %v2440_v14  ;;  %v2606_v43 = vld [vmem:[%s3111_s2 + $0x200] sm:$0xff]   ;;  %v2632_v47 = vld [vmem:[%s3111_s2 + $0x208] sm:$0xff]   ;;  %v2656_v51 = vld [vmem:[%s3111_s2 + $0x210] sm:$0xff]  }
  0x1d   : > { %1961 = vmatpush3.bf16.msra.mxu1 %v2446_v15  ;;  %1940 = vmatprep.subr.bf16.mxu0 %v2452_v16  ;;  %v2662_v52 = vld [vmem:[%s3111_s2 + $0x158] sm:$0xff]   ;;  %v2686_v56 = vld [vmem:[%s3111_s2 + $0x160] sm:$0xff]   ;;  %v2710_v60 = vld [vmem:[%s3111_s2 + $0x168] sm:$0xff]  }
  0x1e   : > { %1962 = vmatprep.subr.bf16.mxu1 %v2458_v17  ;;  %3152 = vst [vmem:[#allocation2_spill] sm:$0xff] %v2662_v52  ;;  %v2668_v53 = vld [vmem:[%s3111_s2 + $0x258] sm:$0xff]   ;;  %3155 = vst [vmem:[#allocation5_spill] sm:$0xff] %v2686_v56  ;;  %v2692_v57 = vld [vmem:[%s3111_s2 + $0x260] sm:$0xff]  }
  0x1f   : > { %v2674_v54 = vld [vmem:[%s3111_s2 + $0x118] sm:$0xff]   ;;  %3156 = vst [vmem:[#allocation6_spill] sm:$0xff] %v2692_v57  ;;  %v2698_v58 = vld [vmem:[%s3111_s2 + $0x120] sm:$0xff]   ;;  %3159 = vst [vmem:[#allocation9_spill] sm:$0xff] %v2710_v60 }
  0x20   : > { %1941 = vmatpush3.bf16.msra.mxu0 %v2466_v18  ;;  %3153 = vst [vmem:[#allocation3_spill] sm:$0xff] %v2674_v54  ;;  %v2680_v55 = vld [vmem:[%s3111_s2 + $0x218] sm:$0xff]   ;;  %3157 = vst [vmem:[#allocation7_spill] sm:$0xff] %v2698_v58  ;;  %v2704_v59 = vld [vmem:[%s3111_s2 + $0x220] sm:$0xff]  }
  0x21   : > { %1963 = vmatpush3.bf16.msra.mxu1 %v2472_v19  ;;  %1942 = vmatprep.subr.bf16.mxu0 %v2478_v20  ;;  %3154 = vst [vmem:[#allocation4_spill] sm:$0xff] %v2680_v55  ;;  %3158 = vst [vmem:[#allocation8_spill] sm:$0xff] %v2704_v59  ;;  %v2716_v61 = vld [vmem:[%s3111_s2 + $0x268] sm:$0xff]   ;;  %v2734_v32 = vld [vmem:[%s3111_s2 + $0x170] sm:$0xff]  }
  0x22   : > { %1964 = vmatprep.subr.bf16.mxu1 %v2484_v21  ;;  %3160 = vst [vmem:[#allocation10_spill] sm:$0xff] %v2716_v61  ;;  %v2722_v62 = vld [vmem:[%s3111_s2 + $0x128] sm:$0xff]   ;;  %3163 = vst [vmem:[#allocation13_spill] sm:$0xff] %v2734_v32  ;;  %v2740_v34 = vld [vmem:[%s3111_s2 + $0x270] sm:$0xff]  }
  0x23   : > { %3161 = vst [vmem:[#allocation11_spill] sm:$0xff] %v2722_v62  ;;  %v2728_v63 = vld [vmem:[%s3111_s2 + $0x228] sm:$0xff]   ;;  %3164 = vst [vmem:[#allocation14_spill] sm:$0xff] %v2740_v34 }
  0x24   : > { %1943 = vmatpush3.bf16.msra.mxu0 %v2494_v22  ;;  %3162 = vst [vmem:[#allocation12_spill] sm:$0xff] %v2728_v63 }
  0x25   : > { %1965 = vmatpush3.bf16.msra.mxu1 %v2500_v23  ;;  %1944 = vmatprep.subr.bf16.mxu0 %v2506_v24 }
  0x26   : > { %1966 = vmatprep.subr.bf16.mxu1 %v2512_v25 }
  0x28   : > { %1945 = vmatpush3.bf16.msra.mxu0 %v2519_v26 }
  0x29   : > { %1967 = vmatpush3.bf16.msra.mxu1 %v2525_v27  ;;  %1946 = vmatprep.subr.bf16.mxu0 %v2531_v28 }
  0x2a   : > { %1968 = vmatprep.subr.bf16.mxu1 %v2537_v29 }
  0x2c   : > { %1947 = vmatpush3.bf16.msra.mxu0 %v2553_v30 }
  0x2d   : > { %1969 = vmatpush3.bf16.msra.mxu1 %v2559_v31  ;;  %1976 = vmatprep.subr.bf16.mxu0 %v2586_v40 }
  0x2e   : > { %1998 = vmatprep.subr.bf16.mxu1 %v2592_v41 }
  0x2f   : > { %427 = vmatmul.mubr.bf16.vlgmr.msra.gmra.mrb[0].mxu0 %v2575_v37 }
  0x30   : > { %574 = vmatmul.mubr.bf16.vlgmr.msra.gmra.mrb[0].mxu1 %v2578_v38  ;;  %1977 = vmatpush3.bf16.msra.mxu0 %v2599_v42 }
  0x31   : > { %1999 = vmatpush3.bf16.msra.mxu1 %v2606_v43  ;;  %973 = vmatprep.mubr.bf16.mxu1 %v2569_v35 }
  0x32   : > { %1978 = vmatprep.subr.bf16.mxu0 %v2613_v44  ;;  %2000 = vmatprep.subr.bf16.mxu1 %v2619_v45 }
  0x34   : > { %1979 = vmatpush3.bf16.msra.mxu0 %v2626_v46 }
  0x35   : > { %2001 = vmatpush3.bf16.msra.mxu1 %v2632_v47  ;;  %1980 = vmatprep.subr.bf16.mxu0 %v2638_v48 }
  0x36   : > { %2002 = vmatprep.subr.bf16.mxu1 %v2644_v49 }
  0x38   : > { %1981 = vmatpush3.bf16.msra.mxu0 %v2650_v50 }
  0x39   : > { %2003 = vmatpush3.bf16.msra.mxu1 %v2656_v51  ;;  %1982 = vmatprep.subr.bf16.mxu0 %v2662_v52 }
  0x3a   : > { %2004 = vmatprep.subr.bf16.mxu1 %v2668_v53 }
  0x3c   : > { %1983 = vmatpush3.bf16.msra.mxu0 %v2674_v54 }
  0x3d   : > { %2005 = vmatpush3.bf16.msra.mxu1 %v2680_v55  ;;  %1984 = vmatprep.subr.bf16.mxu0 %v2686_v56 }
  0x3e   : > { %2006 = vmatprep.subr.bf16.mxu1 %v2692_v57  ;;  %v2786_v57 = vld [vmem:[%s3111_s2 + $0x1c0] sm:$0xff]  }
  0x40   : > { %1985 = vmatpush3.bf16.msra.mxu0 %v2698_v58 }
  0x41   : > { %2007 = vmatpush3.bf16.msra.mxu1 %v2704_v59  ;;  %1986 = vmatprep.subr.bf16.mxu0 %v2710_v60  ;;  %v2752_v60 = vld [vmem:[%s3111_s2 + $0x230] sm:$0xff]  }
  0x42   : > { %2008 = vmatprep.subr.bf16.mxu1 %v2716_v61  ;;  %3166 = vst [vmem:[#allocation16_spill] sm:$0xff] %v2752_v60  ;;  %v584_v61 = vld [vmem:[%s2547_s9 + $0x10] sm:$0x33] }
  0x43   : > { %v1763_v59 = vcombine.high %v584_v61, %v584_v61  ;;  %v1762_v56 = vcombine.low %v584_v61, %v584_v61 }
  0x44   : > { %1987 = vmatpush3.bf16.msra.mxu0 %v2722_v62  ;;  %v2746_v62 = vld [vmem:[%s3111_s2 + $0x130] sm:$0xff]  }
  0x45   : > { %2009 = vmatpush3.bf16.msra.mxu1 %v2728_v63  ;;  %1988 = vmatprep.subr.bf16.mxu0 %v2734_v32  ;;  %3165 = vst [vmem:[#allocation15_spill] sm:$0xff] %v2746_v62  ;;  %v2758_v63 = vld [vmem:[%s3111_s2 + $0x178] sm:$0xff]   ;;  %v636_v54 = vrot.slane %v1763_v59, 2  ;;  %v633_v52 = vrot.slane %v1762_v56, 2  ;;  %v2811_v56 = vld [vmem:[%s3111_s2 + $0x280] sm:$0xff]   ;;  %v2844_v59 = vld [vmem:[%s3111_s2 + $0x1d0] sm:$0xff]  }
  0x46   : > { %2010 = vmatprep.subr.bf16.mxu1 %v2740_v34  ;;  %3167 = vst [vmem:[#allocation17_spill] sm:$0xff] %v2758_v63  ;;  %v2764_v32 = vld [vmem:[%s3111_s2 + $0x278] sm:$0xff]   ;;  %3172 = vst [vmem:[#allocation22_spill] sm:$0xff] %v2844_v59 }
  0x47   : > { %3168 = vst [vmem:[#allocation18_spill] sm:$0xff] %v2764_v32  ;;  %v2770_v34 = vld [vmem:[%s3111_s2 + $0x138] sm:$0xff]  }
  0x48   : > { %1989 = vmatpush3.bf16.msra.mxu0 %v2746_v62  ;;  %3169 = vst [vmem:[#allocation19_spill] sm:$0xff] %v2770_v34  ;;  %v2776_v62 = vld [vmem:[%s3111_s2 + $0x238] sm:$0xff]  }
  0x49   : > { %2011 = vmatpush3.bf16.msra.mxu1 %v2752_v60  ;;  %1990 = vmatprep.subr.bf16.mxu0 %v2758_v63  ;;  %v582_v60 = vld [vmem:[%s2547_s9] sm:$0xcc] }
  0x4a   : > { %2012 = vmatprep.subr.bf16.mxu1 %v2764_v32  ;;  %v1761_v58 = vcombine.high %v582_v60, %v2572_v36  ;;  %v1760_v63 = vcombine.low %v582_v60, %v2572_v36  ;;  %v2792_v32 = vld [vmem:[%s3111_s2 + $0x2c0] sm:$0xff]  }
  0x4b   : > { %v2799_v36 = vld [vmem:[%s3111_s2 + $0x180] sm:$0xff]  }
  0x4c   : > { %1991 = vmatpush3.bf16.msra.mxu0 %v2770_v34  ;;  %v635_v34 = vrot.slane %v1761_v58, 2  ;;  %v632_v55 = vrot.slane %v1760_v63, 2  ;;  %v2817_v58 = vld [vmem:[%s3111_s2 + $0x1c8] sm:$0xff]   ;;  %v2856_v63 = vld [vmem:[%s3111_s2 + $0x190] sm:$0xff]  }
  0x4d   : > { %2013 = vmatpush3.bf16.msra.mxu1 %v2776_v62  ;;  %2020 = vmatprep.subr.bf16.mxu0 %v2786_v57  ;;  %3174 = vst [vmem:[#allocation24_spill] sm:$0xff] %v2856_v63 }
  0x4e   : > { %2042 = vmatprep.subr.bf16.mxu1 %v2792_v32  ;;  %v2802_v60 = vsel %vm631_vm0, %v635_v34, %v636_v54  ;;  %v2805_v61 = vsel %vm631_vm0, %v632_v55, %v633_v52  ;;  %v2825_v52 = vld [vmem:[%s3111_s2 + $0x2c8] sm:$0xff]   ;;  %v2863_v34 = vld [vmem:[%s3111_s2 + $0x290] sm:$0xff]  }
  0x4f   : > { %768 = vmatprep.mubr.bf16.mxu0 %v2802_v60  ;;  %v2831_v54 = vld [vmem:[%s3111_s2 + $0x188] sm:$0xff]   ;;  %3175 = vst [vmem:[#allocation25_spill] sm:$0xff] %v2863_v34 }
  0x50   : > { %974 = vmatmul.mubr.bf16.vlgmr.msra.gmra.mrb[4].mxu1 %v2575_v37  ;;  %769 = vmatmul.mubr.bf16.vlgmr.msra.gmra.mrb[4].mxu0 %v2805_v61  ;;  %3170 = vst [vmem:[#allocation20_spill] sm:$0xff] %v2831_v54  ;;  %v2839_v55 = vld [vmem:[%s3111_s2 + $0x288] sm:$0xff]  }
  0x51   : > { %1280 = vmatprep.mubr.bf16.mxu1 %v2802_v60  ;;  %2043 = vmatpush3.bf16.msra.mxu1 %v2811_v56  ;;  %3171 = vst [vmem:[#allocation21_spill] sm:$0xff] %v2839_v55 }
  0x52   : > { %2021 = vmatpush3.bf16.msra.mxu0 %v2799_v36  ;;  %1110 = vmatprep.mubr.bf16.mxu0 %v2581_v39  ;;  %v2850_v39 = vld [vmem:[%s3111_s2 + $0x2d0] sm:$0xff]  }
  0x53   : > { %2022 = vmatprep.subr.bf16.mxu0 %v2817_v58  ;;  %2044 = vmatprep.subr.bf16.mxu1 %v2825_v52  ;;  %3173 = vst [vmem:[#allocation23_spill] sm:$0xff] %v2850_v39 }
  0x55   : > { %2045 = vmatpush3.bf16.msra.mxu1 %v2839_v55  ;;  %v2868_v55 = vld [vmem:[%s3111_s2 + $0x1d8] sm:$0xff]  }
  0x56   : > { %2023 = vmatpush3.bf16.msra.mxu0 %v2831_v54  ;;  %2046 = vmatprep.subr.bf16.mxu1 %v2850_v39  ;;  %3176 = vst [vmem:[#allocation26_spill] sm:$0xff] %v2868_v55  ;;  %v2874_v54 = vld [vmem:[%s3111_s2 + $0x2d8] sm:$0xff]   ;;  %v2892_v39 = vld [vmem:[%s3111_s2 + $0x1e0] sm:$0xff]  }
  0x57   : > { %2024 = vmatprep.subr.bf16.mxu0 %v2844_v59  ;;  %3177 = vst [vmem:[#allocation27_spill] sm:$0xff] %v2874_v54  ;;  %v2880_v59 = vld [vmem:[%s3111_s2 + $0x198] sm:$0xff]   ;;  %3180 = vst [vmem:[#allocation30_spill] sm:$0xff] %v2892_v39 }
  0x58   : > { %3178 = vst [vmem:[#allocation28_spill] sm:$0xff] %v2880_v59 }
  0x59   : > { %2047 = vmatpush3.bf16.msra.mxu1 %v2863_v34  ;;  %v2887_v34 = vld [vmem:[%s3111_s2 + $0x298] sm:$0xff]  }
  0x5a   : > { %2025 = vmatpush3.bf16.msra.mxu0 %v2856_v63  ;;  %2048 = vmatprep.subr.bf16.mxu1 %v2874_v54  ;;  %3179 = vst [vmem:[#allocation29_spill] sm:$0xff] %v2887_v34  ;;  %v2898_v63 = vld [vmem:[%s3111_s2 + $0x2e0] sm:$0xff]   ;;  %v2916_v54 = vld [vmem:[%s3111_s2 + $0x1e8] sm:$0xff]  }
  0x5b   : > { %2026 = vmatprep.subr.bf16.mxu0 %v2868_v55  ;;  %3181 = vst [vmem:[#allocation31_spill] sm:$0xff] %v2898_v63  ;;  %v2904_v55 = vld [vmem:[%s3111_s2 + $0x1a0] sm:$0xff]   ;;  %3184 = vst [vmem:[#allocation34_spill] sm:$0xff] %v2916_v54 }
  0x5c   : > { %3182 = vst [vmem:[#allocation32_spill] sm:$0xff] %v2904_v55 }
  0x5d   : > { %2049 = vmatpush3.bf16.msra.mxu1 %v2887_v34  ;;  %v2911_v34 = vld [vmem:[%s3111_s2 + $0x2a0] sm:$0xff]  }
  0x5e   : > { %2027 = vmatpush3.bf16.msra.mxu0 %v2880_v59  ;;  %2050 = vmatprep.subr.bf16.mxu1 %v2898_v63  ;;  %3183 = vst [vmem:[#allocation33_spill] sm:$0xff] %v2911_v34  ;;  %v2922_v59 = vld [vmem:[%s3111_s2 + $0x2e8] sm:$0xff]   ;;  %v2940_v63 = vld [vmem:[%s3111_s2 + $0x1f0] sm:$0xff]  }
  0x5f   : > { %2028 = vmatprep.subr.bf16.mxu0 %v2892_v39  ;;  %3185 = vst [vmem:[#allocation35_spill] sm:$0xff] %v2922_v59  ;;  %v2928_v39 = vld [vmem:[%s3111_s2 + $0x1a8] sm:$0xff]   ;;  %3188 = vst [vmem:[#allocation38_spill] sm:$0xff] %v2940_v63 }
  0x60   : > { %3186 = vst [vmem:[#allocation36_spill] sm:$0xff] %v2928_v39 }
  0x61   : > { %2051 = vmatpush3.bf16.msra.mxu1 %v2911_v34  ;;  %v2935_v34 = vld [vmem:[%s3111_s2 + $0x2a8] sm:$0xff]  }
  0x62   : > { %2029 = vmatpush3.bf16.msra.mxu0 %v2904_v55  ;;  %2052 = vmatprep.subr.bf16.mxu1 %v2922_v59  ;;  %3187 = vst [vmem:[#allocation37_spill] sm:$0xff] %v2935_v34  ;;  %v2946_v55 = vld [vmem:[%s3111_s2 + $0x2f0] sm:$0xff]   ;;  %v2964_v59 = vld [vmem:[%s3111_s2 + $0x1f8] sm:$0xff]  }
  0x63   : > { %2030 = vmatprep.subr.bf16.mxu0 %v2916_v54  ;;  %v2952_v54 = vld [vmem:[%s3111_s2 + $0x1b0] sm:$0xff]  }
  0x65   : > { %2053 = vmatpush3.bf16.msra.mxu1 %v2935_v34  ;;  %v2959_v34 = vld [vmem:[%s3111_s2 + $0x2b0] sm:$0xff]  }
  0x66   : > { %2031 = vmatpush3.bf16.msra.mxu0 %v2928_v39  ;;  %2054 = vmatprep.subr.bf16.mxu1 %v2946_v55  ;;  %3189 = vst [vmem:[#allocation39_spill] sm:$0xff] %v2959_v34  ;;  %v2970_v39 = vld [vmem:[%s3111_s2 + $0x2f8] sm:$0xff]  }
  0x67   : > { %2032 = vmatprep.subr.bf16.mxu0 %v2940_v63  ;;  %v2976_v63 = vld [vmem:[%s3111_s2 + $0x1b8] sm:$0xff]  }
  0x69   : > { %2055 = vmatpush3.bf16.msra.mxu1 %v2959_v34  ;;  %v2983_v34 = vld [vmem:[%s3111_s2 + $0x2b8] sm:$0xff]  }
  0x6a   : > { %2033 = vmatpush3.bf16.msra.mxu0 %v2952_v54  ;;  %2056 = vmatprep.subr.bf16.mxu1 %v2970_v39 }
  0x6b   : > { %2034 = vmatprep.subr.bf16.mxu0 %v2964_v59 }
  0x6d   : > { %2057 = vmatpush3.bf16.msra.mxu1 %v2983_v34 }
  0x6e   : > { %2035 = vmatpush3.bf16.msra.mxu0 %v2976_v63  ;;  %2086 = vmatprep.subr.bf16.mxu1 %v2362_v1  ;;  %v1377_v1 = vld [vmem:[%s2542_s6 + $0x10] sm:$0x33] }
  0x6f   : > { %2064 = vmatprep.subr.bf16.mxu0 %v2357_v0  ;;  %v1375_v0 = vld [vmem:[%s2542_s6] sm:$0xcc] }
  0x70   : > { %1281 = vmatmul.mubr.bf16.vlgmr.msra.gmra.mrb[8].mxu1 %v2805_v61 }
  0x71   : > { %1111 = vmatmul.mubr.bf16.vlgmr.msra.gmra.mrb[8].mxu0 %v2578_v38  ;;  %2087 = vmatpush3.bf16.msra.mxu1 %v2374_v3  ;;  %v1927_v3 = vcombine.high %v1377_v1, %v1377_v1  ;;  %v3211_v38 = vld [vmem:[#allocation22_spill] sm:$0xff] }
  0x72   : > { %2065 = vmatpush3.bf16.msra.mxu0 %v2368_v2  ;;  %2088 = vmatprep.subr.bf16.mxu1 %v2386_v5  ;;  %v1925_v2 = vcombine.high %v1375_v0, %v2564_v33 }
  0x73   : > { %2066 = vmatprep.subr.bf16.mxu0 %v2380_v4  ;;  %1325 = vmatprep.mubr.bf16.mxu0 %v2802_v60  ;;  %v1395_v5 = vrot.slane %v1927_v3, 2 }
  0x74   : > { %1366 = vmatprep.mubr.bf16.mxu1 %v2569_v35  ;;  %v1394_v4 = vrot.slane %v1925_v2, 2 }
  0x75   : > { %2089 = vmatpush3.bf16.msra.mxu1 %v2398_v7  ;;  %v3190_v7 = vld [vmem:[#allocation2_spill] sm:$0xff] }
  0x76   : > { %2067 = vmatpush3.bf16.msra.mxu0 %v2392_v6  ;;  %2090 = vmatprep.subr.bf16.mxu1 %v2410_v9  ;;  %v1396_v6 = vsel %vm631_vm0, %v1394_v4, %v1395_v5  ;;  %v3192_v9 = vld [vmem:[#allocation3_spill] sm:$0xff] }
  0x77   : > { %2068 = vmatprep.subr.bf16.mxu0 %v2404_v8  ;;  %v3191_v8 = vld [vmem:[#allocation4_spill] sm:$0xff] }
  0x79   : > { %2091 = vmatpush3.bf16.msra.mxu1 %v2422_v11  ;;  %v3194_v11 = vld [vmem:[#allocation5_spill] sm:$0xff] }
  0x7a   : > { %2069 = vmatpush3.bf16.msra.mxu0 %v2416_v10  ;;  %2092 = vmatprep.subr.bf16.mxu1 %v2434_v13  ;;  %v3193_v10 = vld [vmem:[#allocation6_spill] sm:$0xff]  ;;  %v3196_v13 = vld [vmem:[#allocation7_spill] sm:$0xff] }
  0x7b   : > { %2070 = vmatprep.subr.bf16.mxu0 %v2428_v12  ;;  %v3195_v12 = vld [vmem:[#allocation8_spill] sm:$0xff] }
  0x7d   : > { %2093 = vmatpush3.bf16.msra.mxu1 %v2446_v15  ;;  %v3198_v15 = vld [vmem:[#allocation9_spill] sm:$0xff] }
  0x7e   : > { %2071 = vmatpush3.bf16.msra.mxu0 %v2440_v14  ;;  %2094 = vmatprep.subr.bf16.mxu1 %v2458_v17  ;;  %v3197_v14 = vld [vmem:[#allocation10_spill] sm:$0xff]  ;;  %v3200_v17 = vld [vmem:[#allocation11_spill] sm:$0xff] }
  0x7f   : > { %2072 = vmatprep.subr.bf16.mxu0 %v2452_v16  ;;  %v3199_v16 = vld [vmem:[#allocation12_spill] sm:$0xff] }
  0x81   : > { %2095 = vmatpush3.bf16.msra.mxu1 %v2472_v19  ;;  %v1924_v19 = vcombine.low %v1375_v0, %v2564_v33  ;;  %v3210_v33 = vld [vmem:[#allocation23_spill] sm:$0xff] }
  0x82   : > { %2073 = vmatpush3.bf16.msra.mxu0 %v2466_v18  ;;  %2096 = vmatprep.subr.bf16.mxu1 %v2484_v21  ;;  %v3201_v18 = vld [vmem:[#allocation14_spill] sm:$0xff]  ;;  %v3202_v21 = vld [vmem:[#allocation13_spill] sm:$0xff] }
  0x83   : > { %2074 = vmatprep.subr.bf16.mxu0 %v2478_v20  ;;  %v1926_v20 = vcombine.low %v1377_v1, %v1377_v1 }
  0x85   : > { %2097 = vmatpush3.bf16.msra.mxu1 %v2500_v23  ;;  %v3204_v23 = vld [vmem:[#allocation15_spill] sm:$0xff] }
  0x86   : > { %2075 = vmatpush3.bf16.msra.mxu0 %v2494_v22  ;;  %2098 = vmatprep.subr.bf16.mxu1 %v2512_v25  ;;  %v3203_v22 = vld [vmem:[#allocation16_spill] sm:$0xff]  ;;  %v1391_v25 = vrot.slane %v1924_v19, 2 }
  0x87   : > { %2076 = vmatprep.subr.bf16.mxu0 %v2506_v24  ;;  %v3205_v24 = vld [vmem:[#allocation18_spill] sm:$0xff] }
  0x89   : > { %2099 = vmatpush3.bf16.msra.mxu1 %v2525_v27  ;;  %v3206_v27 = vld [vmem:[#allocation17_spill] sm:$0xff] }
  0x8a   : > { %2077 = vmatpush3.bf16.msra.mxu0 %v2519_v26  ;;  %2100 = vmatprep.subr.bf16.mxu1 %v2537_v29  ;;  %v1392_v26 = vrot.slane %v1926_v20, 2 }
  0x8b   : > { %2078 = vmatprep.subr.bf16.mxu0 %v2531_v28  ;;  %v3207_v28 = vld [vmem:[#allocation19_spill] sm:$0xff] }
  0x8c   : > { %v1393_v29 = vsel %vm631_vm0, %v1391_v25, %v1392_v26 }
  0x8d   : > { %2101 = vmatpush3.bf16.msra.mxu1 %v2559_v31  ;;  %v3209_v31 = vld [vmem:[#allocation20_spill] sm:$0xff] }
  0x8e   : > { %2079 = vmatpush3.bf16.msra.mxu0 %v2553_v30  ;;  %2130 = vmatprep.subr.bf16.mxu1 %v2592_v41  ;;  %v3208_v30 = vld [vmem:[#allocation21_spill] sm:$0xff]  ;;  %v3213_v41 = vld [vmem:[#allocation24_spill] sm:$0xff] }
  0x8f   : > { %2108 = vmatprep.subr.bf16.mxu0 %v2586_v40  ;;  %v3212_v40 = vld [vmem:[#allocation25_spill] sm:$0xff] }
  0x90   : > { %1367 = vmatmul.mubr.bf16.vlgmr.msra.gmra.mrb[12].mxu1 %v2575_v37 }
  0x91   : > { %1326 = vmatmul.mubr.bf16.vlgmr.msra.gmra.mrb[12].mxu0 %v2805_v61  ;;  %2131 = vmatpush3.bf16.msra.mxu1 %v2606_v43  ;;  %v3215_v43 = vld [vmem:[#allocation26_spill] sm:$0xff] }
  0x92   : > { %2109 = vmatpush3.bf16.msra.mxu0 %v2599_v42  ;;  %2132 = vmatprep.subr.bf16.mxu1 %v2619_v45  ;;  %v3214_v42 = vld [vmem:[#allocation27_spill] sm:$0xff] }
  0x93   : > { %2110 = vmatprep.subr.bf16.mxu0 %v2613_v44  ;;  %1431 = vmatprep.mubr.bf16.mxu0 %v1396_v6  ;;  %v3216_v44 = vld [vmem:[#allocation29_spill] sm:$0xff]  ;;  %v3218_v45 = vld [vmem:[#allocation31_spill] sm:$0xff] }
  0x94   : > { %1476 = vmatprep.mubr.bf16.mxu1 %v2802_v60 }
  0x95   : > { %2133 = vmatpush3.bf16.msra.mxu1 %v2632_v47  ;;  %v3220_v47 = vld [vmem:[#allocation33_spill] sm:$0xff] }
  0x96   : > { %2111 = vmatpush3.bf16.msra.mxu0 %v2626_v46  ;;  %2134 = vmatprep.subr.bf16.mxu1 %v2644_v49  ;;  %v3219_v46 = vld [vmem:[#allocation30_spill] sm:$0xff]  ;;  %v3222_v49 = vld [vmem:[#allocation35_spill] sm:$0xff] }
  0x97   : > { %2112 = vmatprep.subr.bf16.mxu0 %v2638_v48  ;;  %v3221_v48 = vld [vmem:[#allocation32_spill] sm:$0xff] }
  0x99   : > { %2135 = vmatpush3.bf16.msra.mxu1 %v2656_v51  ;;  %v3224_v51 = vld [vmem:[#allocation37_spill] sm:$0xff] }
  0x9a   : > { %2113 = vmatpush3.bf16.msra.mxu0 %v2650_v50  ;;  %2136 = vmatprep.subr.bf16.mxu1 %v2668_v53  ;;  %v3223_v50 = vld [vmem:[#allocation34_spill] sm:$0xff]  ;;  %v3225_v53 = vld [vmem:[#allocation36_spill] sm:$0xff] }
  0x9b   : > { %2114 = vmatprep.subr.bf16.mxu0 %v3190_v7 }
  0x9d   : > { %2137 = vmatpush3.bf16.msra.mxu1 %v3191_v8 }
  0x9e   : > { %2115 = vmatpush3.bf16.msra.mxu0 %v3192_v9  ;;  %2138 = vmatprep.subr.bf16.mxu1 %v3193_v10 }
  0x9f   : > { %2116 = vmatprep.subr.bf16.mxu0 %v3194_v11 }
  0xa1   : > { %2139 = vmatpush3.bf16.msra.mxu1 %v3195_v12 }
  0xa2   : > { %2117 = vmatpush3.bf16.msra.mxu0 %v3196_v13  ;;  %2140 = vmatprep.subr.bf16.mxu1 %v3197_v14 }
  0xa3   : > { %2118 = vmatprep.subr.bf16.mxu0 %v3198_v15 }
  0xa5   : > { %2141 = vmatpush3.bf16.msra.mxu1 %v3199_v16 }
  0xa6   : > { %2119 = vmatpush3.bf16.msra.mxu0 %v3200_v17  ;;  %2142 = vmatprep.subr.bf16.mxu1 %v3201_v18 }
  0xa7   : > { %2120 = vmatprep.subr.bf16.mxu0 %v3202_v21 }
  0xa9   : > { %2143 = vmatpush3.bf16.msra.mxu1 %v3203_v22 }
  0xaa   : > { %2121 = vmatpush3.bf16.msra.mxu0 %v3204_v23  ;;  %2144 = vmatprep.subr.bf16.mxu1 %v3205_v24 }
  0xab   : > { %2122 = vmatprep.subr.bf16.mxu0 %v3206_v27 }
  0xad   : > { %2145 = vmatpush3.bf16.msra.mxu1 %v2776_v62  ;;  %v3227_v62 = vld [vmem:[#allocation39_spill] sm:$0xff] }
  0xae   : > { %2123 = vmatpush3.bf16.msra.mxu0 %v3207_v28  ;;  %2174 = vmatprep.subr.bf16.mxu1 %v2792_v32 }
  0xaf   : > { %2152 = vmatprep.subr.bf16.mxu0 %v2786_v57  ;;  %v3226_v57 = vld [vmem:[#allocation38_spill] sm:$0xff] }
  0xb0   : > { %1477 = vmatmul.mubr.bf16.vlgmr.msra.gmra.mrb[16].mxu1 %v2805_v61 }
  0xb1   : > { %1432 = vmatmul.mubr.bf16.vlgmr.msra.gmra.mrb[16].mxu0 %v1393_v29  ;;  %2175 = vmatpush3.bf16.msra.mxu1 %v2811_v56 }
  0xb2   : > { %2153 = vmatpush3.bf16.msra.mxu0 %v2799_v36  ;;  %2176 = vmatprep.subr.bf16.mxu1 %v2825_v52 }
  0xb3   : > { %2154 = vmatprep.subr.bf16.mxu0 %v2817_v58  ;;  %1517 = vmatprep.mubr.bf16.mxu0 %v2569_v35  ;;  %v3217_v35 = vld [vmem:[#allocation28_spill] sm:$0xff] }
  0xb4   : > { %1558 = vmatprep.mubr.bf16.mxu1 %v1396_v6 }
  0xb5   : > { %2177 = vmatpush3.bf16.msra.mxu1 %v3208_v30 }
  0xb6   : > { %2155 = vmatpush3.bf16.msra.mxu0 %v3209_v31  ;;  %2178 = vmatprep.subr.bf16.mxu1 %v3210_v33 }
  0xb7   : > { %2156 = vmatprep.subr.bf16.mxu0 %v3211_v38 }
  0xb9   : > { %2179 = vmatpush3.bf16.msra.mxu1 %v3212_v40 }
  0xba   : > { %2157 = vmatpush3.bf16.msra.mxu0 %v3213_v41  ;;  %2180 = vmatprep.subr.bf16.mxu1 %v3214_v42 }
  0xbb   : > { %2158 = vmatprep.subr.bf16.mxu0 %v3215_v43 }
  0xbd   : > { %2181 = vmatpush3.bf16.msra.mxu1 %v3216_v44 }
  0xbe   : > { %2159 = vmatpush3.bf16.msra.mxu0 %v3217_v35  ;;  %2182 = vmatprep.subr.bf16.mxu1 %v3218_v45 }
  0xbf   : > { %2160 = vmatprep.subr.bf16.mxu0 %v3219_v46 }
  0xc1   : > { %2183 = vmatpush3.bf16.msra.mxu1 %v3220_v47 }
  0xc2   : > { %2161 = vmatpush3.bf16.msra.mxu0 %v3221_v48  ;;  %2184 = vmatprep.subr.bf16.mxu1 %v3222_v49 }
  0xc3   : > { %2162 = vmatprep.subr.bf16.mxu0 %v3223_v50 }
  0xc5   : > { %2185 = vmatpush3.bf16.msra.mxu1 %v3224_v51 }
  0xc6   : > { %2163 = vmatpush3.bf16.msra.mxu0 %v3225_v53  ;;  %2186 = vmatprep.subr.bf16.mxu1 %v2946_v55 }
  0xc7   : > { %2164 = vmatprep.subr.bf16.mxu0 %v3226_v57 }
  0xc9   : > { %2187 = vmatpush3.bf16.msra.mxu1 %v3227_v62 }
  0xca   : > { %2165 = vmatpush3.bf16.msra.mxu0 %v2952_v54  ;;  %2188 = vmatprep.subr.bf16.mxu1 %v2970_v39 }
  0xcb   : > { %2166 = vmatprep.subr.bf16.mxu0 %v2964_v59 }
  0xcd   : > { %2189 = vmatpush3.bf16.msra.mxu1 %v2983_v34 }
  0xce   : > { %2167 = vmatpush3.bf16.msra.mxu0 %v2976_v63 }
  0xd0   : > { %1559 = vmatmul.mubr.bf16.vlgmr.msra.gmra.mrb[20].mxu1 %v1393_v29 }
  0xd1   : > { %1518 = vmatmul.mubr.bf16.vlgmr.msra.gmra.mrb[20].mxu0 %v2575_v37 }
 0x102   : > { %v1948_v32 = vpop.f32.mrb[0].mxu0 }
 0x103   : > { %v1970_v36 = vpop.f32.mrb[0].mxu1  ;;  %v1949_v60 = vpop.f32.mrb[1].mxu0 }
 0x104   : > { %v1950_v61 = vadd.f32 %v1949_v60, %v1948_v32  ;;  %v1971_v56 = vpop.f32.mrb[1].mxu1  ;;  %v1951_v58 = vpop.f32.mrb[2].mxu0 }
 0x105   : > { %v1972_v52 = vadd.f32 %v1971_v56, %v1970_v36  ;;  %v1973_v55 = vpop.f32.mrb[2].mxu1  ;;  %v1952_v54 = vpop.f32.mrb[3].mxu0 }
 0x106   : > { %v1953_v0 = vadd.f32 %v1952_v54, %v1951_v58  ;;  %v1974_v39 = vpop.f32.mrb[3].mxu1 }
 0x107   : > { %v576_v1 = vadd.f32 %v1972_v52, %v1950_v61  ;;  %v1975_v59 = vadd.f32 %v1974_v39, %v1973_v55 }
 0x109   : > { %v579_v2 = vadd.f32 %v1975_v59, %v1953_v0 }
 0x123   : > { %v2014_v34 = vpop.f32.mrb[4].mxu1  ;;  %v1992_v63 = vpop.f32.mrb[4].mxu0 }
 0x124   : > { %v2015_v3 = vpop.f32.mrb[5].mxu1  ;;  %v1993_v37 = vpop.f32.mrb[5].mxu0 }
 0x125   : > { %v2016_v4 = vadd.f32 %v2015_v3, %v2014_v34  ;;  %v2017_v5 = vpop.f32.mrb[6].mxu1  ;;  %v1994_v7 = vadd.f32 %v1993_v37, %v1992_v63  ;;  %v1995_v8 = vpop.f32.mrb[6].mxu0 }
 0x126   : > { %v2018_v6 = vpop.f32.mrb[7].mxu1  ;;  %v1996_v10 = vpop.f32.mrb[7].mxu0 }
 0x127   : > { %v2019_v9 = vadd.f32 %v2018_v6, %v2017_v5  ;;  %v777_v11 = vadd.f32 %v1994_v7, %v576_v1  ;;  %v1997_v12 = vadd.f32 %v1996_v10, %v1995_v8 }
 0x129   : > { %v778_v13 = vadd.f32 %v1997_v12, %v579_v2 }
 0x143   : > { %v2058_v14 = vpop.f32.mrb[8].mxu1 }
 0x144   : > { %v2036_v15 = vpop.f32.mrb[8].mxu0  ;;  %v2059_v16 = vpop.f32.mrb[9].mxu1 }
 0x145   : > { %v2037_v17 = vpop.f32.mrb[9].mxu0  ;;  %v2060_v18 = vadd.f32 %v2059_v16, %v2058_v14  ;;  %v2061_v19 = vpop.f32.mrb[10].mxu1 }
 0x146   : > { %v2038_v20 = vadd.f32 %v2037_v17, %v2036_v15  ;;  %v2039_v21 = vpop.f32.mrb[10].mxu0  ;;  %v2062_v22 = vpop.f32.mrb[11].mxu1 }
 0x147   : > { %v2040_v23 = vpop.f32.mrb[11].mxu0  ;;  %v2063_v24 = vadd.f32 %v2062_v22, %v2061_v19 }
 0x148   : > { %v1113_v25 = vadd.f32 %v2038_v20, %v2016_v4  ;;  %v2041_v26 = vadd.f32 %v2040_v23, %v2039_v21 }
 0x14a   : > { %v1289_v27 = vadd.f32 %v2060_v18, %v1113_v25  ;;  %v1116_v28 = vadd.f32 %v2041_v26, %v2019_v9 }
 0x14c   : > { %v1291_v29 = vmax.f32 %v777_v11, %v1289_v27  ;;  %v1290_v30 = vadd.f32 %v2063_v24, %v1116_v28 }
 0x14e   : > { %v1292_v31 = vmax.f32 %v778_v13, %v1290_v30  ;;  %v1928_v13 = vld [vmem:[%s3112_s3] ss:$0 sm:$0xff] }
 0x163   : > { %v2102_v33 = vpop.f32.mrb[12].mxu1 }
 0x164   : > { %v2080_v38 = vpop.f32.mrb[12].mxu0  ;;  %v2103_v40 = vpop.f32.mrb[13].mxu1 }
 0x165   : > { %v2081_v41 = vpop.f32.mrb[13].mxu0  ;;  %v2104_v42 = vadd.f32 %v2103_v40, %v2102_v33  ;;  %v2105_v43 = vpop.f32.mrb[14].mxu1 }
 0x166   : > { %v2082_v44 = vadd.f32 %v2081_v41, %v2080_v38  ;;  %v2083_v35 = vpop.f32.mrb[14].mxu0  ;;  %v2106_v45 = vpop.f32.mrb[15].mxu1 }
 0x167   : > { %v2084_v46 = vpop.f32.mrb[15].mxu0  ;;  %v2107_v47 = vadd.f32 %v2106_v45, %v2105_v43 }
 0x168   : > { %v1369_v48 = vadd.f32 %v2104_v42, %v2082_v44  ;;  %v2085_v49 = vadd.f32 %v2084_v46, %v2083_v35 }
 0x16a   : > { %v1372_v50 = vadd.f32 %v2107_v47, %v2085_v49 }
 0x183   : > { %v2146_v51 = vpop.f32.mrb[16].mxu1 }
 0x184   : > { %v2124_v53 = vpop.f32.mrb[16].mxu0  ;;  %v2147_v57 = vpop.f32.mrb[17].mxu1 }
 0x185   : > { %v2125_v62 = vpop.f32.mrb[17].mxu0  ;;  %v2148_v32 = vadd.f32 %v2147_v57, %v2146_v51  ;;  %v2149_v36 = vpop.f32.mrb[18].mxu1 }
 0x186   : > { %v2126_v60 = vadd.f32 %v2125_v62, %v2124_v53  ;;  %v2127_v61 = vpop.f32.mrb[18].mxu0  ;;  %v2150_v56 = vpop.f32.mrb[19].mxu1 }
 0x187   : > { %v2128_v58 = vpop.f32.mrb[19].mxu0  ;;  %v2151_v52 = vadd.f32 %v2150_v56, %v2149_v36 }
 0x188   : > { %v1440_v55 = vadd.f32 %v2126_v60, %v1369_v48  ;;  %v2129_v54 = vadd.f32 %v2128_v58, %v2127_v61 }
 0x18a   : > { %v1442_v0 = vmax.f32 %v1291_v29, %v1440_v55  ;;  %v1441_v39 = vadd.f32 %v2129_v54, %v1372_v50 }
 0x18c   : > { %v1443_v1 = vmax.f32 %v1292_v31, %v1441_v39 }
 0x1a3   : > { %v2190_v59 = vpop.f32.mrb[20].mxu1 }
 0x1a4   : > { %v2168_v2 = vpop.f32.mrb[20].mxu0  ;;  %v2191_v34 = vpop.f32.mrb[21].mxu1 }
 0x1a5   : > { %v2169_v3 = vpop.f32.mrb[21].mxu0  ;;  %v2192_v63 = vadd.f32 %v2191_v34, %v2190_v59  ;;  %v2193_v4 = vpop.f32.mrb[22].mxu1 }
 0x1a6   : > { %v2170_v5 = vadd.f32 %v2169_v3, %v2168_v2  ;;  %v2171_v37 = vpop.f32.mrb[22].mxu0  ;;  %v2194_v6 = vpop.f32.mrb[23].mxu1 }
 0x1a7   : > { %v2172_v7 = vpop.f32.mrb[23].mxu0  ;;  %v2195_v8 = vadd.f32 %v2194_v6, %v2193_v4 }
 0x1a8   : > { %v1520_v9 = vadd.f32 %v2170_v5, %v2148_v32  ;;  %v2173_v10 = vadd.f32 %v2172_v7, %v2171_v37 }
 0x1aa   : > { %v1567_v11 = vadd.f32 %v2192_v63, %v1520_v9  ;;  %v1523_v12 = vadd.f32 %v2173_v10, %v2151_v52 }
 0x1ac   : > { %v1569_v14 = vmax.f32 %v1442_v0, %v1567_v11  ;;  %v1568_v15 = vadd.f32 %v2195_v8, %v1523_v12 }
 0x1ae   : > { %v1578_v16 = vadd.f32 %v1928_v13, %v1569_v14  ;;  %v1570_v17 = vmax.f32 %v1443_v1, %v1568_v15 }
 0x1b0   : > { %v1580_v18 = vmax.f32 %v1578_v16, 0.0  ;;  %v1579_v19 = vadd.f32 %v1928_v13, %v1570_v17 }
 0x1b2   : > { %1582 = vst [vmem:[%s217_s11] sm:$0xff] %v1580_v18  ;;  %v1581_v20 = vmax.f32 %v1579_v19, 0.0 }
 0x1b4   : > { %1583 = vst [vmem:[%s217_s11 + $0x8] sm:$0xff] %v1581_v20 }
 0x1b5 PF: > { %s14_s15 = sadd.s32 1, %s2319_s15  }
 0x1b6   : > { %p11_p4 = scmp.ge.s32.totalorder %s14_s15, 4  }
 0x1b8   :  { %13 = sbr.rel (!%p11_p4) target bundleno = 1 (0x1), region = 74 }

// kernel: obstacle_detector_forward.5
= control target key start
LH: loop header
LB: loop body
LE: loop exit
PB: predicated region body
PF: predicated region fallthrough
CT: control target
= control target key end

     0   :  { %s4434_s15 = smov 0   ;;  %s4436_s16 = smov 0   ;;  %s5414_s0 = inlined_call_operand.vmem [shape: f32[2,2048], index: 0, kind: input, shape index: {}]   ;;  %s5415_s1 = inlined_call_operand.vmem [shape: bf16[2048,512], index: 1, kind: input, shape index: {}]   ;;  %s5416_s2 = inlined_call_operand.vmem [shape: f32[1,512], index: 2, kind: input, shape index: {}]   ;;  %s5417_s3 = inlined_call_operand.vmem [shape: f32[512,4], index: 3, kind: input, shape index: {}]   ;;  %s5418_s4 = inlined_call_operand.vmem [shape: f32[2,2,4], index: 4, kind: output, shape index: {}]  }
   0x1   :  { %s4438_s17 = smov 0   ;;  %s4440_s18 = smov 0  }
   0x2   :  { %s4442_s19 = smov 0  }
   0x3 LB: > { %s26_s20 = sadd.s32 1, %s4401_s18  ;;  %p68_p1 = scmp.ne.s32.totalorder %s4393_s16, %s4389_s15  ;;  %s4405_s19 = sphi %s4442_s19, %s14_s19   ;;  %s4401_s18 = sphi %s4440_s18, %s5422_s18   ;;  %s4397_s17 = sphi %s4438_s17, %s5421_s17   ;;  %s4393_s16 = sphi %s4436_s16, %s5420_s16   ;;  %s4389_s15 = sphi %s4434_s15, %s5419_s15  }
   0x4   : > { %p28_p0 = scmp.ge.s32.totalorder %s26_s20, 2  ;;  %p69_p2 = scmp.eq.s32.totalorder %s4405_s19, 0 }
   0x5   : > { %s61_s22 = sadd.s32 1, %s4393_s16  ;;  %p3575_p5 = scmp.ge.s32.totalorder %s4405_s19, 2 }
   0x6   : > { %s5424_s20 = smov (%p28_p0, %s26_s20), 0  ;;  %p70_p3 = por %p69_p2, %p68_p1 }
   0x7   : > { %s57_s21 = ssub.s32 %s4401_s18, %s5424_s20  ;;  %181 = sbr.rel (%p3575_p5) target bundleno = 146 (0x92), region = 20 }
   0x8   : > { %p59_p4 = scmp.eq.s32.totalorder %s57_s21, 0 }
   0xa   : > { %s4469_s23 = scalar_select %p59_p4, %s4393_s16, %s61_s22  }
   0xe   : > { %184 = sbr.rel (!%p70_p3) target bundleno = 146 (0x92), region = 24  ;;  %s186_s24 = sand.u32 (%p70_p3), 1, %s4393_s16  }
   0xf   : > { %s3843_s25 = sshll.u32 (%p70_p3), %s4401_s18, 3  ;;  %s3576_s26 = sshll.u32 (%p70_p3), %s186_s24, 11 }
  0x10   : > { %s4477_s29 = scalar_lea.vmem (%p70_p3), %s5415_s1, %s3843_s25  ;;  %s4482_s30 = scalar_lea.vmem (%p70_p3), [#allocation3], %s3576_s26 }
  0x11   : > { %v732_v0 = vld [vmem:[%s4477_s29] sm:$0xff] (%p70_p3)  ;;  %v734_v1 = vld [vmem:[%s4477_s29 + $0x10] sm:$0xff] (%p70_p3) }
  0x12   : > { %v736_v2 = vld [vmem:[%s4477_s29 + $0x20] sm:$0xff] (%p70_p3)  ;;  %733 = vst [vmem:[%s4482_s30] sm:$0xff] (%p70_p3), %v732_v0  ;;  %735 = vst [vmem:[%s4482_s30 + $0x8] sm:$0xff] (%p70_p3), %v734_v1  ;;  %v738_v3 = vld [vmem:[%s4477_s29 + $0x30] sm:$0xff] (%p70_p3) }
  0x13   : > { %737 = vst [vmem:[%s4482_s30 + $0x10] sm:$0xff] (%p70_p3), %v736_v2  ;;  %v740_v4 = vld [vmem:[%s4477_s29 + $0x40] sm:$0xff] (%p70_p3)  ;;  %v742_v5 = vld [vmem:[%s4477_s29 + $0x50] sm:$0xff] (%p70_p3)  ;;  %739 = vst [vmem:[%s4482_s30 + $0x18] sm:$0xff] (%p70_p3), %v738_v3 }
  0x14   : > { %741 = vst [vmem:[%s4482_s30 + $0x20] sm:$0xff] (%p70_p3), %v740_v4  ;;  %743 = vst [vmem:[%s4482_s30 + $0x28] sm:$0xff] (%p70_p3), %v742_v5  ;;  %v744_v6 = vld [vmem:[%s4477_s29 + $0x60] sm:$0xff] (%p70_p3)  ;;  %v746_v7 = vld [vmem:[%s4477_s29 + $0x70] sm:$0xff] (%p70_p3) }
  0x15   : > { %v748_v8 = vld [vmem:[%s4477_s29 + $0x80] sm:$0xff]  ;;  %745 = vst [vmem:[%s4482_s30 + $0x30] sm:$0xff] %v744_v6  ;;  %747 = vst [vmem:[%s4482_s30 + $0x38] sm:$0xff] %v746_v7  ;;  %v750_v9 = vld [vmem:[%s4477_s29 + $0x90] sm:$0xff] }
  0x16   : > { %749 = vst [vmem:[%s4482_s30 + $0x40] sm:$0xff] %v748_v8  ;;  %v752_v10 = vld [vmem:[%s4477_s29 + $0xa0] sm:$0xff]  ;;  %v754_v11 = vld [vmem:[%s4477_s29 + $0xb0] sm:$0xff]  ;;  %751 = vst [vmem:[%s4482_s30 + $0x48] sm:$0xff] %v750_v9 }
  0x17   : > { %753 = vst [vmem:[%s4482_s30 + $0x50] sm:$0xff] %v752_v10  ;;  %755 = vst [vmem:[%s4482_s30 + $0x58] sm:$0xff] %v754_v11  ;;  %v756_v12 = vld [vmem:[%s4477_s29 + $0xc0] sm:$0xff]  ;;  %v758_v13 = vld [vmem:[%s4477_s29 + $0xd0] sm:$0xff] }
  0x18   : > { %v760_v14 = vld [vmem:[%s4477_s29 + $0xe0] sm:$0xff]  ;;  %757 = vst [vmem:[%s4482_s30 + $0x60] sm:$0xff] %v756_v12  ;;  %759 = vst [vmem:[%s4482_s30 + $0x68] sm:$0xff] %v758_v13  ;;  %v762_v15 = vld [vmem:[%s4477_s29 + $0xf0] sm:$0xff] }
  0x19   : > { %761 = vst [vmem:[%s4482_s30 + $0x70] sm:$0xff] %v760_v14  ;;  %v764_v16 = vld [vmem:[%s4477_s29 + $0x100] sm:$0xff]  ;;  %v766_v17 = vld [vmem:[%s4477_s29 + $0x110] sm:$0xff]  ;;  %763 = vst [vmem:[%s4482_s30 + $0x78] sm:$0xff] %v762_v15 }
  0x1a   : > { %765 = vst [vmem:[%s4482_s30 + $0x80] sm:$0xff] %v764_v16  ;;  %767 = vst [vmem:[%s4482_s30 + $0x88] sm:$0xff] %v766_v17  ;;  %v768_v18 = vld [vmem:[%s4477_s29 + $0x120] sm:$0xff]  ;;  %v770_v19 = vld [vmem:[%s4477_s29 + $0x130] sm:$0xff] }
  0x1b   : > { %v772_v20 = vld [vmem:[%s4477_s29 + $0x140] sm:$0xff]  ;;  %769 = vst [vmem:[%s4482_s30 + $0x90] sm:$0xff] %v768_v18  ;;  %771 = vst [vmem:[%s4482_s30 + $0x98] sm:$0xff] %v770_v19  ;;  %v774_v21 = vld [vmem:[%s4477_s29 + $0x150] sm:$0xff] }
  0x1c   : > { %773 = vst [vmem:[%s4482_s30 + $0xa0] sm:$0xff] %v772_v20  ;;  %v776_v22 = vld [vmem:[%s4477_s29 + $0x160] sm:$0xff]  ;;  %v778_v23 = vld [vmem:[%s4477_s29 + $0x170] sm:$0xff]  ;;  %775 = vst [vmem:[%s4482_s30 + $0xa8] sm:$0xff] %v774_v21 }
  0x1d   : > { %777 = vst [vmem:[%s4482_s30 + $0xb0] sm:$0xff] %v776_v22  ;;  %779 = vst [vmem:[%s4482_s30 + $0xb8] sm:$0xff] %v778_v23  ;;  %v780_v24 = vld [vmem:[%s4477_s29 + $0x180] sm:$0xff]  ;;  %v782_v25 = vld [vmem:[%s4477_s29 + $0x190] sm:$0xff] }
  0x1e   : > { %v784_v26 = vld [vmem:[%s4477_s29 + $0x1a0] sm:$0xff]  ;;  %781 = vst [vmem:[%s4482_s30 + $0xc0] sm:$0xff] %v780_v24  ;;  %783 = vst [vmem:[%s4482_s30 + $0xc8] sm:$0xff] %v782_v25  ;;  %v786_v27 = vld [vmem:[%s4477_s29 + $0x1b0] sm:$0xff] }
  0x1f   : > { %785 = vst [vmem:[%s4482_s30 + $0xd0] sm:$0xff] %v784_v26  ;;  %v788_v28 = vld [vmem:[%s4477_s29 + $0x1c0] sm:$0xff]  ;;  %v790_v29 = vld [vmem:[%s4477_s29 + $0x1d0] sm:$0xff]  ;;  %787 = vst [vmem:[%s4482_s30 + $0xd8] sm:$0xff] %v786_v27 }
  0x20   : > { %789 = vst [vmem:[%s4482_s30 + $0xe0] sm:$0xff] %v788_v28  ;;  %791 = vst [vmem:[%s4482_s30 + $0xe8] sm:$0xff] %v790_v29  ;;  %v792_v30 = vld [vmem:[%s4477_s29 + $0x1e0] sm:$0xff]  ;;  %v794_v31 = vld [vmem:[%s4477_s29 + $0x1f0] sm:$0xff] }
  0x21   : > { %v796_v32 = vld [vmem:[%s4477_s29 + $0x200] sm:$0xff]  ;;  %793 = vst [vmem:[%s4482_s30 + $0xf0] sm:$0xff] %v792_v30  ;;  %795 = vst [vmem:[%s4482_s30 + $0xf8] sm:$0xff] %v794_v31  ;;  %v798_v33 = vld [vmem:[%s4477_s29 + $0x210] sm:$0xff] }
  0x22   : > { %797 = vst [vmem:[%s4482_s30 + $0x100] sm:$0xff] %v796_v32  ;;  %v800_v34 = vld [vmem:[%s4477_s29 + $0x220] sm:$0xff]  ;;  %v802_v35 = vld [vmem:[%s4477_s29 + $0x230] sm:$0xff]  ;;  %799 = vst [vmem:[%s4482_s30 + $0x108] sm:$0xff] %v798_v33 }
  0x23   : > { %801 = vst [vmem:[%s4482_s30 + $0x110] sm:$0xff] %v800_v34  ;;  %803 = vst [vmem:[%s4482_s30 + $0x118] sm:$0xff] %v802_v35  ;;  %v804_v36 = vld [vmem:[%s4477_s29 + $0x240] sm:$0xff]  ;;  %v806_v37 = vld [vmem:[%s4477_s29 + $0x250] sm:$0xff] }
  0x24   : > { %v808_v38 = vld [vmem:[%s4477_s29 + $0x260] sm:$0xff]  ;;  %805 = vst [vmem:[%s4482_s30 + $0x120] sm:$0xff] %v804_v36  ;;  %807 = vst [vmem:[%s4482_s30 + $0x128] sm:$0xff] %v806_v37  ;;  %v810_v39 = vld [vmem:[%s4477_s29 + $0x270] sm:$0xff] }
  0x25   : > { %809 = vst [vmem:[%s4482_s30 + $0x130] sm:$0xff] %v808_v38  ;;  %v812_v40 = vld [vmem:[%s4477_s29 + $0x280] sm:$0xff]  ;;  %v814_v41 = vld [vmem:[%s4477_s29 + $0x290] sm:$0xff]  ;;  %811 = vst [vmem:[%s4482_s30 + $0x138] sm:$0xff] %v810_v39 }
  0x26   : > { %813 = vst [vmem:[%s4482_s30 + $0x140] sm:$0xff] %v812_v40  ;;  %815 = vst [vmem:[%s4482_s30 + $0x148] sm:$0xff] %v814_v41  ;;  %v816_v42 = vld [vmem:[%s4477_s29 + $0x2a0] sm:$0xff]  ;;  %v818_v43 = vld [vmem:[%s4477_s29 + $0x2b0] sm:$0xff] }
  0x27   : > { %v820_v44 = vld [vmem:[%s4477_s29 + $0x2c0] sm:$0xff]  ;;  %817 = vst [vmem:[%s4482_s30 + $0x150] sm:$0xff] %v816_v42  ;;  %819 = vst [vmem:[%s4482_s30 + $0x158] sm:$0xff] %v818_v43  ;;  %v822_v45 = vld [vmem:[%s4477_s29 + $0x2d0] sm:$0xff] }
  0x28   : > { %821 = vst [vmem:[%s4482_s30 + $0x160] sm:$0xff] %v820_v44  ;;  %v824_v46 = vld [vmem:[%s4477_s29 + $0x2e0] sm:$0xff]  ;;  %v826_v47 = vld [vmem:[%s4477_s29 + $0x2f0] sm:$0xff]  ;;  %823 = vst [vmem:[%s4482_s30 + $0x168] sm:$0xff] %v822_v45 }
  0x29   : > { %825 = vst [vmem:[%s4482_s30 + $0x170] sm:$0xff] %v824_v46  ;;  %827 = vst [vmem:[%s4482_s30 + $0x178] sm:$0xff] %v826_v47  ;;  %v828_v48 = vld [vmem:[%s4477_s29 + $0x300] sm:$0xff]  ;;  %v830_v49 = vld [vmem:[%s4477_s29 + $0x310] sm:$0xff] }
  0x2a   : > { %v832_v50 = vld [vmem:[%s4477_s29 + $0x320] sm:$0xff]  ;;  %829 = vst [vmem:[%s4482_s30 + $0x180] sm:$0xff] %v828_v48  ;;  %831 = vst [vmem:[%s4482_s30 + $0x188] sm:$0xff] %v830_v49  ;;  %v834_v51 = vld [vmem:[%s4477_s29 + $0x330] sm:$0xff] }
  0x2b   : > { %833 = vst [vmem:[%s4482_s30 + $0x190] sm:$0xff] %v832_v50  ;;  %v836_v52 = vld [vmem:[%s4477_s29 + $0x340] sm:$0xff]  ;;  %v838_v53 = vld [vmem:[%s4477_s29 + $0x350] sm:$0xff]  ;;  %835 = vst [vmem:[%s4482_s30 + $0x198] sm:$0xff] %v834_v51 }
  0x2c   : > { %837 = vst [vmem:[%s4482_s30 + $0x1a0] sm:$0xff] %v836_v52  ;;  %839 = vst [vmem:[%s4482_s30 + $0x1a8] sm:$0xff] %v838_v53  ;;  %v840_v54 = vld [vmem:[%s4477_s29 + $0x360] sm:$0xff]  ;;  %v842_v55 = vld [vmem:[%s4477_s29 + $0x370] sm:$0xff] }
  0x2d   : > { %v844_v56 = vld [vmem:[%s4477_s29 + $0x380] sm:$0xff]  ;;  %841 = vst [vmem:[%s4482_s30 + $0x1b0] sm:$0xff] %v840_v54  ;;  %843 = vst [vmem:[%s4482_s30 + $0x1b8] sm:$0xff] %v842_v55  ;;  %v846_v57 = vld [vmem:[%s4477_s29 + $0x390] sm:$0xff] }
  0x2e   : > { %845 = vst [vmem:[%s4482_s30 + $0x1c0] sm:$0xff] %v844_v56  ;;  %v848_v58 = vld [vmem:[%s4477_s29 + $0x3a0] sm:$0xff]  ;;  %v850_v59 = vld [vmem:[%s4477_s29 + $0x3b0] sm:$0xff]  ;;  %847 = vst [vmem:[%s4482_s30 + $0x1c8] sm:$0xff] %v846_v57 }
  0x2f   : > { %849 = vst [vmem:[%s4482_s30 + $0x1d0] sm:$0xff] %v848_v58  ;;  %851 = vst [vmem:[%s4482_s30 + $0x1d8] sm:$0xff] %v850_v59  ;;  %v852_v60 = vld [vmem:[%s4477_s29 + $0x3c0] sm:$0xff]  ;;  %v854_v61 = vld [vmem:[%s4477_s29 + $0x3d0] sm:$0xff] }
  0x30   : > { %v856_v62 = vld [vmem:[%s4477_s29 + $0x3e0] sm:$0xff]  ;;  %853 = vst [vmem:[%s4482_s30 + $0x1e0] sm:$0xff] %v852_v60  ;;  %855 = vst [vmem:[%s4482_s30 + $0x1e8] sm:$0xff] %v854_v61  ;;  %v858_v63 = vld [vmem:[%s4477_s29 + $0x3f0] sm:$0xff] }
  0x31   : > { %857 = vst [vmem:[%s4482_s30 + $0x1f0] sm:$0xff] %v856_v62  ;;  %v860_v0 = vld [vmem:[%s4477_s29 + $0x400] sm:$0xff]  ;;  %v862_v1 = vld [vmem:[%s4477_s29 + $0x410] sm:$0xff]  ;;  %859 = vst [vmem:[%s4482_s30 + $0x1f8] sm:$0xff] %v858_v63 }
  0x32   : > { %861 = vst [vmem:[%s4482_s30 + $0x200] sm:$0xff] %v860_v0  ;;  %863 = vst [vmem:[%s4482_s30 + $0x208] sm:$0xff] %v862_v1  ;;  %v864_v2 = vld [vmem:[%s4477_s29 + $0x420] sm:$0xff]  ;;  %v866_v3 = vld [vmem:[%s4477_s29 + $0x430] sm:$0xff] }
  0x33   : > { %v868_v4 = vld [vmem:[%s4477_s29 + $0x440] sm:$0xff]  ;;  %865 = vst [vmem:[%s4482_s30 + $0x210] sm:$0xff] %v864_v2  ;;  %867 = vst [vmem:[%s4482_s30 + $0x218] sm:$0xff] %v866_v3  ;;  %v870_v5 = vld [vmem:[%s4477_s29 + $0x450] sm:$0xff] }
  0x34   : > { %869 = vst [vmem:[%s4482_s30 + $0x220] sm:$0xff] %v868_v4  ;;  %v872_v6 = vld [vmem:[%s4477_s29 + $0x460] sm:$0xff]  ;;  %v874_v7 = vld [vmem:[%s4477_s29 + $0x470] sm:$0xff]  ;;  %871 = vst [vmem:[%s4482_s30 + $0x228] sm:$0xff] %v870_v5 }
  0x35   : > { %873 = vst [vmem:[%s4482_s30 + $0x230] sm:$0xff] %v872_v6  ;;  %875 = vst [vmem:[%s4482_s30 + $0x238] sm:$0xff] %v874_v7  ;;  %v876_v8 = vld [vmem:[%s4477_s29 + $0x480] sm:$0xff]  ;;  %v878_v9 = vld [vmem:[%s4477_s29 + $0x490] sm:$0xff] }
  0x36   : > { %v880_v10 = vld [vmem:[%s4477_s29 + $0x4a0] sm:$0xff]  ;;  %877 = vst [vmem:[%s4482_s30 + $0x240] sm:$0xff] %v876_v8  ;;  %879 = vst [vmem:[%s4482_s30 + $0x248] sm:$0xff] %v878_v9  ;;  %v882_v11 = vld [vmem:[%s4477_s29 + $0x4b0] sm:$0xff] }
  0x37   : > { %881 = vst [vmem:[%s4482_s30 + $0x250] sm:$0xff] %v880_v10  ;;  %v884_v12 = vld [vmem:[%s4477_s29 + $0x4c0] sm:$0xff]  ;;  %v886_v13 = vld [vmem:[%s4477_s29 + $0x4d0] sm:$0xff]  ;;  %883 = vst [vmem:[%s4482_s30 + $0x258] sm:$0xff] %v882_v11 }
  0x38   : > { %885 = vst [vmem:[%s4482_s30 + $0x260] sm:$0xff] %v884_v12  ;;  %887 = vst [vmem:[%s4482_s30 + $0x268] sm:$0xff] %v886_v13  ;;  %v888_v14 = vld [vmem:[%s4477_s29 + $0x4e0] sm:$0xff]  ;;  %v890_v15 = vld [vmem:[%s4477_s29 + $0x4f0] sm:$0xff] }
  0x39   : > { %v892_v16 = vld [vmem:[%s4477_s29 + $0x500] sm:$0xff]  ;;  %889 = vst [vmem:[%s4482_s30 + $0x270] sm:$0xff] %v888_v14  ;;  %891 = vst [vmem:[%s4482_s30 + $0x278] sm:$0xff] %v890_v15  ;;  %v894_v17 = vld [vmem:[%s4477_s29 + $0x510] sm:$0xff] }
  0x3a   : > { %893 = vst [vmem:[%s4482_s30 + $0x280] sm:$0xff] %v892_v16  ;;  %v896_v18 = vld [vmem:[%s4477_s29 + $0x520] sm:$0xff]  ;;  %v898_v19 = vld [vmem:[%s4477_s29 + $0x530] sm:$0xff]  ;;  %895 = vst [vmem:[%s4482_s30 + $0x288] sm:$0xff] %v894_v17 }
  0x3b   : > { %897 = vst [vmem:[%s4482_s30 + $0x290] sm:$0xff] %v896_v18  ;;  %899 = vst [vmem:[%s4482_s30 + $0x298] sm:$0xff] %v898_v19  ;;  %v900_v20 = vld [vmem:[%s4477_s29 + $0x540] sm:$0xff]  ;;  %v902_v21 = vld [vmem:[%s4477_s29 + $0x550] sm:$0xff] }
  0x3c   : > { %v904_v22 = vld [vmem:[%s4477_s29 + $0x560] sm:$0xff]  ;;  %901 = vst [vmem:[%s4482_s30 + $0x2a0] sm:$0xff] %v900_v20  ;;  %903 = vst [vmem:[%s4482_s30 + $0x2a8] sm:$0xff] %v902_v21  ;;  %v906_v23 = vld [vmem:[%s4477_s29 + $0x570] sm:$0xff] }
  0x3d   : > { %905 = vst [vmem:[%s4482_s30 + $0x2b0] sm:$0xff] %v904_v22  ;;  %v908_v24 = vld [vmem:[%s4477_s29 + $0x580] sm:$0xff]  ;;  %v910_v25 = vld [vmem:[%s4477_s29 + $0x590] sm:$0xff]  ;;  %907 = vst [vmem:[%s4482_s30 + $0x2b8] sm:$0xff] %v906_v23 }
  0x3e   : > { %909 = vst [vmem:[%s4482_s30 + $0x2c0] sm:$0xff] %v908_v24  ;;  %911 = vst [vmem:[%s4482_s30 + $0x2c8] sm:$0xff] %v910_v25  ;;  %v912_v26 = vld [vmem:[%s4477_s29 + $0x5a0] sm:$0xff]  ;;  %v914_v27 = vld [vmem:[%s4477_s29 + $0x5b0] sm:$0xff] }
  0x3f   : > { %v916_v28 = vld [vmem:[%s4477_s29 + $0x5c0] sm:$0xff]  ;;  %913 = vst [vmem:[%s4482_s30 + $0x2d0] sm:$0xff] %v912_v26  ;;  %915 = vst [vmem:[%s4482_s30 + $0x2d8] sm:$0xff] %v914_v27  ;;  %v918_v29 = vld [vmem:[%s4477_s29 + $0x5d0] sm:$0xff] }
  0x40   : > { %917 = vst [vmem:[%s4482_s30 + $0x2e0] sm:$0xff] %v916_v28  ;;  %v920_v30 = vld [vmem:[%s4477_s29 + $0x5e0] sm:$0xff]  ;;  %v922_v31 = vld [vmem:[%s4477_s29 + $0x5f0] sm:$0xff]  ;;  %919 = vst [vmem:[%s4482_s30 + $0x2e8] sm:$0xff] %v918_v29 }
  0x41   : > { %921 = vst [vmem:[%s4482_s30 + $0x2f0] sm:$0xff] %v920_v30  ;;  %923 = vst [vmem:[%s4482_s30 + $0x2f8] sm:$0xff] %v922_v31  ;;  %v924_v32 = vld [vmem:[%s4477_s29 + $0x600] sm:$0xff]  ;;  %v926_v33 = vld [vmem:[%s4477_s29 + $0x610] sm:$0xff] }
  0x42   : > { %v928_v34 = vld [vmem:[%s4477_s29 + $0x620] sm:$0xff]  ;;  %925 = vst [vmem:[%s4482_s30 + $0x300] sm:$0xff] %v924_v32  ;;  %927 = vst [vmem:[%s4482_s30 + $0x308] sm:$0xff] %v926_v33  ;;  %v930_v35 = vld [vmem:[%s4477_s29 + $0x630] sm:$0xff] }
  0x43   : > { %929 = vst [vmem:[%s4482_s30 + $0x310] sm:$0xff] %v928_v34  ;;  %v932_v36 = vld [vmem:[%s4477_s29 + $0x640] sm:$0xff]  ;;  %v934_v37 = vld [vmem:[%s4477_s29 + $0x650] sm:$0xff]  ;;  %931 = vst [vmem:[%s4482_s30 + $0x318] sm:$0xff] %v930_v35 }
  0x44   : > { %933 = vst [vmem:[%s4482_s30 + $0x320] sm:$0xff] %v932_v36  ;;  %935 = vst [vmem:[%s4482_s30 + $0x328] sm:$0xff] %v934_v37  ;;  %v936_v38 = vld [vmem:[%s4477_s29 + $0x660] sm:$0xff]  ;;  %v938_v39 = vld [vmem:[%s4477_s29 + $0x670] sm:$0xff] }
  0x45   : > { %v940_v40 = vld [vmem:[%s4477_s29 + $0x680] sm:$0xff]  ;;  %937 = vst [vmem:[%s4482_s30 + $0x330] sm:$0xff] %v936_v38  ;;  %939 = vst [vmem:[%s4482_s30 + $0x338] sm:$0xff] %v938_v39  ;;  %v942_v41 = vld [vmem:[%s4477_s29 + $0x690] sm:$0xff] }
  0x46   : > { %941 = vst [vmem:[%s4482_s30 + $0x340] sm:$0xff] %v940_v40  ;;  %v944_v42 = vld [vmem:[%s4477_s29 + $0x6a0] sm:$0xff]  ;;  %v946_v43 = vld [vmem:[%s4477_s29 + $0x6b0] sm:$0xff]  ;;  %943 = vst [vmem:[%s4482_s30 + $0x348] sm:$0xff] %v942_v41 }
  0x47   : > { %945 = vst [vmem:[%s4482_s30 + $0x350] sm:$0xff] %v944_v42  ;;  %947 = vst [vmem:[%s4482_s30 + $0x358] sm:$0xff] %v946_v43  ;;  %v948_v44 = vld [vmem:[%s4477_s29 + $0x6c0] sm:$0xff]  ;;  %v950_v45 = vld [vmem:[%s4477_s29 + $0x6d0] sm:$0xff] }
  0x48   : > { %v952_v46 = vld [vmem:[%s4477_s29 + $0x6e0] sm:$0xff]  ;;  %949 = vst [vmem:[%s4482_s30 + $0x360] sm:$0xff] %v948_v44  ;;  %951 = vst [vmem:[%s4482_s30 + $0x368] sm:$0xff] %v950_v45  ;;  %v954_v47 = vld [vmem:[%s4477_s29 + $0x6f0] sm:$0xff] }
  0x49   : > { %953 = vst [vmem:[%s4482_s30 + $0x370] sm:$0xff] %v952_v46  ;;  %v956_v48 = vld [vmem:[%s4477_s29 + $0x700] sm:$0xff]  ;;  %v958_v49 = vld [vmem:[%s4477_s29 + $0x710] sm:$0xff]  ;;  %955 = vst [vmem:[%s4482_s30 + $0x378] sm:$0xff] %v954_v47 }
  0x4a   : > { %957 = vst [vmem:[%s4482_s30 + $0x380] sm:$0xff] %v956_v48  ;;  %959 = vst [vmem:[%s4482_s30 + $0x388] sm:$0xff] %v958_v49  ;;  %v960_v50 = vld [vmem:[%s4477_s29 + $0x720] sm:$0xff]  ;;  %v962_v51 = vld [vmem:[%s4477_s29 + $0x730] sm:$0xff] }
  0x4b   : > { %v964_v52 = vld [vmem:[%s4477_s29 + $0x740] sm:$0xff]  ;;  %961 = vst [vmem:[%s4482_s30 + $0x390] sm:$0xff] %v960_v50  ;;  %963 = vst [vmem:[%s4482_s30 + $0x398] sm:$0xff] %v962_v51  ;;  %v966_v53 = vld [vmem:[%s4477_s29 + $0x750] sm:$0xff] }
  0x4c   : > { %965 = vst [vmem:[%s4482_s30 + $0x3a0] sm:$0xff] %v964_v52  ;;  %v968_v54 = vld [vmem:[%s4477_s29 + $0x760] sm:$0xff]  ;;  %v970_v55 = vld [vmem:[%s4477_s29 + $0x770] sm:$0xff]  ;;  %967 = vst [vmem:[%s4482_s30 + $0x3a8] sm:$0xff] %v966_v53 }
  0x4d   : > { %969 = vst [vmem:[%s4482_s30 + $0x3b0] sm:$0xff] %v968_v54  ;;  %971 = vst [vmem:[%s4482_s30 + $0x3b8] sm:$0xff] %v970_v55  ;;  %v972_v56 = vld [vmem:[%s4477_s29 + $0x780] sm:$0xff]  ;;  %v974_v57 = vld [vmem:[%s4477_s29 + $0x790] sm:$0xff] }
  0x4e   : > { %v976_v58 = vld [vmem:[%s4477_s29 + $0x7a0] sm:$0xff]  ;;  %973 = vst [vmem:[%s4482_s30 + $0x3c0] sm:$0xff] %v972_v56  ;;  %975 = vst [vmem:[%s4482_s30 + $0x3c8] sm:$0xff] %v974_v57  ;;  %v978_v59 = vld [vmem:[%s4477_s29 + $0x7b0] sm:$0xff] }
  0x4f   : > { %977 = vst [vmem:[%s4482_s30 + $0x3d0] sm:$0xff] %v976_v58  ;;  %v980_v60 = vld [vmem:[%s4477_s29 + $0x7c0] sm:$0xff]  ;;  %v982_v61 = vld [vmem:[%s4477_s29 + $0x7d0] sm:$0xff]  ;;  %979 = vst [vmem:[%s4482_s30 + $0x3d8] sm:$0xff] %v978_v59 }
  0x50   : > { %981 = vst [vmem:[%s4482_s30 + $0x3e0] sm:$0xff] %v980_v60  ;;  %983 = vst [vmem:[%s4482_s30 + $0x3e8] sm:$0xff] %v982_v61  ;;  %v984_v62 = vld [vmem:[%s4477_s29 + $0x7e0] sm:$0xff]  ;;  %v986_v63 = vld [vmem:[%s4477_s29 + $0x7f0] sm:$0xff] }
  0x51   : > { %v988_v0 = vld [vmem:[%s4477_s29 + $0x800] sm:$0xff]  ;;  %985 = vst [vmem:[%s4482_s30 + $0x3f0] sm:$0xff] %v984_v62  ;;  %987 = vst [vmem:[%s4482_s30 + $0x3f8] sm:$0xff] %v986_v63  ;;  %v990_v1 = vld [vmem:[%s4477_s29 + $0x810] sm:$0xff] }
  0x52   : > { %989 = vst [vmem:[%s4482_s30 + $0x400] sm:$0xff] %v988_v0  ;;  %v992_v2 = vld [vmem:[%s4477_s29 + $0x820] sm:$0xff]  ;;  %v994_v3 = vld [vmem:[%s4477_s29 + $0x830] sm:$0xff]  ;;  %991 = vst [vmem:[%s4482_s30 + $0x408] sm:$0xff] %v990_v1 }
  0x53   : > { %993 = vst [vmem:[%s4482_s30 + $0x410] sm:$0xff] %v992_v2  ;;  %995 = vst [vmem:[%s4482_s30 + $0x418] sm:$0xff] %v994_v3  ;;  %v996_v4 = vld [vmem:[%s4477_s29 + $0x840] sm:$0xff]  ;;  %v998_v5 = vld [vmem:[%s4477_s29 + $0x850] sm:$0xff] }
  0x54   : > { %v1000_v6 = vld [vmem:[%s4477_s29 + $0x860] sm:$0xff]  ;;  %997 = vst [vmem:[%s4482_s30 + $0x420] sm:$0xff] %v996_v4  ;;  %999 = vst [vmem:[%s4482_s30 + $0x428] sm:$0xff] %v998_v5  ;;  %v1002_v7 = vld [vmem:[%s4477_s29 + $0x870] sm:$0xff] }
  0x55   : > { %1001 = vst [vmem:[%s4482_s30 + $0x430] sm:$0xff] %v1000_v6  ;;  %v1004_v8 = vld [vmem:[%s4477_s29 + $0x880] sm:$0xff]  ;;  %v1006_v9 = vld [vmem:[%s4477_s29 + $0x890] sm:$0xff]  ;;  %1003 = vst [vmem:[%s4482_s30 + $0x438] sm:$0xff] %v1002_v7 }
  0x56   : > { %1005 = vst [vmem:[%s4482_s30 + $0x440] sm:$0xff] %v1004_v8  ;;  %1007 = vst [vmem:[%s4482_s30 + $0x448] sm:$0xff] %v1006_v9  ;;  %v1008_v10 = vld [vmem:[%s4477_s29 + $0x8a0] sm:$0xff]  ;;  %v1010_v11 = vld [vmem:[%s4477_s29 + $0x8b0] sm:$0xff] }
  0x57   : > { %v1012_v12 = vld [vmem:[%s4477_s29 + $0x8c0] sm:$0xff]  ;;  %1009 = vst [vmem:[%s4482_s30 + $0x450] sm:$0xff] %v1008_v10  ;;  %1011 = vst [vmem:[%s4482_s30 + $0x458] sm:$0xff] %v1010_v11  ;;  %v1014_v13 = vld [vmem:[%s4477_s29 + $0x8d0] sm:$0xff] }
  0x58   : > { %1013 = vst [vmem:[%s4482_s30 + $0x460] sm:$0xff] %v1012_v12  ;;  %v1016_v14 = vld [vmem:[%s4477_s29 + $0x8e0] sm:$0xff]  ;;  %v1018_v15 = vld [vmem:[%s4477_s29 + $0x8f0] sm:$0xff]  ;;  %1015 = vst [vmem:[%s4482_s30 + $0x468] sm:$0xff] %v1014_v13 }
  0x59   : > { %1017 = vst [vmem:[%s4482_s30 + $0x470] sm:$0xff] %v1016_v14  ;;  %1019 = vst [vmem:[%s4482_s30 + $0x478] sm:$0xff] %v1018_v15  ;;  %v1020_v16 = vld [vmem:[%s4477_s29 + $0x900] sm:$0xff]  ;;  %v1022_v17 = vld [vmem:[%s4477_s29 + $0x910] sm:$0xff] }
  0x5a   : > { %v1024_v18 = vld [vmem:[%s4477_s29 + $0x920] sm:$0xff]  ;;  %1021 = vst [vmem:[%s4482_s30 + $0x480] sm:$0xff] %v1020_v16  ;;  %1023 = vst [vmem:[%s4482_s30 + $0x488] sm:$0xff] %v1022_v17  ;;  %v1026_v19 = vld [vmem:[%s4477_s29 + $0x930] sm:$0xff] }
  0x5b   : > { %1025 = vst [vmem:[%s4482_s30 + $0x490] sm:$0xff] %v1024_v18  ;;  %v1028_v20 = vld [vmem:[%s4477_s29 + $0x940] sm:$0xff]  ;;  %v1030_v21 = vld [vmem:[%s4477_s29 + $0x950] sm:$0xff]  ;;  %1027 = vst [vmem:[%s4482_s30 + $0x498] sm:$0xff] %v1026_v19 }
  0x5c   : > { %1029 = vst [vmem:[%s4482_s30 + $0x4a0] sm:$0xff] %v1028_v20  ;;  %1031 = vst [vmem:[%s4482_s30 + $0x4a8] sm:$0xff] %v1030_v21  ;;  %v1032_v22 = vld [vmem:[%s4477_s29 + $0x960] sm:$0xff]  ;;  %v1034_v23 = vld [vmem:[%s4477_s29 + $0x970] sm:$0xff] }
  0x5d   : > { %v1036_v24 = vld [vmem:[%s4477_s29 + $0x980] sm:$0xff]  ;;  %1033 = vst [vmem:[%s4482_s30 + $0x4b0] sm:$0xff] %v1032_v22  ;;  %1035 = vst [vmem:[%s4482_s30 + $0x4b8] sm:$0xff] %v1034_v23  ;;  %v1038_v25 = vld [vmem:[%s4477_s29 + $0x990] sm:$0xff] }
  0x5e   : > { %1037 = vst [vmem:[%s4482_s30 + $0x4c0] sm:$0xff] %v1036_v24  ;;  %v1040_v26 = vld [vmem:[%s4477_s29 + $0x9a0] sm:$0xff]  ;;  %v1042_v27 = vld [vmem:[%s4477_s29 + $0x9b0] sm:$0xff]  ;;  %1039 = vst [vmem:[%s4482_s30 + $0x4c8] sm:$0xff] %v1038_v25 }
  0x5f   : > { %1041 = vst [vmem:[%s4482_s30 + $0x4d0] sm:$0xff] %v1040_v26  ;;  %1043 = vst [vmem:[%s4482_s30 + $0x4d8] sm:$0xff] %v1042_v27  ;;  %v1044_v28 = vld [vmem:[%s4477_s29 + $0x9c0] sm:$0xff]  ;;  %v1046_v29 = vld [vmem:[%s4477_s29 + $0x9d0] sm:$0xff] }
  0x60   : > { %v1048_v30 = vld [vmem:[%s4477_s29 + $0x9e0] sm:$0xff]  ;;  %1045 = vst [vmem:[%s4482_s30 + $0x4e0] sm:$0xff] %v1044_v28  ;;  %1047 = vst [vmem:[%s4482_s30 + $0x4e8] sm:$0xff] %v1046_v29  ;;  %v1050_v31 = vld [vmem:[%s4477_s29 + $0x9f0] sm:$0xff] }
  0x61   : > { %1049 = vst [vmem:[%s4482_s30 + $0x4f0] sm:$0xff] %v1048_v30  ;;  %v1052_v32 = vld [vmem:[%s4477_s29 + $0xa00] sm:$0xff]  ;;  %v1054_v33 = vld [vmem:[%s4477_s29 + $0xa10] sm:$0xff]  ;;  %1051 = vst [vmem:[%s4482_s30 + $0x4f8] sm:$0xff] %v1050_v31 }
  0x62   : > { %1053 = vst [vmem:[%s4482_s30 + $0x500] sm:$0xff] %v1052_v32  ;;  %1055 = vst [vmem:[%s4482_s30 + $0x508] sm:$0xff] %v1054_v33  ;;  %v1056_v34 = vld [vmem:[%s4477_s29 + $0xa20] sm:$0xff]  ;;  %v1058_v35 = vld [vmem:[%s4477_s29 + $0xa30] sm:$0xff] }
  0x63   : > { %v1060_v36 = vld [vmem:[%s4477_s29 + $0xa40] sm:$0xff]  ;;  %1057 = vst [vmem:[%s4482_s30 + $0x510] sm:$0xff] %v1056_v34  ;;  %1059 = vst [vmem:[%s4482_s30 + $0x518] sm:$0xff] %v1058_v35  ;;  %v1062_v37 = vld [vmem:[%s4477_s29 + $0xa50] sm:$0xff] }
  0x64   : > { %1061 = vst [vmem:[%s4482_s30 + $0x520] sm:$0xff] %v1060_v36  ;;  %v1064_v38 = vld [vmem:[%s4477_s29 + $0xa60] sm:$0xff]  ;;  %v1066_v39 = vld [vmem:[%s4477_s29 + $0xa70] sm:$0xff]  ;;  %1063 = vst [vmem:[%s4482_s30 + $0x528] sm:$0xff] %v1062_v37 }
  0x65   : > { %1065 = vst [vmem:[%s4482_s30 + $0x530] sm:$0xff] %v1064_v38  ;;  %1067 = vst [vmem:[%s4482_s30 + $0x538] sm:$0xff] %v1066_v39  ;;  %v1068_v40 = vld [vmem:[%s4477_s29 + $0xa80] sm:$0xff]  ;;  %v1070_v41 = vld [vmem:[%s4477_s29 + $0xa90] sm:$0xff] }
  0x66   : > { %v1072_v42 = vld [vmem:[%s4477_s29 + $0xaa0] sm:$0xff]  ;;  %1069 = vst [vmem:[%s4482_s30 + $0x540] sm:$0xff] %v1068_v40  ;;  %1071 = vst [vmem:[%s4482_s30 + $0x548] sm:$0xff] %v1070_v41  ;;  %v1074_v43 = vld [vmem:[%s4477_s29 + $0xab0] sm:$0xff] }
  0x67   : > { %1073 = vst [vmem:[%s4482_s30 + $0x550] sm:$0xff] %v1072_v42  ;;  %v1076_v44 = vld [vmem:[%s4477_s29 + $0xac0] sm:$0xff]  ;;  %v1078_v45 = vld [vmem:[%s4477_s29 + $0xad0] sm:$0xff]  ;;  %1075 = vst [vmem:[%s4482_s30 + $0x558] sm:$0xff] %v1074_v43 }
  0x68   : > { %1077 = vst [vmem:[%s4482_s30 + $0x560] sm:$0xff] %v1076_v44  ;;  %1079 = vst [vmem:[%s4482_s30 + $0x568] sm:$0xff] %v1078_v45  ;;  %v1080_v46 = vld [vmem:[%s4477_s29 + $0xae0] sm:$0xff]  ;;  %v1082_v47 = vld [vmem:[%s4477_s29 + $0xaf0] sm:$0xff] }
  0x69   : > { %v1084_v48 = vld [vmem:[%s4477_s29 + $0xb00] sm:$0xff]  ;;  %1081 = vst [vmem:[%s4482_s30 + $0x570] sm:$0xff] %v1080_v46  ;;  %1083 = vst [vmem:[%s4482_s30 + $0x578] sm:$0xff] %v1082_v47  ;;  %v1086_v49 = vld [vmem:[%s4477_s29 + $0xb10] sm:$0xff] }
  0x6a   : > { %1085 = vst [vmem:[%s4482_s30 + $0x580] sm:$0xff] %v1084_v48  ;;  %v1088_v50 = vld [vmem:[%s4477_s29 + $0xb20] sm:$0xff]  ;;  %v1090_v51 = vld [vmem:[%s4477_s29 + $0xb30] sm:$0xff]  ;;  %1087 = vst [vmem:[%s4482_s30 + $0x588] sm:$0xff] %v1086_v49 }
  0x6b   : > { %1089 = vst [vmem:[%s4482_s30 + $0x590] sm:$0xff] %v1088_v50  ;;  %1091 = vst [vmem:[%s4482_s30 + $0x598] sm:$0xff] %v1090_v51  ;;  %v1092_v52 = vld [vmem:[%s4477_s29 + $0xb40] sm:$0xff]  ;;  %v1094_v53 = vld [vmem:[%s4477_s29 + $0xb50] sm:$0xff] }
  0x6c   : > { %v1096_v54 = vld [vmem:[%s4477_s29 + $0xb60] sm:$0xff]  ;;  %1093 = vst [vmem:[%s4482_s30 + $0x5a0] sm:$0xff] %v1092_v52  ;;  %1095 = vst [vmem:[%s4482_s30 + $0x5a8] sm:$0xff] %v1094_v53  ;;  %v1098_v55 = vld [vmem:[%s4477_s29 + $0xb70] sm:$0xff] }
  0x6d   : > { %1097 = vst [vmem:[%s4482_s30 + $0x5b0] sm:$0xff] %v1096_v54  ;;  %v1100_v56 = vld [vmem:[%s4477_s29 + $0xb80] sm:$0xff]  ;;  %v1102_v57 = vld [vmem:[%s4477_s29 + $0xb90] sm:$0xff]  ;;  %1099 = vst [vmem:[%s4482_s30 + $0x5b8] sm:$0xff] %v1098_v55 }
  0x6e   : > { %1101 = vst [vmem:[%s4482_s30 + $0x5c0] sm:$0xff] %v1100_v56  ;;  %1103 = vst [vmem:[%s4482_s30 + $0x5c8] sm:$0xff] %v1102_v57  ;;  %v1104_v58 = vld [vmem:[%s4477_s29 + $0xba0] sm:$0xff]  ;;  %v1106_v59 = vld [vmem:[%s4477_s29 + $0xbb0] sm:$0xff] }
  0x6f   : > { %v1108_v60 = vld [vmem:[%s4477_s29 + $0xbc0] sm:$0xff]  ;;  %1105 = vst [vmem:[%s4482_s30 + $0x5d0] sm:$0xff] %v1104_v58  ;;  %1107 = vst [vmem:[%s4482_s30 + $0x5d8] sm:$0xff] %v1106_v59  ;;  %v1110_v61 = vld [vmem:[%s4477_s29 + $0xbd0] sm:$0xff] }
  0x70   : > { %1109 = vst [vmem:[%s4482_s30 + $0x5e0] sm:$0xff] %v1108_v60  ;;  %v1112_v62 = vld [vmem:[%s4477_s29 + $0xbe0] sm:$0xff]  ;;  %v1114_v63 = vld [vmem:[%s4477_s29 + $0xbf0] sm:$0xff]  ;;  %1111 = vst [vmem:[%s4482_s30 + $0x5e8] sm:$0xff] %v1110_v61 }
  0x71   : > { %1113 = vst [vmem:[%s4482_s30 + $0x5f0] sm:$0xff] %v1112_v62  ;;  %1115 = vst [vmem:[%s4482_s30 + $0x5f8] sm:$0xff] %v1114_v63  ;;  %v1116_v0 = vld [vmem:[%s4477_s29 + $0xc00] sm:$0xff]  ;;  %v1118_v1 = vld [vmem:[%s4477_s29 + $0xc10] sm:$0xff] }
  0x72   : > { %v1120_v2 = vld [vmem:[%s4477_s29 + $0xc20] sm:$0xff]  ;;  %1117 = vst [vmem:[%s4482_s30 + $0x600] sm:$0xff] %v1116_v0  ;;  %1119 = vst [vmem:[%s4482_s30 + $0x608] sm:$0xff] %v1118_v1  ;;  %v1122_v3 = vld [vmem:[%s4477_s29 + $0xc30] sm:$0xff] }
  0x73   : > { %1121 = vst [vmem:[%s4482_s30 + $0x610] sm:$0xff] %v1120_v2  ;;  %v1124_v4 = vld [vmem:[%s4477_s29 + $0xc40] sm:$0xff]  ;;  %v1126_v5 = vld [vmem:[%s4477_s29 + $0xc50] sm:$0xff]  ;;  %1123 = vst [vmem:[%s4482_s30 + $0x618] sm:$0xff] %v1122_v3 }
  0x74   : > { %1125 = vst [vmem:[%s4482_s30 + $0x620] sm:$0xff] %v1124_v4  ;;  %1127 = vst [vmem:[%s4482_s30 + $0x628] sm:$0xff] %v1126_v5  ;;  %v1128_v6 = vld [vmem:[%s4477_s29 + $0xc60] sm:$0xff]  ;;  %v1130_v7 = vld [vmem:[%s4477_s29 + $0xc70] sm:$0xff] }
  0x75   : > { %v1132_v8 = vld [vmem:[%s4477_s29 + $0xc80] sm:$0xff]  ;;  %1129 = vst [vmem:[%s4482_s30 + $0x630] sm:$0xff] %v1128_v6  ;;  %1131 = vst [vmem:[%s4482_s30 + $0x638] sm:$0xff] %v1130_v7  ;;  %v1134_v9 = vld [vmem:[%s4477_s29 + $0xc90] sm:$0xff] }
  0x76   : > { %1133 = vst [vmem:[%s4482_s30 + $0x640] sm:$0xff] %v1132_v8  ;;  %v1136_v10 = vld [vmem:[%s4477_s29 + $0xca0] sm:$0xff]  ;;  %v1138_v11 = vld [vmem:[%s4477_s29 + $0xcb0] sm:$0xff]  ;;  %1135 = vst [vmem:[%s4482_s30 + $0x648] sm:$0xff] %v1134_v9 }
  0x77   : > { %1137 = vst [vmem:[%s4482_s30 + $0x650] sm:$0xff] %v1136_v10  ;;  %1139 = vst [vmem:[%s4482_s30 + $0x658] sm:$0xff] %v1138_v11  ;;  %v1140_v12 = vld [vmem:[%s4477_s29 + $0xcc0] sm:$0xff]  ;;  %v1142_v13 = vld [vmem:[%s4477_s29 + $0xcd0] sm:$0xff] }
  0x78   : > { %v1144_v14 = vld [vmem:[%s4477_s29 + $0xce0] sm:$0xff]  ;;  %1141 = vst [vmem:[%s4482_s30 + $0x660] sm:$0xff] %v1140_v12  ;;  %1143 = vst [vmem:[%s4482_s30 + $0x668] sm:$0xff] %v1142_v13  ;;  %v1146_v15 = vld [vmem:[%s4477_s29 + $0xcf0] sm:$0xff] }
  0x79   : > { %1145 = vst [vmem:[%s4482_s30 + $0x670] sm:$0xff] %v1144_v14  ;;  %v1148_v16 = vld [vmem:[%s4477_s29 + $0xd00] sm:$0xff]  ;;  %v1150_v17 = vld [vmem:[%s4477_s29 + $0xd10] sm:$0xff]  ;;  %1147 = vst [vmem:[%s4482_s30 + $0x678] sm:$0xff] %v1146_v15 }
  0x7a   : > { %1149 = vst [vmem:[%s4482_s30 + $0x680] sm:$0xff] %v1148_v16  ;;  %1151 = vst [vmem:[%s4482_s30 + $0x688] sm:$0xff] %v1150_v17  ;;  %v1152_v18 = vld [vmem:[%s4477_s29 + $0xd20] sm:$0xff]  ;;  %v1154_v19 = vld [vmem:[%s4477_s29 + $0xd30] sm:$0xff] }
  0x7b   : > { %v1156_v20 = vld [vmem:[%s4477_s29 + $0xd40] sm:$0xff]  ;;  %1153 = vst [vmem:[%s4482_s30 + $0x690] sm:$0xff] %v1152_v18  ;;  %1155 = vst [vmem:[%s4482_s30 + $0x698] sm:$0xff] %v1154_v19  ;;  %v1158_v21 = vld [vmem:[%s4477_s29 + $0xd50] sm:$0xff] }
  0x7c   : > { %1157 = vst [vmem:[%s4482_s30 + $0x6a0] sm:$0xff] %v1156_v20  ;;  %v1160_v22 = vld [vmem:[%s4477_s29 + $0xd60] sm:$0xff]  ;;  %v1162_v23 = vld [vmem:[%s4477_s29 + $0xd70] sm:$0xff]  ;;  %1159 = vst [vmem:[%s4482_s30 + $0x6a8] sm:$0xff] %v1158_v21 }
  0x7d   : > { %1161 = vst [vmem:[%s4482_s30 + $0x6b0] sm:$0xff] %v1160_v22  ;;  %1163 = vst [vmem:[%s4482_s30 + $0x6b8] sm:$0xff] %v1162_v23  ;;  %v1164_v24 = vld [vmem:[%s4477_s29 + $0xd80] sm:$0xff]  ;;  %v1166_v25 = vld [vmem:[%s4477_s29 + $0xd90] sm:$0xff] }
  0x7e   : > { %v1168_v26 = vld [vmem:[%s4477_s29 + $0xda0] sm:$0xff]  ;;  %1165 = vst [vmem:[%s4482_s30 + $0x6c0] sm:$0xff] %v1164_v24  ;;  %1167 = vst [vmem:[%s4482_s30 + $0x6c8] sm:$0xff] %v1166_v25  ;;  %v1170_v27 = vld [vmem:[%s4477_s29 + $0xdb0] sm:$0xff] }
  0x7f   : > { %1169 = vst [vmem:[%s4482_s30 + $0x6d0] sm:$0xff] %v1168_v26  ;;  %v1172_v28 = vld [vmem:[%s4477_s29 + $0xdc0] sm:$0xff]  ;;  %v1174_v29 = vld [vmem:[%s4477_s29 + $0xdd0] sm:$0xff]  ;;  %1171 = vst [vmem:[%s4482_s30 + $0x6d8] sm:$0xff] %v1170_v27 }
  0x80   : > { %1173 = vst [vmem:[%s4482_s30 + $0x6e0] sm:$0xff] %v1172_v28  ;;  %1175 = vst [vmem:[%s4482_s30 + $0x6e8] sm:$0xff] %v1174_v29  ;;  %v1176_v30 = vld [vmem:[%s4477_s29 + $0xde0] sm:$0xff]  ;;  %v1178_v31 = vld [vmem:[%s4477_s29 + $0xdf0] sm:$0xff] }
  0x81   : > { %v1180_v32 = vld [vmem:[%s4477_s29 + $0xe00] sm:$0xff]  ;;  %1177 = vst [vmem:[%s4482_s30 + $0x6f0] sm:$0xff] %v1176_v30  ;;  %1179 = vst [vmem:[%s4482_s30 + $0x6f8] sm:$0xff] %v1178_v31  ;;  %v1182_v33 = vld [vmem:[%s4477_s29 + $0xe10] sm:$0xff] }
  0x82   : > { %1181 = vst [vmem:[%s4482_s30 + $0x700] sm:$0xff] %v1180_v32  ;;  %v1184_v34 = vld [vmem:[%s4477_s29 + $0xe20] sm:$0xff]  ;;  %v1186_v35 = vld [vmem:[%s4477_s29 + $0xe30] sm:$0xff]  ;;  %1183 = vst [vmem:[%s4482_s30 + $0x708] sm:$0xff] %v1182_v33 }
  0x83   : > { %1185 = vst [vmem:[%s4482_s30 + $0x710] sm:$0xff] %v1184_v34  ;;  %1187 = vst [vmem:[%s4482_s30 + $0x718] sm:$0xff] %v1186_v35  ;;  %v1188_v36 = vld [vmem:[%s4477_s29 + $0xe40] sm:$0xff]  ;;  %v1190_v37 = vld [vmem:[%s4477_s29 + $0xe50] sm:$0xff] }
  0x84   : > { %v1192_v38 = vld [vmem:[%s4477_s29 + $0xe60] sm:$0xff]  ;;  %1189 = vst [vmem:[%s4482_s30 + $0x720] sm:$0xff] %v1188_v36  ;;  %1191 = vst [vmem:[%s4482_s30 + $0x728] sm:$0xff] %v1190_v37  ;;  %v1194_v39 = vld [vmem:[%s4477_s29 + $0xe70] sm:$0xff] }
  0x85   : > { %1193 = vst [vmem:[%s4482_s30 + $0x730] sm:$0xff] %v1192_v38  ;;  %v1196_v40 = vld [vmem:[%s4477_s29 + $0xe80] sm:$0xff]  ;;  %v1198_v41 = vld [vmem:[%s4477_s29 + $0xe90] sm:$0xff]  ;;  %1195 = vst [vmem:[%s4482_s30 + $0x738] sm:$0xff] %v1194_v39 }
  0x86   : > { %1197 = vst [vmem:[%s4482_s30 + $0x740] sm:$0xff] %v1196_v40  ;;  %1199 = vst [vmem:[%s4482_s30 + $0x748] sm:$0xff] %v1198_v41  ;;  %v1200_v42 = vld [vmem:[%s4477_s29 + $0xea0] sm:$0xff]  ;;  %v1202_v43 = vld [vmem:[%s4477_s29 + $0xeb0] sm:$0xff] }
  0x87   : > { %v1204_v44 = vld [vmem:[%s4477_s29 + $0xec0] sm:$0xff]  ;;  %1201 = vst [vmem:[%s4482_s30 + $0x750] sm:$0xff] %v1200_v42  ;;  %1203 = vst [vmem:[%s4482_s30 + $0x758] sm:$0xff] %v1202_v43  ;;  %v1206_v45 = vld [vmem:[%s4477_s29 + $0xed0] sm:$0xff] }
  0x88   : > { %1205 = vst [vmem:[%s4482_s30 + $0x760] sm:$0xff] %v1204_v44  ;;  %v1208_v46 = vld [vmem:[%s4477_s29 + $0xee0] sm:$0xff]  ;;  %v1210_v47 = vld [vmem:[%s4477_s29 + $0xef0] sm:$0xff]  ;;  %1207 = vst [vmem:[%s4482_s30 + $0x768] sm:$0xff] %v1206_v45 }
  0x89   : > { %1209 = vst [vmem:[%s4482_s30 + $0x770] sm:$0xff] %v1208_v46  ;;  %1211 = vst [vmem:[%s4482_s30 + $0x778] sm:$0xff] %v1210_v47  ;;  %v1212_v48 = vld [vmem:[%s4477_s29 + $0xf00] sm:$0xff]  ;;  %v1214_v49 = vld [vmem:[%s4477_s29 + $0xf10] sm:$0xff] }
  0x8a   : > { %v1216_v50 = vld [vmem:[%s4477_s29 + $0xf20] sm:$0xff]  ;;  %1213 = vst [vmem:[%s4482_s30 + $0x780] sm:$0xff] %v1212_v48  ;;  %1215 = vst [vmem:[%s4482_s30 + $0x788] sm:$0xff] %v1214_v49  ;;  %v1218_v51 = vld [vmem:[%s4477_s29 + $0xf30] sm:$0xff] }
  0x8b   : > { %1217 = vst [vmem:[%s4482_s30 + $0x790] sm:$0xff] %v1216_v50  ;;  %v1220_v52 = vld [vmem:[%s4477_s29 + $0xf40] sm:$0xff]  ;;  %v1222_v53 = vld [vmem:[%s4477_s29 + $0xf50] sm:$0xff]  ;;  %1219 = vst [vmem:[%s4482_s30 + $0x798] sm:$0xff] %v1218_v51 }
  0x8c   : > { %1221 = vst [vmem:[%s4482_s30 + $0x7a0] sm:$0xff] %v1220_v52  ;;  %1223 = vst [vmem:[%s4482_s30 + $0x7a8] sm:$0xff] %v1222_v53  ;;  %v1224_v54 = vld [vmem:[%s4477_s29 + $0xf60] sm:$0xff]  ;;  %v1226_v55 = vld [vmem:[%s4477_s29 + $0xf70] sm:$0xff] }
  0x8d   : > { %v1228_v56 = vld [vmem:[%s4477_s29 + $0xf80] sm:$0xff]  ;;  %1225 = vst [vmem:[%s4482_s30 + $0x7b0] sm:$0xff] %v1224_v54  ;;  %1227 = vst [vmem:[%s4482_s30 + $0x7b8] sm:$0xff] %v1226_v55  ;;  %v1230_v57 = vld [vmem:[%s4477_s29 + $0xf90] sm:$0xff] }
  0x8e   : > { %1229 = vst [vmem:[%s4482_s30 + $0x7c0] sm:$0xff] %v1228_v56  ;;  %v1232_v58 = vld [vmem:[%s4477_s29 + $0xfa0] sm:$0xff]  ;;  %v1234_v59 = vld [vmem:[%s4477_s29 + $0xfb0] sm:$0xff]  ;;  %1231 = vst [vmem:[%s4482_s30 + $0x7c8] sm:$0xff] %v1230_v57 }
  0x8f   : > { %1233 = vst [vmem:[%s4482_s30 + $0x7d0] sm:$0xff] %v1232_v58  ;;  %1235 = vst [vmem:[%s4482_s30 + $0x7d8] sm:$0xff] %v1234_v59  ;;  %v1236_v60 = vld [vmem:[%s4477_s29 + $0xfc0] sm:$0xff]  ;;  %v1238_v61 = vld [vmem:[%s4477_s29 + $0xfd0] sm:$0xff] }
  0x90   : > { %v1240_v62 = vld [vmem:[%s4477_s29 + $0xfe0] sm:$0xff]  ;;  %1237 = vst [vmem:[%s4482_s30 + $0x7e0] sm:$0xff] %v1236_v60  ;;  %1239 = vst [vmem:[%s4482_s30 + $0x7e8] sm:$0xff] %v1238_v61  ;;  %v1242_v63 = vld [vmem:[%s4477_s29 + $0xff0] sm:$0xff] }
  0x91   : > { %1241 = vst [vmem:[%s4482_s30 + $0x7f0] sm:$0xff] %v1240_v62  ;;  %1243 = vst [vmem:[%s4482_s30 + $0x7f8] sm:$0xff] %v1242_v63 }
  0x92 PF: > { %p3579_p6 = scmp.ge.s32.totalorder %s4405_s19, 1  ;;  %p1265_p7 = scmp.lt.s32.totalorder %s4405_s19, 3 }
  0x94   : > { %p1266_p8 = pnand %p3579_p6, %p1265_p7 }
  0x95   : > { %s1272_s5 = sand.u32 (!%p1266_p8), 1, %s4389_s15   ;;  %v1351_v0 = vlaneseq (!%p1266_p8)  ;;  %v4407_v1 = vmov (!%p1266_p8), 1983009808   ;;  %v4999_v3 = vld [vmem:[%s5414_s0] sm:$0xff] (!%p1266_p8)  ;;  %v5006_v5 = vld [vmem:[%s5414_s0 + $0x10] sm:$0xff] (!%p1266_p8)  ;;  %s3582_s21 = sshll.u32 (!%p1266_p8), %s4397_s17, 5 }
  0x96   : > { %1269 = sbr.rel (%p1266_p8) target bundleno = 864 (0x360), region = 70  ;;  %s3580_s6 = sshll.u32 (!%p1266_p8), %s1272_s5, 11  ;;  %v1349_v2 = vunpack.c.l.s4 (!%p1266_p8), %v4407_v1  ;;  %vm3462_vm0 = vcmask (!%p1266_p8), 25600  }
  0x97   : > { %v5001_v4 = vshrl.u32 (!%p1266_p8), %v1351_v0, 7  ;;  %s5008_s11 = scalar_lea.vmem (!%p1266_p8), [#allocation3], %s3580_s6  ;;  %p1324_p9 = scmp.lt.s32.totalorder (!%p1266_p8), %s3582_s21, 63 }
  0x98   : > { %v3979_v6 = vld [vmem:[%s5008_s11 + $0x4] ss:$8 sps:$4 sm:$0xff] (!%p1266_p8)   ;;  %v1350_v7 = vunpack.c.0.s8 (!%p1266_p8), %v1349_v2  ;;  %v3983_v9 = vld [vmem:[%s5008_s11] ss:$8 sps:$4 sm:$0xff] (!%p1266_p8)   ;;  %v3985_v12 = vld [vmem:[%s5008_s11 + $0x14] ss:$8 sps:$4 sm:$0xff] (!%p1266_p8)  }
  0x99   : > { %v3981_v8 = vld [vmem:[%s5008_s11 + $0x404] ss:$8 sps:$4 sm:$0xff] (!%p1266_p8)   ;;  %2983 = vmatprep.subr.bf16.mxu1 (!%p1266_p8), %v3979_v6  ;;  %v3984_v10 = vld [vmem:[%s5008_s11 + $0x400] ss:$8 sps:$4 sm:$0xff] (!%p1266_p8)   ;;  %v3987_v13 = vld [vmem:[%s5008_s11 + $0x414] ss:$8 sps:$4 sm:$0xff] (!%p1266_p8)  }
  0x9a   : > { %v5015_v11 = vsub.s32 (!%p1266_p8), %v1350_v7, %v5001_v4  ;;  %3147 = vmatprep.subr.bf16.mxu0 (!%p1266_p8), %v3981_v8  ;;  %2984 = vmatpush1.bf16.msra.mxu1 (!%p1266_p8), %v3983_v9  ;;  %v3989_v14 = vld [vmem:[%s5008_s11 + $0x10] ss:$8 sps:$4 sm:$0xff] (!%p1266_p8)   ;;  %v3991_v18 = vld [vmem:[%s5008_s11 + $0x24] ss:$8 sps:$4 sm:$0xff] (!%p1266_p8)   ;;  %v3995_v22 = vld [vmem:[%s5008_s11 + $0x20] ss:$8 sps:$4 sm:$0xff] (!%p1266_p8)  }
  0x9b   : > { %3148 = vmatpush1.bf16.msra.mxu0 (!%p1266_p8), %v3984_v10  ;;  %2985 = vmatprep.subr.bf16.mxu1 (!%p1266_p8), %v3985_v12  ;;  %v3990_v17 = vld [vmem:[%s5008_s11 + $0x410] ss:$8 sps:$4 sm:$0xff] (!%p1266_p8)   ;;  %v3993_v21 = vld [vmem:[%s5008_s11 + $0x424] ss:$8 sps:$4 sm:$0xff] (!%p1266_p8)   ;;  %v3996_v23 = vld [vmem:[%s5008_s11 + $0x420] ss:$8 sps:$4 sm:$0xff] (!%p1266_p8)   ;;  %v1347_v12 = vcombine.high (!%p1266_p8), %v4999_v3, %v4999_v3 }
  0x9c   : > { %v5022_v15 = vrot.slane (!%p1266_p8), %v4999_v3, %v5015_v11  ;;  %v5026_v16 = vrot.slane (!%p1266_p8), %v5006_v5, %v5015_v11  ;;  %3149 = vmatprep.subr.bf16.mxu0 (!%p1266_p8), %v3987_v13  ;;  %v3997_v24 = vld [vmem:[%s5008_s11 + $0x34] ss:$8 sps:$4 sm:$0xff] (!%p1266_p8)   ;;  %v4001_v28 = vld [vmem:[%s5008_s11 + $0x30] ss:$8 sps:$4 sm:$0xff] (!%p1266_p8)   ;;  %v4003_v30 = vld [vmem:[%s5008_s11 + $0x44] ss:$8 sps:$4 sm:$0xff] (!%p1266_p8)   ;;  %v1381_v13 = vcombine.high (!%p1266_p8), %v5006_v5, %v5006_v5 }
  0x9d   : > { %v3999_v27 = vld [vmem:[%s5008_s11 + $0x434] ss:$8 sps:$4 sm:$0xff]   ;;  %v4002_v29 = vld [vmem:[%s5008_s11 + $0x430] ss:$8 sps:$4 sm:$0xff]   ;;  %v4005_v31 = vld [vmem:[%s5008_s11 + $0x444] ss:$8 sps:$4 sm:$0xff]  }
  0x9e   : > { %v1362_v19 = vcombine.high %v5022_v15, %v5022_v15  ;;  %v1396_v20 = vcombine.high %v5026_v16, %v5026_v16  ;;  %2986 = vmatpush1.bf16.msra.mxu1 %v3989_v14  ;;  %v4007_v32 = vld [vmem:[%s5008_s11 + $0x40] ss:$8 sps:$4 sm:$0xff]   ;;  %v4009_v34 = vld [vmem:[%s5008_s11 + $0x54] ss:$8 sps:$4 sm:$0xff]   ;;  %v4013_v36 = vld [vmem:[%s5008_s11 + $0x50] ss:$8 sps:$4 sm:$0xff]   ;;  %v5095_v3 = vrot.slane %v1381_v13, %v5015_v11 }
  0x9f   : > { %3150 = vmatpush1.bf16.msra.mxu0 %v3990_v17  ;;  %2987 = vmatprep.subr.bf16.mxu1 %v3991_v18  ;;  %v4008_v33 = vld [vmem:[%s5008_s11 + $0x440] ss:$8 sps:$4 sm:$0xff]   ;;  %v4011_v35 = vld [vmem:[%s5008_s11 + $0x454] ss:$8 sps:$4 sm:$0xff]   ;;  %v4014_v37 = vld [vmem:[%s5008_s11 + $0x450] ss:$8 sps:$4 sm:$0xff]  }
  0xa0   : > { %v1432_v25 = vpack.c.bf16 %v1362_v19, %v1362_v19  ;;  %v1440_v26 = vpack.c.bf16 %v1396_v20, %v1396_v20  ;;  %3151 = vmatprep.subr.bf16.mxu0 %v3993_v21  ;;  %v4015_v38 = vld [vmem:[%s5008_s11 + $0x64] ss:$8 sps:$4 sm:$0xff]   ;;  %v4019_v40 = vld [vmem:[%s5008_s11 + $0x60] ss:$8 sps:$4 sm:$0xff]   ;;  %v4021_v42 = vld [vmem:[%s5008_s11 + $0x74] ss:$8 sps:$4 sm:$0xff]   ;;  %v5092_v20 = vrot.slane %v1347_v12, %v5015_v11 }
  0xa1   : > { %v4017_v39 = vld [vmem:[%s5008_s11 + $0x464] ss:$8 sps:$4 sm:$0xff]   ;;  %v4020_v41 = vld [vmem:[%s5008_s11 + $0x460] ss:$8 sps:$4 sm:$0xff]   ;;  %v4023_v43 = vld [vmem:[%s5008_s11 + $0x474] ss:$8 sps:$4 sm:$0xff]  }
  0xa2   : > { %3015 = vmatprep.mubr.bf16.mxu1 %v1432_v25  ;;  %3179 = vmatprep.mubr.bf16.mxu0 %v1440_v26  ;;  %v4025_v44 = vld [vmem:[%s5008_s11 + $0x70] ss:$8 sps:$4 sm:$0xff]   ;;  %v4027_v46 = vld [vmem:[%s5008_s11 + $0x84] ss:$8 sps:$4 sm:$0xff]   ;;  %v4031_v48 = vld [vmem:[%s5008_s11 + $0x80] ss:$8 sps:$4 sm:$0xff]   ;;  %v1397_v25 = vcombine.high %v5095_v3, %v5095_v3 }
  0xa3   : > { %2988 = vmatpush1.bf16.msra.mxu1 %v3995_v22  ;;  %3152 = vmatpush1.bf16.msra.mxu0 %v3996_v23  ;;  %v4026_v45 = vld [vmem:[%s5008_s11 + $0x470] ss:$8 sps:$4 sm:$0xff]   ;;  %v4029_v47 = vld [vmem:[%s5008_s11 + $0x484] ss:$8 sps:$4 sm:$0xff]   ;;  %v4032_v49 = vld [vmem:[%s5008_s11 + $0x480] ss:$8 sps:$4 sm:$0xff]  }
  0xa4   : > { %2989 = vmatprep.subr.bf16.mxu1 %v3997_v24  ;;  %3153 = vmatprep.subr.bf16.mxu0 %v3999_v27  ;;  %v4033_v50 = vld [vmem:[%s5008_s11 + $0x94] ss:$8 sps:$4 sm:$0xff]   ;;  %v4037_v52 = vld [vmem:[%s5008_s11 + $0x90] ss:$8 sps:$4 sm:$0xff]   ;;  %v4039_v54 = vld [vmem:[%s5008_s11 + $0xa4] ss:$8 sps:$4 sm:$0xff]   ;;  %v1363_v24 = vcombine.high %v5092_v20, %v5092_v20 }
  0xa5   : > { %v4035_v51 = vld [vmem:[%s5008_s11 + $0x494] ss:$8 sps:$4 sm:$0xff]   ;;  %v4038_v53 = vld [vmem:[%s5008_s11 + $0x490] ss:$8 sps:$4 sm:$0xff]   ;;  %v4041_v55 = vld [vmem:[%s5008_s11 + $0x4a4] ss:$8 sps:$4 sm:$0xff]  }
  0xa6   : > { %v4043_v56 = vld [vmem:[%s5008_s11 + $0xa0] ss:$8 sps:$4 sm:$0xff]   ;;  %v4045_v58 = vld [vmem:[%s5008_s11 + $0xb4] ss:$8 sps:$4 sm:$0xff]   ;;  %v4049_v60 = vld [vmem:[%s5008_s11 + $0xb0] ss:$8 sps:$4 sm:$0xff]  }
  0xa7   : > { %2990 = vmatpush1.bf16.msra.mxu1 %v4001_v28  ;;  %3154 = vmatpush1.bf16.msra.mxu0 %v4002_v29  ;;  %v4044_v57 = vld [vmem:[%s5008_s11 + $0x4a0] ss:$8 sps:$4 sm:$0xff]   ;;  %v4047_v59 = vld [vmem:[%s5008_s11 + $0x4b4] ss:$8 sps:$4 sm:$0xff]   ;;  %v4050_v61 = vld [vmem:[%s5008_s11 + $0x4b0] ss:$8 sps:$4 sm:$0xff]   ;;  %v1431_v28 = vpack.c.bf16 %v5022_v15, %v5022_v15  ;;  %v1439_v29 = vpack.c.bf16 %v5026_v16, %v5026_v16 }
  0xa8   : > { %2991 = vmatprep.subr.bf16.mxu1 %v4003_v30  ;;  %3155 = vmatprep.subr.bf16.mxu0 %v4005_v31  ;;  %v4051_v62 = vld [vmem:[%s5008_s11 + $0xc4] ss:$8 sps:$4 sm:$0xff]   ;;  %v4055_v0 = vld [vmem:[%s5008_s11 + $0xc0] ss:$8 sps:$4 sm:$0xff]   ;;  %v4057_v2 = vld [vmem:[%s5008_s11 + $0xd4] ss:$8 sps:$4 sm:$0xff]  }
  0xa9   : > { %v4053_v63 = vld [vmem:[%s5008_s11 + $0x4c4] ss:$8 sps:$4 sm:$0xff]   ;;  %v4056_v1 = vld [vmem:[%s5008_s11 + $0x4c0] ss:$8 sps:$4 sm:$0xff]   ;;  %v4059_v6 = vld [vmem:[%s5008_s11 + $0x4d4] ss:$8 sps:$4 sm:$0xff]  }
  0xaa   : > { %v4061_v7 = vld [vmem:[%s5008_s11 + $0xd0] ss:$8 sps:$4 sm:$0xff]   ;;  %v4063_v9 = vld [vmem:[%s5008_s11 + $0xe4] ss:$8 sps:$4 sm:$0xff]   ;;  %v4067_v14 = vld [vmem:[%s5008_s11 + $0xe0] ss:$8 sps:$4 sm:$0xff]  }
  0xab   : > { %2992 = vmatpush1.bf16.msra.mxu1 %v4007_v32  ;;  %3156 = vmatpush1.bf16.msra.mxu0 %v4008_v33  ;;  %v4062_v8 = vld [vmem:[%s5008_s11 + $0x4d0] ss:$8 sps:$4 sm:$0xff]   ;;  %v4065_v10 = vld [vmem:[%s5008_s11 + $0x4e4] ss:$8 sps:$4 sm:$0xff]   ;;  %v4068_v17 = vld [vmem:[%s5008_s11 + $0x4e0] ss:$8 sps:$4 sm:$0xff]   ;;  %v1434_v32 = vpack.c.bf16 %v1363_v24, %v1363_v24  ;;  %v1442_v33 = vpack.c.bf16 %v1397_v25, %v1397_v25 }
  0xac   : > { %2993 = vmatprep.subr.bf16.mxu1 %v4009_v34  ;;  %3157 = vmatprep.subr.bf16.mxu0 %v4011_v35  ;;  %v4069_v18 = vld [vmem:[%s5008_s11 + $0xf4] ss:$8 sps:$4 sm:$0xff]   ;;  %v4073_v21 = vld [vmem:[%s5008_s11 + $0xf0] ss:$8 sps:$4 sm:$0xff]   ;;  %v4078_v22 = vld [vmem:[%s5008_s11 + $0x104] ss:$8 sps:$4 sm:$0xff]  }
  0xad   : > { %v4071_v19 = vld [vmem:[%s5008_s11 + $0x4f4] ss:$8 sps:$4 sm:$0xff]   ;;  %v4074_v5 = vld [vmem:[%s5008_s11 + $0x4f0] ss:$8 sps:$4 sm:$0xff]   ;;  %v4082_v23 = vld [vmem:[%s5008_s11 + $0x504] ss:$8 sps:$4 sm:$0xff]  }
  0xae   : > { %v4076_v26 = vld [vmem:[%s5008_s11 + $0x100] ss:$8 sps:$4 sm:$0xff]   ;;  %v4085_v30 = vld [vmem:[%s5008_s11 + $0x114] ss:$8 sps:$4 sm:$0xff]   ;;  %v4083_v34 = vld [vmem:[%s5008_s11 + $0x110] ss:$8 sps:$4 sm:$0xff]  }
  0xaf   : > { %2994 = vmatpush1.bf16.msra.mxu1 %v4013_v36  ;;  %3158 = vmatpush1.bf16.msra.mxu0 %v4014_v37  ;;  %v4080_v27 = vld [vmem:[%s5008_s11 + $0x500] ss:$8 sps:$4 sm:$0xff]   ;;  %v4088_v31 = vld [vmem:[%s5008_s11 + $0x514] ss:$8 sps:$4 sm:$0xff]   ;;  %v4086_v15 = vld [vmem:[%s5008_s11 + $0x510] ss:$8 sps:$4 sm:$0xff]  }
  0xb0   : > { %2995 = vmatprep.subr.bf16.mxu1 %v4015_v38  ;;  %3159 = vmatprep.subr.bf16.mxu0 %v4017_v39  ;;  %v4091_v16 = vld [vmem:[%s5008_s11 + $0x124] ss:$8 sps:$4 sm:$0xff]   ;;  %v4089_v36 = vld [vmem:[%s5008_s11 + $0x120] ss:$8 sps:$4 sm:$0xff]   ;;  %v4097_v38 = vld [vmem:[%s5008_s11 + $0x134] ss:$8 sps:$4 sm:$0xff]  }
  0xb1   : > { %v4094_v35 = vld [vmem:[%s5008_s11 + $0x524] ss:$8 sps:$4 sm:$0xff]   ;;  %v4092_v37 = vld [vmem:[%s5008_s11 + $0x520] ss:$8 sps:$4 sm:$0xff]   ;;  %v4100_v39 = vld [vmem:[%s5008_s11 + $0x534] ss:$8 sps:$4 sm:$0xff]  }
  0xb2   : > { %v4143_v12 = vld [vmem:[%s5008_s11 + $0x1b0] ss:$8 sps:$4 sm:$0xff]   ;;  %v4163_v24 = vld [vmem:[%s5008_s11 + $0x1e4] ss:$8 sps:$4 sm:$0xff]   ;;  %s5426_s21 = smov (!%p1324_p9, %s3582_s21), 63  ;;  %s3581_s27 = sshll.u32 %s4397_s17, 1 }
  0xb3   : > { %2996 = vmatpush1.bf16.msra.mxu1 %v4019_v40  ;;  %3160 = vmatpush1.bf16.msra.mxu0 %v4020_v41  ;;  %v4095_v40 = vld [vmem:[%s5008_s11 + $0x130] ss:$8 sps:$4 sm:$0xff]   ;;  %v4166_v25 = vld [vmem:[%s5008_s11 + $0x5e4] ss:$8 sps:$4 sm:$0xff]   ;;  %s3583_s22 = sshll.u32 %s5426_s21, 3  ;;  %p1319_p10 = scmp.lt.s32.totalorder %s3581_s27, 3 }
  0xb4   : > { %2997 = vmatprep.subr.bf16.mxu1 %v4021_v42  ;;  %3161 = vmatprep.subr.bf16.mxu0 %v4023_v43  ;;  %v4098_v41 = vld [vmem:[%s5008_s11 + $0x530] ss:$8 sps:$4 sm:$0xff]   ;;  %v4103_v42 = vld [vmem:[%s5008_s11 + $0x144] ss:$8 sps:$4 sm:$0xff]   ;;  %s5341_s26 = scalar_lea.vmem %s5417_s3, %s3583_s22  ;;  %p1329_p11 = scmp.lt.s32.totalorder %s4397_s17, 1 }
  0xb5   : > { %v4106_v43 = vld [vmem:[%s5008_s11 + $0x544] ss:$8 sps:$4 sm:$0xff]   ;;  %v4146_v13 = vld [vmem:[%s5008_s11 + $0x5b0] ss:$8 sps:$4 sm:$0xff]   ;;  %s5428_s27 = smov (!%p1319_p10, %s3581_s27), 3 }
  0xb6   : > { %s1321_s30 = scalar_lea.vmem %s5416_s2, %s5428_s27  ;;  %s5430_s17 = smov (!%p1329_p11, %s4397_s17), 1 }
  0xb7   : > { %2998 = vmatpush1.bf16.msra.mxu1 %v4025_v44  ;;  %3162 = vmatpush1.bf16.msra.mxu0 %v4026_v45  ;;  %v4101_v44 = vld [vmem:[%s5008_s11 + $0x140] ss:$8 sps:$4 sm:$0xff]   ;;  %s3584_s5 = sshll.u32 %s5430_s17, 1 }
  0xb8   : > { %2999 = vmatprep.subr.bf16.mxu1 %v4027_v46  ;;  %3163 = vmatprep.subr.bf16.mxu0 %v4029_v47  ;;  %v4104_v45 = vld [vmem:[%s5008_s11 + $0x540] ss:$8 sps:$4 sm:$0xff]   ;;  %v4109_v46 = vld [vmem:[%s5008_s11 + $0x154] ss:$8 sps:$4 sm:$0xff]   ;;  %s1332_s8 = scalar_lea.vmem %s5418_s4, %s3584_s5 }
  0xb9   : > { %v4112_v47 = vld [vmem:[%s5008_s11 + $0x554] ss:$8 sps:$4 sm:$0xff]  }
  0xbb   : > { %3000 = vmatpush1.bf16.msra.mxu1 %v4031_v48  ;;  %3164 = vmatpush1.bf16.msra.mxu0 %v4032_v49  ;;  %v4107_v48 = vld [vmem:[%s5008_s11 + $0x150] ss:$8 sps:$4 sm:$0xff]  }
  0xbc   : > { %3001 = vmatprep.subr.bf16.mxu1 %v4033_v50  ;;  %3165 = vmatprep.subr.bf16.mxu0 %v4035_v51  ;;  %v4110_v49 = vld [vmem:[%s5008_s11 + $0x550] ss:$8 sps:$4 sm:$0xff]   ;;  %v4115_v50 = vld [vmem:[%s5008_s11 + $0x164] ss:$8 sps:$4 sm:$0xff]  }
  0xbd   : > { %v4118_v51 = vld [vmem:[%s5008_s11 + $0x564] ss:$8 sps:$4 sm:$0xff]  }
  0xbf   : > { %3002 = vmatpush1.bf16.msra.mxu1 %v4037_v52  ;;  %3166 = vmatpush1.bf16.msra.mxu0 %v4038_v53  ;;  %v4113_v52 = vld [vmem:[%s5008_s11 + $0x160] ss:$8 sps:$4 sm:$0xff]  }
  0xc0   : > { %3003 = vmatprep.subr.bf16.mxu1 %v4039_v54  ;;  %3167 = vmatprep.subr.bf16.mxu0 %v4041_v55  ;;  %v4116_v53 = vld [vmem:[%s5008_s11 + $0x560] ss:$8 sps:$4 sm:$0xff]   ;;  %v4121_v54 = vld [vmem:[%s5008_s11 + $0x174] ss:$8 sps:$4 sm:$0xff]  }
  0xc1   : > { %v4124_v55 = vld [vmem:[%s5008_s11 + $0x574] ss:$8 sps:$4 sm:$0xff]  }
  0xc3   : > { %3004 = vmatpush1.bf16.msra.mxu1 %v4043_v56  ;;  %3168 = vmatpush1.bf16.msra.mxu0 %v4044_v57  ;;  %v4119_v56 = vld [vmem:[%s5008_s11 + $0x170] ss:$8 sps:$4 sm:$0xff]  }
  0xc4   : > { %3005 = vmatprep.subr.bf16.mxu1 %v4045_v58  ;;  %3169 = vmatprep.subr.bf16.mxu0 %v4047_v59  ;;  %v4122_v57 = vld [vmem:[%s5008_s11 + $0x570] ss:$8 sps:$4 sm:$0xff]   ;;  %v4127_v58 = vld [vmem:[%s5008_s11 + $0x184] ss:$8 sps:$4 sm:$0xff]  }
  0xc5   : > { %v4130_v59 = vld [vmem:[%s5008_s11 + $0x584] ss:$8 sps:$4 sm:$0xff]  }
  0xc7   : > { %3006 = vmatpush1.bf16.msra.mxu1 %v4049_v60  ;;  %3170 = vmatpush1.bf16.msra.mxu0 %v4050_v61  ;;  %v4125_v60 = vld [vmem:[%s5008_s11 + $0x180] ss:$8 sps:$4 sm:$0xff]  }
  0xc8   : > { %3007 = vmatprep.subr.bf16.mxu1 %v4051_v62  ;;  %3171 = vmatprep.subr.bf16.mxu0 %v4053_v63  ;;  %v4128_v61 = vld [vmem:[%s5008_s11 + $0x580] ss:$8 sps:$4 sm:$0xff]   ;;  %v4133_v62 = vld [vmem:[%s5008_s11 + $0x194] ss:$8 sps:$4 sm:$0xff]  }
  0xc9   : > { %v4136_v63 = vld [vmem:[%s5008_s11 + $0x594] ss:$8 sps:$4 sm:$0xff]  }
  0xcb   : > { %3008 = vmatpush1.bf16.msra.mxu1 %v4055_v0  ;;  %3172 = vmatpush1.bf16.msra.mxu0 %v4056_v1  ;;  %v4131_v0 = vld [vmem:[%s5008_s11 + $0x190] ss:$8 sps:$4 sm:$0xff]  }
  0xcc   : > { %3009 = vmatprep.subr.bf16.mxu1 %v4057_v2  ;;  %3173 = vmatprep.subr.bf16.mxu0 %v4059_v6  ;;  %v4134_v1 = vld [vmem:[%s5008_s11 + $0x590] ss:$8 sps:$4 sm:$0xff]   ;;  %v4139_v2 = vld [vmem:[%s5008_s11 + $0x1a4] ss:$8 sps:$4 sm:$0xff]  }
  0xcd   : > { %v4142_v6 = vld [vmem:[%s5008_s11 + $0x5a4] ss:$8 sps:$4 sm:$0xff]  }
  0xcf   : > { %3010 = vmatpush1.bf16.msra.mxu1 %v4061_v7  ;;  %3174 = vmatpush1.bf16.msra.mxu0 %v4062_v8  ;;  %v4137_v7 = vld [vmem:[%s5008_s11 + $0x1a0] ss:$8 sps:$4 sm:$0xff]  }
  0xd0   : > { %3011 = vmatprep.subr.bf16.mxu1 %v4063_v9  ;;  %3175 = vmatprep.subr.bf16.mxu0 %v4065_v10  ;;  %v4140_v8 = vld [vmem:[%s5008_s11 + $0x5a0] ss:$8 sps:$4 sm:$0xff]   ;;  %v4145_v9 = vld [vmem:[%s5008_s11 + $0x1b4] ss:$8 sps:$4 sm:$0xff]  }
  0xd1   : > { %v4148_v10 = vld [vmem:[%s5008_s11 + $0x5b4] ss:$8 sps:$4 sm:$0xff]  }
  0xd3   : > { %3012 = vmatpush1.bf16.msra.mxu1 %v4067_v14  ;;  %3176 = vmatpush1.bf16.msra.mxu0 %v4068_v17  ;;  %v4151_v14 = vld [vmem:[%s5008_s11 + $0x1c4] ss:$8 sps:$4 sm:$0xff]  }
  0xd4   : > { %3013 = vmatprep.subr.bf16.mxu1 %v4069_v18  ;;  %3177 = vmatprep.subr.bf16.mxu0 %v4071_v19  ;;  %v4154_v17 = vld [vmem:[%s5008_s11 + $0x5c4] ss:$8 sps:$4 sm:$0xff]   ;;  %v4149_v18 = vld [vmem:[%s5008_s11 + $0x1c0] ss:$8 sps:$4 sm:$0xff]  }
  0xd5   : > { %v4152_v19 = vld [vmem:[%s5008_s11 + $0x5c0] ss:$8 sps:$4 sm:$0xff]  }
  0xd7   : > { %3014 = vmatpush1.bf16.msra.mxu1 %v4073_v21  ;;  %3178 = vmatpush1.bf16.msra.mxu0 %v4074_v5  ;;  %v4157_v21 = vld [vmem:[%s5008_s11 + $0x1d4] ss:$8 sps:$4 sm:$0xff]  }
  0xd8   : > { %3024 = vmatprep.subr.bf16.mxu1 %v4078_v22  ;;  %3188 = vmatprep.subr.bf16.mxu0 %v4082_v23  ;;  %v4160_v5 = vld [vmem:[%s5008_s11 + $0x5d4] ss:$8 sps:$4 sm:$0xff]   ;;  %v4155_v22 = vld [vmem:[%s5008_s11 + $0x1d0] ss:$8 sps:$4 sm:$0xff]  }
  0xd9   : > { %v4158_v23 = vld [vmem:[%s5008_s11 + $0x5d0] ss:$8 sps:$4 sm:$0xff]  }
  0xda   : > { %3016 = vmatmul.mubr.bf16.vlgmr.msra.gmra.mrb[0].mxu1 %v1431_v28  ;;  %3180 = vmatmul.mubr.bf16.vlgmr.msra.gmra.mrb[0].mxu0 %v1439_v29  ;;  %v4169_v28 = vld [vmem:[%s5008_s11 + $0x1f4] ss:$8 sps:$4 sm:$0xff]  }
  0xdb   : > { %3025 = vmatpush1.bf16.msra.mxu1 %v4076_v26  ;;  %3189 = vmatpush1.bf16.msra.mxu0 %v4080_v27  ;;  %v4161_v26 = vld [vmem:[%s5008_s11 + $0x1e0] ss:$8 sps:$4 sm:$0xff]   ;;  %v4172_v29 = vld [vmem:[%s5008_s11 + $0x5f4] ss:$8 sps:$4 sm:$0xff]  }
  0xdc   : > { %3026 = vmatprep.subr.bf16.mxu1 %v4085_v30  ;;  %3190 = vmatprep.subr.bf16.mxu0 %v4088_v31  ;;  %v4164_v27 = vld [vmem:[%s5008_s11 + $0x5e0] ss:$8 sps:$4 sm:$0xff]   ;;  %v4167_v30 = vld [vmem:[%s5008_s11 + $0x1f0] ss:$8 sps:$4 sm:$0xff]  }
  0xdd   : > { %3056 = vmatprep.mubr.bf16.mxu1 %v1434_v32  ;;  %3220 = vmatprep.mubr.bf16.mxu0 %v1442_v33  ;;  %v4170_v31 = vld [vmem:[%s5008_s11 + $0x5f0] ss:$8 sps:$4 sm:$0xff]   ;;  %v4175_v32 = vld [vmem:[%s5008_s11 + $0x204] ss:$8 sps:$4 sm:$0xff]  }
  0xde   : > { %v4178_v33 = vld [vmem:[%s5008_s11 + $0x604] ss:$8 sps:$4 sm:$0xff]  }
  0xdf   : > { %3027 = vmatpush1.bf16.msra.mxu1 %v4083_v34  ;;  %3191 = vmatpush1.bf16.msra.mxu0 %v4086_v15  ;;  %v4173_v34 = vld [vmem:[%s5008_s11 + $0x200] ss:$8 sps:$4 sm:$0xff]  }
  0xe0   : > { %3028 = vmatprep.subr.bf16.mxu1 %v4091_v16  ;;  %3192 = vmatprep.subr.bf16.mxu0 %v4094_v35  ;;  %v4176_v15 = vld [vmem:[%s5008_s11 + $0x600] ss:$8 sps:$4 sm:$0xff]   ;;  %v1433_v16 = vpack.c.bf16 %v5092_v20, %v5092_v20  ;;  %v1441_v35 = vpack.c.bf16 %v5095_v3, %v5095_v3  ;;  %v5193_v3 = vld [vmem:[%s5414_s0 + $0x18] sm:$0xff] }
  0xe3   : > { %3029 = vmatpush1.bf16.msra.mxu1 %v4089_v36  ;;  %3193 = vmatpush1.bf16.msra.mxu0 %v4092_v37  ;;  %v5182_v36 = vld [vmem:[%s5414_s0 + $0x8] sm:$0xff]  ;;  %v4181_v37 = vld [vmem:[%s5008_s11 + $0x214] ss:$8 sps:$4 sm:$0xff]  }
  0xe4   : > { %3030 = vmatprep.subr.bf16.mxu1 %v4097_v38  ;;  %3194 = vmatprep.subr.bf16.mxu0 %v4100_v39  ;;  %v4184_v38 = vld [vmem:[%s5008_s11 + $0x614] ss:$8 sps:$4 sm:$0xff]   ;;  %v5188_v20 = vrot.slane %v5182_v36, %v5015_v11  ;;  %v5197_v39 = vrot.slane %v5193_v3, %v5015_v11 }
  0xe7   : > { %3031 = vmatpush1.bf16.msra.mxu1 %v4095_v40  ;;  %3195 = vmatpush1.bf16.msra.mxu0 %v4098_v41  ;;  %v1379_v40 = vcombine.high %v5188_v20, %v5188_v20  ;;  %v4179_v41 = vld [vmem:[%s5008_s11 + $0x210] ss:$8 sps:$4 sm:$0xff]  }
  0xe8   : > { %3032 = vmatprep.subr.bf16.mxu1 %v4103_v42  ;;  %3196 = vmatprep.subr.bf16.mxu0 %v4106_v43  ;;  %v4182_v42 = vld [vmem:[%s5008_s11 + $0x610] ss:$8 sps:$4 sm:$0xff]   ;;  %v1413_v43 = vcombine.high %v5197_v39, %v5197_v39 }
  0xeb   : > { %3033 = vmatpush1.bf16.msra.mxu1 %v4101_v44  ;;  %3197 = vmatpush1.bf16.msra.mxu0 %v4104_v45  ;;  %v4187_v44 = vld [vmem:[%s5008_s11 + $0x224] ss:$8 sps:$4 sm:$0xff]  }
  0xec   : > { %3034 = vmatprep.subr.bf16.mxu1 %v4109_v46  ;;  %3198 = vmatprep.subr.bf16.mxu0 %v4112_v47  ;;  %v4190_v45 = vld [vmem:[%s5008_s11 + $0x624] ss:$8 sps:$4 sm:$0xff]   ;;  %v1436_v46 = vpack.c.bf16 %v1379_v40, %v1379_v40  ;;  %v1444_v47 = vpack.c.bf16 %v1413_v43, %v1413_v43  ;;  %v4257_v40 = vld [vmem:[%s5008_s11 + $0x2e0] ss:$8 sps:$4 sm:$0xff]   ;;  %v4268_v43 = vld [vmem:[%s5008_s11 + $0x6f4] ss:$8 sps:$4 sm:$0xff]  }
  0xef   : > { %3035 = vmatpush1.bf16.msra.mxu1 %v4107_v48  ;;  %3199 = vmatpush1.bf16.msra.mxu0 %v4110_v49  ;;  %v4185_v48 = vld [vmem:[%s5008_s11 + $0x220] ss:$8 sps:$4 sm:$0xff]  }
  0xf0   : > { %3036 = vmatprep.subr.bf16.mxu1 %v4115_v50  ;;  %3200 = vmatprep.subr.bf16.mxu0 %v4118_v51  ;;  %v4188_v49 = vld [vmem:[%s5008_s11 + $0x620] ss:$8 sps:$4 sm:$0xff]   ;;  %v4193_v50 = vld [vmem:[%s5008_s11 + $0x234] ss:$8 sps:$4 sm:$0xff]  }
  0xf1   : > { %v4196_v51 = vld [vmem:[%s5008_s11 + $0x634] ss:$8 sps:$4 sm:$0xff]  }
  0xf3   : > { %3037 = vmatpush1.bf16.msra.mxu1 %v4113_v52  ;;  %3201 = vmatpush1.bf16.msra.mxu0 %v4116_v53  ;;  %v4191_v52 = vld [vmem:[%s5008_s11 + $0x230] ss:$8 sps:$4 sm:$0xff]  }
  0xf4   : > { %3038 = vmatprep.subr.bf16.mxu1 %v4121_v54  ;;  %3202 = vmatprep.subr.bf16.mxu0 %v4124_v55  ;;  %v4194_v53 = vld [vmem:[%s5008_s11 + $0x630] ss:$8 sps:$4 sm:$0xff]   ;;  %v4199_v54 = vld [vmem:[%s5008_s11 + $0x244] ss:$8 sps:$4 sm:$0xff]  }
  0xf5   : > { %v4202_v55 = vld [vmem:[%s5008_s11 + $0x644] ss:$8 sps:$4 sm:$0xff]  }
  0xf7   : > { %3039 = vmatpush1.bf16.msra.mxu1 %v4119_v56  ;;  %3203 = vmatpush1.bf16.msra.mxu0 %v4122_v57  ;;  %v4197_v56 = vld [vmem:[%s5008_s11 + $0x240] ss:$8 sps:$4 sm:$0xff]  }
  0xf8   : > { %3040 = vmatprep.subr.bf16.mxu1 %v4127_v58  ;;  %3204 = vmatprep.subr.bf16.mxu0 %v4130_v59  ;;  %v4200_v57 = vld [vmem:[%s5008_s11 + $0x640] ss:$8 sps:$4 sm:$0xff]   ;;  %v4205_v58 = vld [vmem:[%s5008_s11 + $0x254] ss:$8 sps:$4 sm:$0xff]  }
  0xf9   : > { %v4208_v59 = vld [vmem:[%s5008_s11 + $0x654] ss:$8 sps:$4 sm:$0xff]  }
  0xfb   : > { %3041 = vmatpush1.bf16.msra.mxu1 %v4125_v60  ;;  %3205 = vmatpush1.bf16.msra.mxu0 %v4128_v61  ;;  %v4203_v60 = vld [vmem:[%s5008_s11 + $0x250] ss:$8 sps:$4 sm:$0xff]  }
  0xfc   : > { %3042 = vmatprep.subr.bf16.mxu1 %v4133_v62  ;;  %3206 = vmatprep.subr.bf16.mxu0 %v4136_v63  ;;  %v4206_v61 = vld [vmem:[%s5008_s11 + $0x650] ss:$8 sps:$4 sm:$0xff]   ;;  %v4211_v62 = vld [vmem:[%s5008_s11 + $0x264] ss:$8 sps:$4 sm:$0xff]  }
  0xfd   : > { %v4214_v63 = vld [vmem:[%s5008_s11 + $0x664] ss:$8 sps:$4 sm:$0xff]  }
  0xff   : > { %3043 = vmatpush1.bf16.msra.mxu1 %v4131_v0  ;;  %3207 = vmatpush1.bf16.msra.mxu0 %v4134_v1  ;;  %v4209_v0 = vld [vmem:[%s5008_s11 + $0x260] ss:$8 sps:$4 sm:$0xff]  }
 0x100   : > { %3044 = vmatprep.subr.bf16.mxu1 %v4139_v2  ;;  %3208 = vmatprep.subr.bf16.mxu0 %v4142_v6  ;;  %v4212_v1 = vld [vmem:[%s5008_s11 + $0x660] ss:$8 sps:$4 sm:$0xff]   ;;  %v4217_v2 = vld [vmem:[%s5008_s11 + $0x274] ss:$8 sps:$4 sm:$0xff]  }
 0x101   : > { %v4220_v6 = vld [vmem:[%s5008_s11 + $0x674] ss:$8 sps:$4 sm:$0xff]  }
 0x103   : > { %3045 = vmatpush1.bf16.msra.mxu1 %v4137_v7  ;;  %3209 = vmatpush1.bf16.msra.mxu0 %v4140_v8  ;;  %v4215_v7 = vld [vmem:[%s5008_s11 + $0x270] ss:$8 sps:$4 sm:$0xff]  }
 0x104   : > { %3046 = vmatprep.subr.bf16.mxu1 %v4145_v9  ;;  %3210 = vmatprep.subr.bf16.mxu0 %v4148_v10  ;;  %v4218_v8 = vld [vmem:[%s5008_s11 + $0x670] ss:$8 sps:$4 sm:$0xff]   ;;  %v4223_v9 = vld [vmem:[%s5008_s11 + $0x284] ss:$8 sps:$4 sm:$0xff]  }
 0x105   : > { %v4226_v10 = vld [vmem:[%s5008_s11 + $0x684] ss:$8 sps:$4 sm:$0xff]  }
 0x107   : > { %3047 = vmatpush1.bf16.msra.mxu1 %v4143_v12  ;;  %3211 = vmatpush1.bf16.msra.mxu0 %v4146_v13  ;;  %v4221_v12 = vld [vmem:[%s5008_s11 + $0x280] ss:$8 sps:$4 sm:$0xff]  }
 0x108   : > { %3048 = vmatprep.subr.bf16.mxu1 %v4151_v14  ;;  %3212 = vmatprep.subr.bf16.mxu0 %v4154_v17  ;;  %v4224_v13 = vld [vmem:[%s5008_s11 + $0x680] ss:$8 sps:$4 sm:$0xff]   ;;  %v4229_v14 = vld [vmem:[%s5008_s11 + $0x294] ss:$8 sps:$4 sm:$0xff]  }
 0x109   : > { %v4232_v17 = vld [vmem:[%s5008_s11 + $0x694] ss:$8 sps:$4 sm:$0xff]  }
 0x10b   : > { %3049 = vmatpush1.bf16.msra.mxu1 %v4149_v18  ;;  %3213 = vmatpush1.bf16.msra.mxu0 %v4152_v19  ;;  %v4227_v18 = vld [vmem:[%s5008_s11 + $0x290] ss:$8 sps:$4 sm:$0xff]  }
 0x10c   : > { %3050 = vmatprep.subr.bf16.mxu1 %v4157_v21  ;;  %3214 = vmatprep.subr.bf16.mxu0 %v4160_v5  ;;  %v4230_v19 = vld [vmem:[%s5008_s11 + $0x690] ss:$8 sps:$4 sm:$0xff]   ;;  %v4235_v21 = vld [vmem:[%s5008_s11 + $0x2a4] ss:$8 sps:$4 sm:$0xff]  }
 0x10d   : > { %v4238_v5 = vld [vmem:[%s5008_s11 + $0x6a4] ss:$8 sps:$4 sm:$0xff]  }
 0x10f   : > { %3051 = vmatpush1.bf16.msra.mxu1 %v4155_v22  ;;  %3215 = vmatpush1.bf16.msra.mxu0 %v4158_v23  ;;  %v4233_v22 = vld [vmem:[%s5008_s11 + $0x2a0] ss:$8 sps:$4 sm:$0xff]  }
 0x110   : > { %3052 = vmatprep.subr.bf16.mxu1 %v4163_v24  ;;  %3216 = vmatprep.subr.bf16.mxu0 %v4166_v25  ;;  %v4236_v23 = vld [vmem:[%s5008_s11 + $0x6a0] ss:$8 sps:$4 sm:$0xff]   ;;  %v4241_v24 = vld [vmem:[%s5008_s11 + $0x2b4] ss:$8 sps:$4 sm:$0xff]  }
 0x111   : > { %v4244_v25 = vld [vmem:[%s5008_s11 + $0x6b4] ss:$8 sps:$4 sm:$0xff]  }
 0x113   : > { %3053 = vmatpush1.bf16.msra.mxu1 %v4161_v26  ;;  %3217 = vmatpush1.bf16.msra.mxu0 %v4164_v27  ;;  %v4239_v26 = vld [vmem:[%s5008_s11 + $0x2b0] ss:$8 sps:$4 sm:$0xff]  }
 0x114   : > { %3054 = vmatprep.subr.bf16.mxu1 %v4169_v28  ;;  %3218 = vmatprep.subr.bf16.mxu0 %v4172_v29  ;;  %v4242_v27 = vld [vmem:[%s5008_s11 + $0x6b0] ss:$8 sps:$4 sm:$0xff]   ;;  %v4247_v28 = vld [vmem:[%s5008_s11 + $0x2c4] ss:$8 sps:$4 sm:$0xff]  }
 0x115   : > { %v4250_v29 = vld [vmem:[%s5008_s11 + $0x6c4] ss:$8 sps:$4 sm:$0xff]  }
 0x117   : > { %3055 = vmatpush1.bf16.msra.mxu1 %v4167_v30  ;;  %3219 = vmatpush1.bf16.msra.mxu0 %v4170_v31  ;;  %v4245_v30 = vld [vmem:[%s5008_s11 + $0x2c0] ss:$8 sps:$4 sm:$0xff]  }
 0x118   : > { %3065 = vmatprep.subr.bf16.mxu1 %v4175_v32  ;;  %3229 = vmatprep.subr.bf16.mxu0 %v4178_v33  ;;  %v4248_v31 = vld [vmem:[%s5008_s11 + $0x6c0] ss:$8 sps:$4 sm:$0xff]   ;;  %v4253_v32 = vld [vmem:[%s5008_s11 + $0x2d4] ss:$8 sps:$4 sm:$0xff]  }
 0x119   : > { %v4256_v33 = vld [vmem:[%s5008_s11 + $0x6d4] ss:$8 sps:$4 sm:$0xff]  }
 0x11a   : > { %3057 = vmatmul.mubr.bf16.vlgmr.msra.gmra.mrb[0].mxu1 %v1433_v16  ;;  %3221 = vmatmul.mubr.bf16.vlgmr.msra.gmra.mrb[0].mxu0 %v1441_v35  ;;  %v4259_v16 = vld [vmem:[%s5008_s11 + $0x2e4] ss:$8 sps:$4 sm:$0xff]  }
 0x11b   : > { %3066 = vmatpush1.bf16.msra.mxu1 %v4173_v34  ;;  %3230 = vmatpush1.bf16.msra.mxu0 %v4176_v15  ;;  %v4251_v34 = vld [vmem:[%s5008_s11 + $0x2d0] ss:$8 sps:$4 sm:$0xff]   ;;  %v4262_v35 = vld [vmem:[%s5008_s11 + $0x6e4] ss:$8 sps:$4 sm:$0xff]  }
 0x11c   : > { %3067 = vmatprep.subr.bf16.mxu1 %v4181_v37  ;;  %3231 = vmatprep.subr.bf16.mxu0 %v4184_v38  ;;  %v4254_v15 = vld [vmem:[%s5008_s11 + $0x6d0] ss:$8 sps:$4 sm:$0xff]   ;;  %v1364_v37 = vcombine.high %v5182_v36, %v5182_v36  ;;  %v1398_v38 = vcombine.high %v5193_v3, %v5193_v3 }
 0x11d   : > { %3097 = vmatprep.mubr.bf16.mxu1 %v1436_v46  ;;  %3261 = vmatprep.mubr.bf16.mxu0 %v1444_v47  ;;  %v4263_v36 = vld [vmem:[%s5008_s11 + $0x2f0] ss:$8 sps:$4 sm:$0xff]   ;;  %v4271_v46 = vld [vmem:[%s5008_s11 + $0x304] ss:$8 sps:$4 sm:$0xff]  }
 0x11e   : > { %v4266_v3 = vld [vmem:[%s5008_s11 + $0x6f0] ss:$8 sps:$4 sm:$0xff]   ;;  %v4274_v47 = vld [vmem:[%s5008_s11 + $0x704] ss:$8 sps:$4 sm:$0xff]  }
 0x11f   : > { %3068 = vmatpush1.bf16.msra.mxu1 %v4179_v41  ;;  %3232 = vmatpush1.bf16.msra.mxu0 %v4182_v42  ;;  %v4260_v41 = vld [vmem:[%s5008_s11 + $0x6e0] ss:$8 sps:$4 sm:$0xff]   ;;  %v4265_v42 = vld [vmem:[%s5008_s11 + $0x2f4] ss:$8 sps:$4 sm:$0xff]  }
 0x120   : > { %3069 = vmatprep.subr.bf16.mxu1 %v4187_v44  ;;  %3233 = vmatprep.subr.bf16.mxu0 %v4190_v45  ;;  %v5264_v44 = vrot.slane %v1364_v37, %v5015_v11  ;;  %v5267_v45 = vrot.slane %v1398_v38, %v5015_v11  ;;  %v4335_v37 = vld [vmem:[%s5008_s11 + $0x3b0] ss:$8 sps:$4 sm:$0xff]  }
 0x121   : > { %v4338_v38 = vld [vmem:[%s5008_s11 + $0x7b0] ss:$8 sps:$4 sm:$0xff]  }
 0x123   : > { %3070 = vmatpush1.bf16.msra.mxu1 %v4185_v48  ;;  %3234 = vmatpush1.bf16.msra.mxu0 %v4188_v49  ;;  %v1380_v48 = vcombine.high %v5264_v44, %v5264_v44  ;;  %v1414_v49 = vcombine.high %v5267_v45, %v5267_v45 }
 0x124   : > { %3071 = vmatprep.subr.bf16.mxu1 %v4193_v50  ;;  %3235 = vmatprep.subr.bf16.mxu0 %v4196_v51  ;;  %v1435_v50 = vpack.c.bf16 %v5188_v20, %v5188_v20  ;;  %v1443_v51 = vpack.c.bf16 %v5197_v39, %v5197_v39  ;;  %v4275_v20 = vld [vmem:[%s5008_s11 + $0x310] ss:$8 sps:$4 sm:$0xff]  }
 0x125   : > { %v4278_v39 = vld [vmem:[%s5008_s11 + $0x710] ss:$8 sps:$4 sm:$0xff]  }
 0x127   : > { %3072 = vmatpush1.bf16.msra.mxu1 %v4191_v52  ;;  %3236 = vmatpush1.bf16.msra.mxu0 %v4194_v53  ;;  %v4269_v52 = vld [vmem:[%s5008_s11 + $0x300] ss:$8 sps:$4 sm:$0xff]  }
 0x128   : > { %3073 = vmatprep.subr.bf16.mxu1 %v4199_v54  ;;  %3237 = vmatprep.subr.bf16.mxu0 %v4202_v55  ;;  %v4272_v53 = vld [vmem:[%s5008_s11 + $0x700] ss:$8 sps:$4 sm:$0xff]   ;;  %v4277_v54 = vld [vmem:[%s5008_s11 + $0x314] ss:$8 sps:$4 sm:$0xff]  }
 0x129   : > { %v4280_v55 = vld [vmem:[%s5008_s11 + $0x714] ss:$8 sps:$4 sm:$0xff]  }
 0x12b   : > { %3074 = vmatpush1.bf16.msra.mxu1 %v4197_v56  ;;  %3238 = vmatpush1.bf16.msra.mxu0 %v4200_v57  ;;  %v1438_v56 = vpack.c.bf16 %v1380_v48, %v1380_v48  ;;  %v1446_v57 = vpack.c.bf16 %v1414_v49, %v1414_v49  ;;  %v4355_v48 = vld [vmem:[%s5008_s11 + $0x3e4] ss:$8 sps:$4 sm:$0xff]  }
 0x12c   : > { %3075 = vmatprep.subr.bf16.mxu1 %v4205_v58  ;;  %3239 = vmatprep.subr.bf16.mxu0 %v4208_v59  ;;  %v4283_v58 = vld [vmem:[%s5008_s11 + $0x324] ss:$8 sps:$4 sm:$0xff]  }
 0x12d   : > { %v4286_v59 = vld [vmem:[%s5008_s11 + $0x724] ss:$8 sps:$4 sm:$0xff]  }
 0x12e   : > { %v4358_v49 = vld [vmem:[%s5008_s11 + $0x7e4] ss:$8 sps:$4 sm:$0xff]  }
 0x12f   : > { %3076 = vmatpush1.bf16.msra.mxu1 %v4203_v60  ;;  %3240 = vmatpush1.bf16.msra.mxu0 %v4206_v61  ;;  %v4281_v60 = vld [vmem:[%s5008_s11 + $0x320] ss:$8 sps:$4 sm:$0xff]  }
 0x130   : > { %3077 = vmatprep.subr.bf16.mxu1 %v4211_v62  ;;  %3241 = vmatprep.subr.bf16.mxu0 %v4214_v63  ;;  %v4284_v61 = vld [vmem:[%s5008_s11 + $0x720] ss:$8 sps:$4 sm:$0xff]   ;;  %v4289_v62 = vld [vmem:[%s5008_s11 + $0x334] ss:$8 sps:$4 sm:$0xff]  }
 0x131   : > { %v4292_v63 = vld [vmem:[%s5008_s11 + $0x734] ss:$8 sps:$4 sm:$0xff]  }
 0x133   : > { %3078 = vmatpush1.bf16.msra.mxu1 %v4209_v0  ;;  %3242 = vmatpush1.bf16.msra.mxu0 %v4212_v1  ;;  %v4287_v0 = vld [vmem:[%s5008_s11 + $0x330] ss:$8 sps:$4 sm:$0xff]  }
 0x134   : > { %3079 = vmatprep.subr.bf16.mxu1 %v4217_v2  ;;  %3243 = vmatprep.subr.bf16.mxu0 %v4220_v6  ;;  %v4290_v1 = vld [vmem:[%s5008_s11 + $0x730] ss:$8 sps:$4 sm:$0xff]   ;;  %v4295_v2 = vld [vmem:[%s5008_s11 + $0x344] ss:$8 sps:$4 sm:$0xff]  }
 0x135   : > { %v4298_v6 = vld [vmem:[%s5008_s11 + $0x744] ss:$8 sps:$4 sm:$0xff]  }
 0x137   : > { %3080 = vmatpush1.bf16.msra.mxu1 %v4215_v7  ;;  %3244 = vmatpush1.bf16.msra.mxu0 %v4218_v8  ;;  %v4293_v7 = vld [vmem:[%s5008_s11 + $0x340] ss:$8 sps:$4 sm:$0xff]  }
 0x138   : > { %3081 = vmatprep.subr.bf16.mxu1 %v4223_v9  ;;  %3245 = vmatprep.subr.bf16.mxu0 %v4226_v10  ;;  %v4296_v8 = vld [vmem:[%s5008_s11 + $0x740] ss:$8 sps:$4 sm:$0xff]   ;;  %v4301_v9 = vld [vmem:[%s5008_s11 + $0x354] ss:$8 sps:$4 sm:$0xff]  }
 0x139   : > { %v4304_v10 = vld [vmem:[%s5008_s11 + $0x754] ss:$8 sps:$4 sm:$0xff]  }
 0x13b   : > { %3082 = vmatpush1.bf16.msra.mxu1 %v4221_v12  ;;  %3246 = vmatpush1.bf16.msra.mxu0 %v4224_v13  ;;  %v4299_v12 = vld [vmem:[%s5008_s11 + $0x350] ss:$8 sps:$4 sm:$0xff]  }
 0x13c   : > { %3083 = vmatprep.subr.bf16.mxu1 %v4229_v14  ;;  %3247 = vmatprep.subr.bf16.mxu0 %v4232_v17  ;;  %v4302_v13 = vld [vmem:[%s5008_s11 + $0x750] ss:$8 sps:$4 sm:$0xff]   ;;  %v4307_v14 = vld [vmem:[%s5008_s11 + $0x364] ss:$8 sps:$4 sm:$0xff]  }
 0x13d   : > { %v4310_v17 = vld [vmem:[%s5008_s11 + $0x764] ss:$8 sps:$4 sm:$0xff]  }
 0x13f   : > { %3084 = vmatpush1.bf16.msra.mxu1 %v4227_v18  ;;  %3248 = vmatpush1.bf16.msra.mxu0 %v4230_v19  ;;  %v4305_v18 = vld [vmem:[%s5008_s11 + $0x360] ss:$8 sps:$4 sm:$0xff]  }
 0x140   : > { %3085 = vmatprep.subr.bf16.mxu1 %v4235_v21  ;;  %3249 = vmatprep.subr.bf16.mxu0 %v4238_v5  ;;  %v4308_v19 = vld [vmem:[%s5008_s11 + $0x760] ss:$8 sps:$4 sm:$0xff]   ;;  %v4313_v21 = vld [vmem:[%s5008_s11 + $0x374] ss:$8 sps:$4 sm:$0xff]  }
 0x141   : > { %v4316_v5 = vld [vmem:[%s5008_s11 + $0x774] ss:$8 sps:$4 sm:$0xff]  }
 0x143   : > { %3086 = vmatpush1.bf16.msra.mxu1 %v4233_v22  ;;  %3250 = vmatpush1.bf16.msra.mxu0 %v4236_v23  ;;  %v4311_v22 = vld [vmem:[%s5008_s11 + $0x370] ss:$8 sps:$4 sm:$0xff]  }
 0x144   : > { %3087 = vmatprep.subr.bf16.mxu1 %v4241_v24  ;;  %3251 = vmatprep.subr.bf16.mxu0 %v4244_v25  ;;  %v4314_v23 = vld [vmem:[%s5008_s11 + $0x770] ss:$8 sps:$4 sm:$0xff]   ;;  %v4319_v24 = vld [vmem:[%s5008_s11 + $0x384] ss:$8 sps:$4 sm:$0xff]  }
 0x145   : > { %v4322_v25 = vld [vmem:[%s5008_s11 + $0x784] ss:$8 sps:$4 sm:$0xff]  }
 0x147   : > { %3088 = vmatpush1.bf16.msra.mxu1 %v4239_v26  ;;  %3252 = vmatpush1.bf16.msra.mxu0 %v4242_v27  ;;  %v4317_v26 = vld [vmem:[%s5008_s11 + $0x380] ss:$8 sps:$4 sm:$0xff]  }
 0x148   : > { %3089 = vmatprep.subr.bf16.mxu1 %v4247_v28  ;;  %3253 = vmatprep.subr.bf16.mxu0 %v4250_v29  ;;  %v4320_v27 = vld [vmem:[%s5008_s11 + $0x780] ss:$8 sps:$4 sm:$0xff]   ;;  %v4325_v28 = vld [vmem:[%s5008_s11 + $0x394] ss:$8 sps:$4 sm:$0xff]  }
 0x149   : > { %v4328_v29 = vld [vmem:[%s5008_s11 + $0x794] ss:$8 sps:$4 sm:$0xff]  }
 0x14b   : > { %3090 = vmatpush1.bf16.msra.mxu1 %v4245_v30  ;;  %3254 = vmatpush1.bf16.msra.mxu0 %v4248_v31  ;;  %v4323_v30 = vld [vmem:[%s5008_s11 + $0x390] ss:$8 sps:$4 sm:$0xff]  }
 0x14c   : > { %3091 = vmatprep.subr.bf16.mxu1 %v4253_v32  ;;  %3255 = vmatprep.subr.bf16.mxu0 %v4256_v33  ;;  %v4326_v31 = vld [vmem:[%s5008_s11 + $0x790] ss:$8 sps:$4 sm:$0xff]   ;;  %v4331_v32 = vld [vmem:[%s5008_s11 + $0x3a4] ss:$8 sps:$4 sm:$0xff]  }
 0x14d   : > { %v4334_v33 = vld [vmem:[%s5008_s11 + $0x7a4] ss:$8 sps:$4 sm:$0xff]  }
 0x14f   : > { %3092 = vmatpush1.bf16.msra.mxu1 %v4251_v34  ;;  %3256 = vmatpush1.bf16.msra.mxu0 %v4254_v15  ;;  %v4329_v34 = vld [vmem:[%s5008_s11 + $0x3a0] ss:$8 sps:$4 sm:$0xff]  }
 0x150   : > { %3093 = vmatprep.subr.bf16.mxu1 %v4259_v16  ;;  %3257 = vmatprep.subr.bf16.mxu0 %v4262_v35  ;;  %v4332_v15 = vld [vmem:[%s5008_s11 + $0x7a0] ss:$8 sps:$4 sm:$0xff]   ;;  %v4337_v16 = vld [vmem:[%s5008_s11 + $0x3b4] ss:$8 sps:$4 sm:$0xff]  }
 0x151   : > { %v4340_v35 = vld [vmem:[%s5008_s11 + $0x7b4] ss:$8 sps:$4 sm:$0xff]  }
 0x153   : > { %3094 = vmatpush1.bf16.msra.mxu1 %v4257_v40  ;;  %3258 = vmatpush1.bf16.msra.mxu0 %v4260_v41  ;;  %v4343_v40 = vld [vmem:[%s5008_s11 + $0x3c4] ss:$8 sps:$4 sm:$0xff]  }
 0x154   : > { %3095 = vmatprep.subr.bf16.mxu1 %v4265_v42  ;;  %3259 = vmatprep.subr.bf16.mxu0 %v4268_v43  ;;  %v4346_v41 = vld [vmem:[%s5008_s11 + $0x7c4] ss:$8 sps:$4 sm:$0xff]   ;;  %v4341_v42 = vld [vmem:[%s5008_s11 + $0x3c0] ss:$8 sps:$4 sm:$0xff]  }
 0x155   : > { %v4344_v43 = vld [vmem:[%s5008_s11 + $0x7c0] ss:$8 sps:$4 sm:$0xff]  }
 0x157   : > { %3096 = vmatpush1.bf16.msra.mxu1 %v4263_v36  ;;  %3260 = vmatpush1.bf16.msra.mxu0 %v4266_v3  ;;  %v4349_v36 = vld [vmem:[%s5008_s11 + $0x3d4] ss:$8 sps:$4 sm:$0xff]  }
 0x158   : > { %3106 = vmatprep.subr.bf16.mxu1 %v4271_v46  ;;  %3270 = vmatprep.subr.bf16.mxu0 %v4274_v47  ;;  %v4352_v3 = vld [vmem:[%s5008_s11 + $0x7d4] ss:$8 sps:$4 sm:$0xff]   ;;  %v4347_v46 = vld [vmem:[%s5008_s11 + $0x3d0] ss:$8 sps:$4 sm:$0xff]  }
 0x159   : > { %v4350_v47 = vld [vmem:[%s5008_s11 + $0x7d0] ss:$8 sps:$4 sm:$0xff]  }
 0x15a   : > { %3098 = vmatmul.mubr.bf16.vlgmr.msra.gmra.mrb[0].mxu1 %v1435_v50  ;;  %3262 = vmatmul.mubr.bf16.vlgmr.msra.gmra.mrb[0].mxu0 %v1443_v51  ;;  %v4353_v50 = vld [vmem:[%s5008_s11 + $0x3e0] ss:$8 sps:$4 sm:$0xff]  }
 0x15b   : > { %3107 = vmatpush1.bf16.msra.mxu1 %v4269_v52  ;;  %3271 = vmatpush1.bf16.msra.mxu0 %v4272_v53  ;;  %v4356_v51 = vld [vmem:[%s5008_s11 + $0x7e0] ss:$8 sps:$4 sm:$0xff]   ;;  %v4361_v52 = vld [vmem:[%s5008_s11 + $0x3f4] ss:$8 sps:$4 sm:$0xff]  }
 0x15c   : > { %3108 = vmatprep.subr.bf16.mxu1 %v4277_v54  ;;  %3272 = vmatprep.subr.bf16.mxu0 %v4280_v55  ;;  %v4364_v53 = vld [vmem:[%s5008_s11 + $0x7f4] ss:$8 sps:$4 sm:$0xff]   ;;  %v3366_v55 = vld [vmem:[%s5341_s26 + $0x88] sm:$0xff] }
 0x15d   : > { %3138 = vmatprep.mubr.bf16.mxu1 %v1438_v56  ;;  %3302 = vmatprep.mubr.bf16.mxu0 %v1446_v57  ;;  %v3365_v54 = vld [vmem:[%s5341_s26 + $0x80] sm:$0xff]  ;;  %v4359_v56 = vld [vmem:[%s5008_s11 + $0x3f0] ss:$8 sps:$4 sm:$0xff]  }
 0x15e   : > { %v4362_v57 = vld [vmem:[%s5008_s11 + $0x7f0] ss:$8 sps:$4 sm:$0xff]  }
 0x15f   : > { %3109 = vmatpush1.bf16.msra.mxu1 %v4275_v20  ;;  %3273 = vmatpush1.bf16.msra.mxu0 %v4278_v39  ;;  %v3879_v20 = vpack.c.bf16 %v3366_v55, %v3365_v54  ;;  %v3349_v39 = vld [vmem:[%s5341_s26] sm:$0xff]  ;;  %v3336_v54 = vsub.s32 1, %v5001_v4 }
 0x160   : > { %3110 = vmatprep.subr.bf16.mxu1 %v4283_v58  ;;  %3274 = vmatprep.subr.bf16.mxu0 %v4286_v59  ;;  %v3350_v58 = vld [vmem:[%s5341_s26 + $0x8] sm:$0xff]  ;;  %v3367_v59 = vld [vmem:[%s5341_s26 + $0x90] sm:$0xff] }
 0x163   : > { %3111 = vmatpush1.bf16.msra.mxu1 %v4281_v60  ;;  %3275 = vmatpush1.bf16.msra.mxu0 %v4284_v61  ;;  %v3368_v60 = vld [vmem:[%s5341_s26 + $0x98] sm:$0xff]  ;;  %v1437_v61 = vpack.c.bf16 %v5264_v44, %v5264_v44 }
 0x164   : > { %3112 = vmatprep.subr.bf16.mxu1 %v4289_v62  ;;  %3276 = vmatprep.subr.bf16.mxu0 %v4292_v63  ;;  %v1445_v62 = vpack.c.bf16 %v5267_v45, %v5267_v45  ;;  %v3881_v63 = vpack.c.bf16 %v3350_v58, %v3349_v39  ;;  %v3352_v44 = vld [vmem:[%s5341_s26 + $0x18] sm:$0xff]  ;;  %v4408_v45 = vmov 0.0  }
 0x165   : > { %1337 = vst [vmem:[#allocation2] sm:$0xf] %v4408_v45 }
 0x167   : > { %3113 = vmatpush1.bf16.msra.mxu1 %v4287_v0  ;;  %3277 = vmatpush1.bf16.msra.mxu0 %v4290_v1  ;;  %v3883_v0 = vpack.c.bf16 %v3368_v60, %v3367_v59  ;;  %v3351_v1 = vld [vmem:[%s5341_s26 + $0x10] sm:$0xff] }
 0x168   : > { %3114 = vmatprep.subr.bf16.mxu1 %v4295_v2  ;;  %3278 = vmatprep.subr.bf16.mxu0 %v4298_v6  ;;  %v3885_v2 = vpack.c.bf16 %v3352_v44, %v3351_v1  ;;  %v3369_v6 = vld [vmem:[%s5341_s26 + $0xa0] sm:$0xff] }
 0x16b   : > { %3115 = vmatpush1.bf16.msra.mxu1 %v4293_v7  ;;  %3279 = vmatpush1.bf16.msra.mxu0 %v4296_v8  ;;  %v3370_v7 = vld [vmem:[%s5341_s26 + $0xa8] sm:$0xff] }
 0x16c   : > { %3116 = vmatprep.subr.bf16.mxu1 %v4301_v9  ;;  %3280 = vmatprep.subr.bf16.mxu0 %v4304_v10  ;;  %v3887_v8 = vpack.c.bf16 %v3370_v7, %v3369_v6  ;;  %v3353_v9 = vld [vmem:[%s5341_s26 + $0x20] sm:$0xff]  ;;  %v3354_v10 = vld [vmem:[%s5341_s26 + $0x28] sm:$0xff] }
 0x16d   : > { %v1338_v39 = vld [vmem:[#allocation2] sm:$0xf] }
 0x16f   : > { %3117 = vmatpush1.bf16.msra.mxu1 %v4299_v12  ;;  %3281 = vmatpush1.bf16.msra.mxu0 %v4302_v13  ;;  %v3889_v12 = vpack.c.bf16 %v3354_v10, %v3353_v9  ;;  %v3371_v13 = vld [vmem:[%s5341_s26 + $0xb0] sm:$0xff] }
 0x170   : > { %3118 = vmatprep.subr.bf16.mxu1 %v4307_v14  ;;  %3282 = vmatprep.subr.bf16.mxu0 %v4310_v17  ;;  %v3372_v14 = vld [vmem:[%s5341_s26 + $0xb8] sm:$0xff] }
 0x171   : > { %v3891_v17 = vpack.c.bf16 %v3372_v14, %v3371_v13 }
 0x173   : > { %3119 = vmatpush1.bf16.msra.mxu1 %v4305_v18  ;;  %3283 = vmatpush1.bf16.msra.mxu0 %v4308_v19  ;;  %v3355_v18 = vld [vmem:[%s5341_s26 + $0x30] sm:$0xff]  ;;  %v3356_v19 = vld [vmem:[%s5341_s26 + $0x38] sm:$0xff] }
 0x174   : > { %3120 = vmatprep.subr.bf16.mxu1 %v4313_v21  ;;  %3284 = vmatprep.subr.bf16.mxu0 %v4316_v5  ;;  %v3893_v21 = vpack.c.bf16 %v3356_v19, %v3355_v18  ;;  %v3373_v5 = vld [vmem:[%s5341_s26 + $0xc0] sm:$0xff] }
 0x177   : > { %3121 = vmatpush1.bf16.msra.mxu1 %v4311_v22  ;;  %3285 = vmatpush1.bf16.msra.mxu0 %v4314_v23  ;;  %v3374_v22 = vld [vmem:[%s5341_s26 + $0xc8] sm:$0xff] }
 0x178   : > { %3122 = vmatprep.subr.bf16.mxu1 %v4319_v24  ;;  %3286 = vmatprep.subr.bf16.mxu0 %v4322_v25  ;;  %v3895_v23 = vpack.c.bf16 %v3374_v22, %v3373_v5  ;;  %v3357_v24 = vld [vmem:[%s5341_s26 + $0x40] sm:$0xff]  ;;  %v3358_v25 = vld [vmem:[%s5341_s26 + $0x48] sm:$0xff] }
 0x17b   : > { %3123 = vmatpush1.bf16.msra.mxu1 %v4317_v26  ;;  %3287 = vmatpush1.bf16.msra.mxu0 %v4320_v27  ;;  %v3897_v26 = vpack.c.bf16 %v3358_v25, %v3357_v24  ;;  %v3375_v27 = vld [vmem:[%s5341_s26 + $0xd0] sm:$0xff] }
 0x17c   : > { %3124 = vmatprep.subr.bf16.mxu1 %v4325_v28  ;;  %3288 = vmatprep.subr.bf16.mxu0 %v4328_v29  ;;  %v3376_v28 = vld [vmem:[%s5341_s26 + $0xd8] sm:$0xff]  ;;  %v3359_v29 = vld [vmem:[%s5341_s26 + $0x50] sm:$0xff] }
 0x17f   : > { %3125 = vmatpush1.bf16.msra.mxu1 %v4323_v30  ;;  %3289 = vmatpush1.bf16.msra.mxu0 %v4326_v31  ;;  %v3899_v30 = vpack.c.bf16 %v3376_v28, %v3375_v27  ;;  %v3360_v31 = vld [vmem:[%s5341_s26 + $0x58] sm:$0xff] }
 0x180   : > { %3126 = vmatprep.subr.bf16.mxu1 %v4331_v32  ;;  %3290 = vmatprep.subr.bf16.mxu0 %v4334_v33  ;;  %v3377_v32 = vld [vmem:[%s5341_s26 + $0xe0] sm:$0xff]  ;;  %v3378_v33 = vld [vmem:[%s5341_s26 + $0xe8] sm:$0xff] }
 0x183   : > { %3127 = vmatpush1.bf16.msra.mxu1 %v4329_v34  ;;  %3291 = vmatpush1.bf16.msra.mxu0 %v4332_v15  ;;  %v3901_v34 = vpack.c.bf16 %v3360_v31, %v3359_v29  ;;  %v3903_v15 = vpack.c.bf16 %v3378_v33, %v3377_v32 }
 0x184   : > { %3128 = vmatprep.subr.bf16.mxu1 %v4337_v16  ;;  %3292 = vmatprep.subr.bf16.mxu0 %v4340_v35  ;;  %v3361_v16 = vld [vmem:[%s5341_s26 + $0x60] sm:$0xff]  ;;  %v3362_v35 = vld [vmem:[%s5341_s26 + $0x68] sm:$0xff] }
 0x187   : > { %3129 = vmatpush1.bf16.msra.mxu1 %v4335_v37  ;;  %3293 = vmatpush1.bf16.msra.mxu0 %v4338_v38  ;;  %v3379_v37 = vld [vmem:[%s5341_s26 + $0xf0] sm:$0xff]  ;;  %v3380_v38 = vld [vmem:[%s5341_s26 + $0xf8] sm:$0xff] }
 0x188   : > { %3130 = vmatprep.subr.bf16.mxu1 %v4343_v40  ;;  %3294 = vmatprep.subr.bf16.mxu0 %v4346_v41  ;;  %v3905_v40 = vpack.c.bf16 %v3362_v35, %v3361_v16  ;;  %v3907_v41 = vpack.c.bf16 %v3380_v38, %v3379_v37 }
 0x18b   : > { %3131 = vmatpush1.bf16.msra.mxu1 %v4341_v42  ;;  %3295 = vmatpush1.bf16.msra.mxu0 %v4344_v43  ;;  %v3363_v42 = vld [vmem:[%s5341_s26 + $0x70] sm:$0xff]  ;;  %v3364_v43 = vld [vmem:[%s5341_s26 + $0x78] sm:$0xff] }
 0x18c   : > { %3132 = vmatprep.subr.bf16.mxu1 %v4349_v36  ;;  %3296 = vmatprep.subr.bf16.mxu0 %v4352_v3  ;;  %v3909_v36 = vpack.c.bf16 %v3364_v43, %v3363_v42 }
 0x18f   : > { %3133 = vmatpush1.bf16.msra.mxu1 %v4347_v46  ;;  %3297 = vmatpush1.bf16.msra.mxu0 %v4350_v47 }
 0x190   : > { %3134 = vmatprep.subr.bf16.mxu1 %v4355_v48  ;;  %3298 = vmatprep.subr.bf16.mxu0 %v4358_v49 }
 0x193   : > { %3135 = vmatpush1.bf16.msra.mxu1 %v4353_v50  ;;  %3299 = vmatpush1.bf16.msra.mxu0 %v4356_v51 }
 0x194   : > { %3136 = vmatprep.subr.bf16.mxu1 %v4361_v52  ;;  %3300 = vmatprep.subr.bf16.mxu0 %v4364_v53  ;;  %v3332_v53 = vsub.s32 0, %v5001_v4 }
 0x197   : > { %3137 = vmatpush1.bf16.msra.mxu1 %v4359_v56  ;;  %3301 = vmatpush1.bf16.msra.mxu0 %v4362_v57  ;;  %v3328_v57 = vld [vmem:[%s1321_s30] sm:$0x3] }
 0x198   : > { %3880 = vmatprep.subr.bf16.mxu1 %v3879_v20  ;;  %v3333_v59 = vrot.slane %v3328_v57, %v3332_v53  ;;  %v3337_v60 = vrot.slane %v3328_v57, %v3336_v54 }
 0x19a   : > { %3139 = vmatmul.mubr.bf16.vlgmr.msra.gmra.mrb[0].mxu1 %v1437_v61  ;;  %3303 = vmatmul.mubr.bf16.vlgmr.msra.gmra.mrb[0].mxu0 %v1445_v62  ;;  %v3338_v62 = vcombine.low %v3333_v59, %v3337_v60 }
 0x19b   : > { %3882 = vmatpush3.bf16.msra.mxu1 %v3881_v63 }
 0x19c   : > { %3884 = vmatprep.subr.bf16.mxu1 %v3883_v0  ;;  %v3345_v63 = vrot.slane %v3338_v62, %v5015_v11 }
 0x19f   : > { %3886 = vmatpush3.bf16.msra.mxu1 %v3885_v2 }
 0x1a0   : > { %3888 = vmatprep.subr.bf16.mxu1 %v3887_v8 }
 0x1a3   : > { %3890 = vmatpush3.bf16.msra.mxu1 %v3889_v12 }
 0x1a4   : > { %3892 = vmatprep.subr.bf16.mxu1 %v3891_v17 }
 0x1a7   : > { %3894 = vmatpush3.bf16.msra.mxu1 %v3893_v21 }
 0x1a8   : > { %3896 = vmatprep.subr.bf16.mxu1 %v3895_v23 }
 0x1ab   : > { %3898 = vmatpush3.bf16.msra.mxu1 %v3897_v26 }
 0x1ac   : > { %3900 = vmatprep.subr.bf16.mxu1 %v3899_v30 }
 0x1af   : > { %3902 = vmatpush3.bf16.msra.mxu1 %v3901_v34 }
 0x1b0   : > { %3904 = vmatprep.subr.bf16.mxu1 %v3903_v15 }
 0x1b3   : > { %3906 = vmatpush3.bf16.msra.mxu1 %v3905_v40 }
 0x1b4   : > { %3908 = vmatprep.subr.bf16.mxu1 %v3907_v41 }
 0x1b7   : > { %3910 = vmatpush3.bf16.msra.mxu1 %v3909_v36 }
 0x26d   : > { %v3140_v3 = vpop.f32.mrb[0].mxu1  ;;  %v3304_v46 = vpop.f32.mrb[0].mxu0 }
 0x26e   : > { %v3911_v47 = vadd.f32 %v3304_v46, %v3140_v3  ;;  %v3142_v48 = vpop.f32.mrb[1].mxu1  ;;  %v3306_v49 = vpop.f32.mrb[1].mxu0 }
 0x26f   : > { %v3912_v50 = vadd.f32 %v3306_v49, %v3142_v48  ;;  %v3144_v51 = vpop.f32.mrb[2].mxu1  ;;  %v3308_v52 = vpop.f32.mrb[2].mxu0 }
 0x270   : > { %v3145_v55 = vpop.f32.mrb[3].mxu1  ;;  %v3309_v56 = vpop.f32.mrb[3].mxu0 }
 0x271   : > { %v3313_v20 = vcombine.low %v3911_v47, %v3912_v50 }
 0x273   : > { %v3320_v58 = vrot.slane %v3313_v20, %v5015_v11 }
 0x275   : > { %v3322_v61 = vadd.f32 %v3320_v58, %v1338_v39 }
 0x277   : > { %3323 = vst [vmem:[#allocation2] sm:$0xf] %v3322_v61 }
 0x27e   : > { %v3327_v0 = vld [vmem:[#allocation2] sm:$0xf] }
 0x27f   : > { %v3347_v1 = vadd.f32 %v3345_v63, %v3327_v0 }
 0x281   : > { %v3348_v44 = vmax.f32 %v3347_v1, 0.0 }
 0x283   : > { %v3388_v4 = vrot.slane %v3348_v44, %v5015_v11 }
 0x285   : > { %v3389_v2 = vcombine.high %v3388_v4, %v3388_v4 }
 0x287   : > { %3456 = vmatprep.mubr.f32.mxu1 %v3389_v2 }
 0x288   : > { %3457 = vmatmul.mubr.f32.vlgmr.msra.gmra.mrb[4].mxu1 %v3388_v4 }
 0x35b   : > { %v3876_v45 = vpop.f32.mrb[4].mxu1 }
 0x35c   : > { %v3877_v6 = vpop.f32.mrb[5].mxu1 }
 0x35d   : > { %v3878_v7 = vadd.f32 %v3877_v6, %v3876_v45 }
 0x35f   : > { %3463 = vst.msk [vmem:[%s1332_s8] sm:$0x3] %vm3462_vm0, %v3878_v7 }
 0x360 PF: > { %s14_s19 = sadd.s32 1, %s4405_s19   ;;  %s5419_s15 = smov %s4393_s16 }
 0x361   : > { %p11_p12 = scmp.ge.s32.totalorder %s14_s19, 4   ;;  %s5420_s16 = smov %s4469_s23 }
 0x362   : > { %s5421_s17 = smov %s4401_s18  ;;  %s5422_s18 = smov %s5424_s20 }
 0x363   :  { %13 = sbr.rel (!%p11_p12) target bundleno = 3 (0x3), region = 126 }

</bundles_post_ra>
